<compile_context>
chip_gen: v7x
topology: tpu7x:2x2x1
jax: 0.10.0
libtpu: 0.0.40
codegen_flags: <defaults>
</compile_context>

<pallas_src>
import functools

import jax
import jax.numpy as jnp
from jax.experimental import pallas as pl
from jax.experimental.pallas import tpu as pltpu

F32 = jnp.float32


def _full_spec(shape):
    # whole-array block (grid=(1,)), block shape == full array dims
    return pl.BlockSpec(shape, lambda i: (0,) * len(shape))


# ---------------------------------------------------------------------------
# Fused decoder kernel: the whole seq_len rollout in one pallas_call.
# ---------------------------------------------------------------------------
def _decoder_fused_kernel(last_pos_ref, last_pos_rel_ref, h0_ref, c0_ref,
                          mask_ref,
                          A_ref, lb_ref, whh_ref,
                          h2p_wT_ref, h2p_b_ref,
                          pA_ref, pc_ref, pm_ref, pw2_ref, pb2_ref,
                          m1b_ref, mb1_ref, m2_ref, mb2_ref,
                          pred_ref, hout_ref):
    B, H = h0_ref.shape
    seq_len = pred_ref.shape[1] // 2
    MID = pA_ref.shape[1]
    mm = whh_ref.dtype                     # MXU operand dtype (bf16 or f32)

    # ---- hot recurrent state only; weights are read at their use sites ----
    h = h0_ref[...]                        # (B, H) hidden state (f32)
    c = c0_ref[...]                        # (B, H) cell state   (f32)
    lp = last_pos_ref[...]
    px = lp[:, 0:1]                        # (B, 1) current position x
    py = lp[:, 1:2]                        # (B, 1) current position y
    lpr = last_pos_rel_ref[...]
    rx = lpr[:, 0:1]                       # (B, 1) last relative displacement x
    ry = lpr[:, 1:2]                       # (B, 1) last relative displacement y

    cols = []                              # lane-packed rel predictions

    # recurrence is serial; seq_len is a compile-time constant -> unroll it
    # inside the single kernel (no per-step launch / HBM round trips).
    for t in range(seq_len):
        # ------------- LSTM cell (PyTorch gate order i,f,g,o) -------------
        # spatial_embedding folded into W_ih:  rel @ (dse_w @ W_ih) + folded bias
        gates = (rx * A_ref[0:1, :] + ry * A_ref[1:2, :] + lb_ref[...]
                 + jnp.dot(h.astype(mm), whh_ref[...],
                           preferred_element_type=jnp.float32))
        sg = jax.nn.sigmoid(gates)                       # full (B,4H) tile
        g_g = jnp.tanh(gates[:, 2 * H:3 * H])            # tanh only on g-gate
        c = sg[:, H:2 * H] * c + sg[:, 0:H] * g_g
        h_lstm = sg[:, 3 * H:4 * H] * jnp.tanh(c)        # LSTM output

        # ------------- shared-LHS packed matmul ---------------------------
        # [pool W1 hidden-half | decoder-MLP W1 h-half] -> (B, MID + MLP)
        hcomb = jnp.dot(h_lstm.astype(mm), pm_ref[...],
                        preferred_element_type=jnp.float32)
        hproj = hcomb[:, 0:MID]            # hidden half of pool pre-MLP
        hm1a = hcomb[:, MID:]              # h-half partial of decoder MLP L1

        # ------------- hidden2pos: two row-dot reductions (XLU) -----------
        rel_x = (jnp.sum(h_lstm * h2p_wT_ref[0:1, :], axis=1, keepdims=True)
                 + h2p_b_ref[:, 0:1])
        rel_y = (jnp.sum(h_lstm * h2p_wT_ref[1:2, :], axis=1, keepdims=True)
                 + h2p_b_ref[:, 1:2])
        px = px + rel_x                    # curr_pos
        py = py + rel_y

        # ------------- PoolHiddenNet (all peds, same-group mask) ----------
        # pre[i*B+j] = emb(pos_j - pos_i)@W1a + h_j@W1b + bias
        #            = (sproj[j] - sproj[i]) + hproj[j] + pc
        sproj = px * pA_ref[0:1, :] + py * pA_ref[1:2, :]     # (B, MID) VPU FMA
        base = sproj + hproj + pc_ref[...]                    # (B, MID)
        y = jnp.maximum(base[None, :, :] - sproj[:, None, :],
                        0.0).reshape(B * B, MID)              # (B*B, MID)
        z = (jnp.dot(y.astype(mm), pw2_ref[...],
                     preferred_element_type=jnp.float32) + pb2_ref[...])
        z = jnp.maximum(z, 0.0) * mask_ref[...]               # zero other groups
        # z >= 0 and the diagonal pair (j == i) is always in-group, so the
        # masked max is exact.
        pool_h = jnp.max(z.reshape(B, B, -1), axis=1)         # (B, BOT)

        # ------------- Decoder.mlp (h-half came from packed matmul) -------
        dh = jnp.maximum(
            hm1a
            + jnp.dot(pool_h.astype(mm), m1b_ref[...],
                      preferred_element_type=jnp.float32)
            + mb1_ref[...], 0.0)
        h = jnp.maximum(
            jnp.dot(dh.astype(mm), m2_ref[...],
                    preferred_element_type=jnp.float32) + mb2_ref[...], 0.0)

        # ------------- next input + record prediction ---------------------
        rx, ry = rel_x, rel_y
        cols.append(rel_x)
        cols.append(rel_y)

    # single lane-packed store of all predictions: (B, 2*seq_len)
    pred_ref[...] = jnp.concatenate(cols, axis=1)
    hout_ref[...] = h


# ---------------------------------------------------------------------------
# Wrapper: fold BN / spatial embeddings, pack weights, build mask, call kernel.
# ---------------------------------------------------------------------------
def decoder_forward(params, last_pos, last_pos_rel, hh, ch,
                    *, seq_start_end, seq_len, matmul_dtype=jnp.bfloat16):
    p = params
    B = last_pos.shape[0]
    H = hh.shape[-1]
    E = p['dec_se_w'].shape[1]
    MID = p['pool_w1'].shape[1]
    BOT = p['pool_w2'].shape[1]
    MLP = p['mlp_w1'].shape[1]
    mm = matmul_dtype

    # --- fold eval-mode BatchNorm into the Linear layers (exact affine) ---
    pw1 = p['pool_w1'] * p['pool_s1'][None, :]
    pb1 = p['pool_b1'] * p['pool_s1'] + p['pool_t1']
    pool_A = p['pool_se_w'] @ pw1[:E]                                  # (2, MID)
    pool_c = (p['pool_se_b'] @ pw1[:E] + pb1).reshape(1, MID)
    pool_w1b = pw1[E:]                                                 # (H, MID)
    pool_w2 = p['pool_w2'] * p['pool_s2'][None, :]
    pool_b2 = (p['pool_b2'] * p['pool_s2'] + p['pool_t2']).reshape(1, BOT)

    m1 = p['mlp_w1'] * p['mlp_s1'][None, :]
    mb1 = (p['mlp_b1'] * p['mlp_s1'] + p['mlp_t1']).reshape(1, MLP)
    m1a, m1b = m1[:H], m1[H:]
    m2 = p['mlp_w2'] * p['mlp_s2'][None, :]
    mb2 = (p['mlp_b2'] * p['mlp_s2'] + p['mlp_t2']).reshape(1, H)

    # --- fold Decoder.spatial_embedding into the LSTM input projection ----
    A_gate = p['dec_se_w'] @ p['lstm_wih']                             # (2, 4H)
    lb = (p['dec_se_b'] @ p['lstm_wih'] + p['lstm_b']).reshape(1, 4 * H)

    # --- pack weights that share h_lstm as LHS along the N axis -----------
    pm = jnp.concatenate([pool_w1b, m1a], axis=1)                      # (H, MID+MLP)

    # --- static same-group mask: row i*B+j == 1 iff peds i, j share a group
    gid = [-1] * B
    for g, (s, e) in enumerate(seq_start_end):
        for k in range(s, e):
            gid[k] = g
    mask = jnp.asarray([[1.0 if gid[i] == gid[j] else 0.0 for j in range(B)]
                        for i in range(B)], dtype=F32).reshape(B * B, 1)

    ins = [
        last_pos, last_pos_rel, hh.reshape(B, H), ch.reshape(B, H), mask,
        A_gate, lb, p['lstm_whh'].astype(mm),
        p['h2p_w'].T, p['h2p_b'].reshape(1, 2),
        pool_A, pool_c, pm.astype(mm), pool_w2.astype(mm), pool_b2,
        m1b.astype(mm), mb1, m2.astype(mm), mb2,
    ]

    pred_packed, h_final = pl.pallas_call(
        _decoder_fused_kernel,
        grid=(1,),
        in_specs=[_full_spec(x.shape) for x in ins],
        out_specs=(_full_spec((B, 2 * seq_len)), _full_spec((B, H))),
        out_shape=(jax.ShapeDtypeStruct((B, 2 * seq_len), F32),
                   jax.ShapeDtypeStruct((B, H), F32)),
        compiler_params=pltpu.CompilerParams(
            dimension_semantics=("arbitrary",)),
    )(*ins)

    # unpack lane-packed predictions: (B, 2*T) -> (T, B, 2)  (tiny XLA op)
    pred = jnp.transpose(pred_packed.reshape(B, seq_len, 2), (1, 0, 2))
    return pred, h_final.reshape(1, B, H)


# ---------------------------------------------------------------------------
# Pure-JAX reference (mirrors the PyTorch Decoder, eval-mode BN)
# ---------------------------------------------------------------------------
def decoder_forward_ref(params, last_pos, last_pos_rel, hh, ch,
                        *, seq_start_end, seq_len):
    p = params
    B = last_pos.shape[0]
    H = hh.shape[-1]
    h = hh.reshape(B, H)
    c = ch.reshape(B, H)

    def bn_relu(x, s, t):
        return jnp.maximum(x * s + t, 0.0)

    dec_in = last_pos_rel @ p['dec_se_w'] + p['dec_se_b']
    preds = []
    for _ in range(seq_len):
        gates = dec_in @ p['lstm_wih'] + h @ p['lstm_whh'] + p['lstm_b']
        i = jax.nn.sigmoid(gates[:, 0:H])
        f = jax.nn.sigmoid(gates[:, H:2 * H])
        g = jnp.tanh(gates[:, 2 * H:3 * H])
        o = jax.nn.sigmoid(gates[:, 3 * H:4 * H])
        c = f * c + i * g
        h_l = o * jnp.tanh(c)

        rel = h_l @ p['h2p_w'] + p['h2p_b']
        cur = rel + last_pos

        chunks = []
        for (s0, e0) in seq_start_end:
            n = e0 - s0
            hid = h_l[s0:e0]
            pos = cur[s0:e0]
            rel_pair = (pos[None, :, :] - pos[:, None, :]).reshape(n * n, 2)
            hid_rep = jnp.tile(hid, (n, 1))
            emb = rel_pair @ p['pool_se_w'] + p['pool_se_b']
            x = jnp.concatenate([emb, hid_rep], axis=1)
            y = bn_relu(x @ p['pool_w1'] + p['pool_b1'], p['pool_s1'], p['pool_t1'])
            z = bn_relu(y @ p['pool_w2'] + p['pool_b2'], p['pool_s2'], p['pool_t2'])
            chunks.append(jnp.max(z.reshape(n, n, -1), axis=1))
        pool_h = jnp.concatenate(chunks, axis=0)

        dh_in = jnp.concatenate([h_l, pool_h], axis=1)
        dh = bn_relu(dh_in @ p['mlp_w1'] + p['mlp_b1'], p['mlp_s1'], p['mlp_t1'])
        h = bn_relu(dh @ p['mlp_w2'] + p['mlp_b2'], p['mlp_s2'], p['mlp_t2'])

        dec_in = rel @ p['dec_se_w'] + p['dec_se_b']
        preds.append(rel)
        last_pos = cur
    return jnp.stack(preds, axis=0), h.reshape(1, B, H)


# ---------------------------------------------------------------------------
# Deterministic parameter initialization (PyTorch-equivalent layout,
# weights stored transposed as (in_features, out_features)).
# ---------------------------------------------------------------------------
def init_params(key, E, H, MLP_DIM, BOT, MID=64):
    ks = iter(jax.random.split(key, 64))

    def w(shape, s=0.1):
        return jax.random.normal(next(ks), shape, F32) * s

    def bn(dim):
        g = 1.0 + 0.1 * jax.random.normal(next(ks), (dim,), F32)
        b = 0.1 * jax.random.normal(next(ks), (dim,), F32)
        m = 0.1 * jax.random.normal(next(ks), (dim,), F32)
        v = 1.0 + 0.1 * jnp.abs(jax.random.normal(next(ks), (dim,), F32))
        scale = g / jnp.sqrt(v + 1e-5)
        shift = b - m * scale
        return scale, shift

    p = {}
    # Decoder.spatial_embedding: Linear(2, E)
    p['dec_se_w'] = w((2, E)); p['dec_se_b'] = w((E,))
    # Decoder.decoder: LSTM(E, H, 1)   (lstm_b = b_ih + b_hh combined)
    p['lstm_wih'] = w((E, 4 * H)); p['lstm_whh'] = w((H, 4 * H))
    p['lstm_b'] = w((4 * H,))
    # Decoder.hidden2pos: Linear(H, 2)
    p['h2p_w'] = w((H, 2)); p['h2p_b'] = w((2,))
    # PoolHiddenNet.spatial_embedding: Linear(2, E)
    p['pool_se_w'] = w((2, E)); p['pool_se_b'] = w((E,))
    # PoolHiddenNet.mlp_pre_pool: [E+H, MID, BOT] + BN + ReLU
    p['pool_w1'] = w((E + H, MID)); p['pool_b1'] = w((MID,))
    p['pool_s1'], p['pool_t1'] = bn(MID)
    p['pool_w2'] = w((MID, BOT)); p['pool_b2'] = w((BOT,))
    p['pool_s2'], p['pool_t2'] = bn(BOT)
    # Decoder.mlp: [H+BOT, MLP_DIM, H] + BN + ReLU
    p['mlp_w1'] = w((H + BOT, MLP_DIM)); p['mlp_b1'] = w((MLP_DIM,))
    p['mlp_s1'], p['mlp_t1'] = bn(MLP_DIM)
    p['mlp_w2'] = w((MLP_DIM, H)); p['mlp_b2'] = w((H,))
    p['mlp_s2'], p['mlp_t2'] = bn(H)
    return p


# ---------------------------------------------------------------------------
if __name__ == "__main__":
    E, H, MLP_DIM, BOT, MID = 16, 32, 64, 32, 64
    SEQ_LEN = 8
    batch = 8
    seq_start_end = ((0, 3), (3, 8))   # two pedestrian groups (sizes 3 and 5)

    key = jax.random.PRNGKey(0)
    kp, kx = jax.random.split(key)
    params = init_params(kp, E, H, MLP_DIM, BOT, MID)

    k1, k2, k3, k4 = jax.random.split(kx, 4)
    last_pos = jax.random.normal(k1, (batch, 2), F32)
    last_pos_rel = 0.1 * jax.random.normal(k2, (batch, 2), F32)
    hh = jax.random.normal(k3, (1, batch, H), F32)
    ch = jax.random.normal(k4, (1, batch, H), F32)

    # pure-JAX mirror of the PyTorch module (f32 everywhere)
    ref_pred, ref_h = decoder_forward_ref(params, last_pos, last_pos_rel, hh, ch,
                                          seq_start_end=seq_start_end,
                                          seq_len=SEQ_LEN)

    # (1) f32-MXU variant: validates the algebraic folds / weight packing exactly
    fwd_f32 = jax.jit(functools.partial(decoder_forward,
                                        seq_start_end=seq_start_end,
                                        seq_len=SEQ_LEN,
                                        matmul_dtype=jnp.float32))
    pred32, h32 = fwd_f32(params, last_pos, last_pos_rel, hh, ch)
    jax.block_until_ready((pred32, h32))
    assert pred32.shape == (SEQ_LEN, batch, 2)
    assert h32.shape == (1, batch, H)
    assert bool(jnp.allclose(pred32, ref_pred, atol=5e-3, rtol=5e-3)), \
        float(jnp.max(jnp.abs(pred32 - ref_pred)))
    assert bool(jnp.allclose(h32, ref_h, atol=5e-3, rtol=5e-3)), \
        float(jnp.max(jnp.abs(h32 - ref_h)))

    # (2) bf16-MXU-operand variant (production config).  Operand quantization
    # to bf16 through an 8-step recurrence warrants a looser tolerance vs the
    # f32 reference; accumulation is still f32.
    fwd_bf16 = jax.jit(functools.partial(decoder_forward,
                                         seq_start_end=seq_start_end,
                                         seq_len=SEQ_LEN,
                                         matmul_dtype=jnp.bfloat16))
    pred16, h16 = fwd_bf16(params, last_pos, last_pos_rel, hh, ch)
    jax.block_until_ready((pred16, h16))
    assert pred16.shape == (SEQ_LEN, batch, 2)
    assert h16.shape == (1, batch, H)
    assert bool(jnp.allclose(pred16, ref_pred, atol=5e-2, rtol=5e-2)), \
        float(jnp.max(jnp.abs(pred16 - ref_pred)))
    assert bool(jnp.allclose(h16, ref_h, atol=5e-2, rtol=5e-2)), \
        float(jnp.max(jnp.abs(h16 - ref_h)))

    print("KERNEL_OK")
</pallas_src>

<mosaic_0001>
module attributes {stable_mosaic.version = 11 : i64} {
  func.func @_decoder_fused_kernel(%arg0: i32, %arg1: memref<8x2xf32, #tpu.memory_space<vmem>>, %arg2: memref<8x2xf32, #tpu.memory_space<vmem>>, %arg3: memref<8x32xf32, #tpu.memory_space<vmem>>, %arg4: memref<8x32xf32, #tpu.memory_space<vmem>>, %arg5: memref<64x1xf32, #tpu.memory_space<vmem>>, %arg6: memref<2x128xf32, #tpu.memory_space<vmem>>, %arg7: memref<1x128xf32, #tpu.memory_space<vmem>>, %arg8: memref<32x128xf32, #tpu.memory_space<vmem>>, %arg9: memref<2x32xf32, #tpu.memory_space<vmem>>, %arg10: memref<1x2xf32, #tpu.memory_space<vmem>>, %arg11: memref<2x64xf32, #tpu.memory_space<vmem>>, %arg12: memref<1x64xf32, #tpu.memory_space<vmem>>, %arg13: memref<32x128xf32, #tpu.memory_space<vmem>>, %arg14: memref<64x32xf32, #tpu.memory_space<vmem>>, %arg15: memref<1x32xf32, #tpu.memory_space<vmem>>, %arg16: memref<32x64xf32, #tpu.memory_space<vmem>>, %arg17: memref<1x64xf32, #tpu.memory_space<vmem>>, %arg18: memref<64x32xf32, #tpu.memory_space<vmem>>, %arg19: memref<1x32xf32, #tpu.memory_space<vmem>>, %arg20: memref<8x16xf32, #tpu.memory_space<vmem>>, %arg21: memref<8x32xf32, #tpu.memory_space<vmem>>) attributes {dimension_semantics = [#tpu.dimension_semantics<arbitrary>], iteration_bounds = array<i64: 1>, scalar_prefetch = 0 : i64, scratch_operands = 0 : i64, tpu.core_type = #tpu.core_type<tc>, window_params = [{pipeline_mode = #tpu.pipeline_mode<synchronous>, transform_indices = @transform_0, window_bounds = array<i64: 8, 2>}, {pipeline_mode = #tpu.pipeline_mode<synchronous>, transform_indices = @transform_1, window_bounds = array<i64: 8, 2>}, {pipeline_mode = #tpu.pipeline_mode<synchronous>, transform_indices = @transform_2, window_bounds = array<i64: 8, 32>}, {pipeline_mode = #tpu.pipeline_mode<synchronous>, transform_indices = @transform_3, window_bounds = array<i64: 8, 32>}, {pipeline_mode = #tpu.pipeline_mode<synchronous>, transform_indices = @transform_4, window_bounds = array<i64: 64, 1>}, {pipeline_mode = #tpu.pipeline_mode<synchronous>, transform_indices = @transform_5, window_bounds = array<i64: 2, 128>}, {pipeline_mode = #tpu.pipeline_mode<synchronous>, transform_indices = @transform_6, window_bounds = array<i64: 1, 128>}, {pipeline_mode = #tpu.pipeline_mode<synchronous>, transform_indices = @transform_7, window_bounds = array<i64: 32, 128>}, {pipeline_mode = #tpu.pipeline_mode<synchronous>, transform_indices = @transform_8, window_bounds = array<i64: 2, 32>}, {pipeline_mode = #tpu.pipeline_mode<synchronous>, transform_indices = @transform_9, window_bounds = array<i64: 1, 2>}, {pipeline_mode = #tpu.pipeline_mode<synchronous>, transform_indices = @transform_10, window_bounds = array<i64: 2, 64>}, {pipeline_mode = #tpu.pipeline_mode<synchronous>, transform_indices = @transform_11, window_bounds = array<i64: 1, 64>}, {pipeline_mode = #tpu.pipeline_mode<synchronous>, transform_indices = @transform_12, window_bounds = array<i64: 32, 128>}, {pipeline_mode = #tpu.pipeline_mode<synchronous>, transform_indices = @transform_13, window_bounds = array<i64: 64, 32>}, {pipeline_mode = #tpu.pipeline_mode<synchronous>, transform_indices = @transform_14, window_bounds = array<i64: 1, 32>}, {pipeline_mode = #tpu.pipeline_mode<synchronous>, transform_indices = @transform_15, window_bounds = array<i64: 32, 64>}, {pipeline_mode = #tpu.pipeline_mode<synchronous>, transform_indices = @transform_16, window_bounds = array<i64: 1, 64>}, {pipeline_mode = #tpu.pipeline_mode<synchronous>, transform_indices = @transform_17, window_bounds = array<i64: 64, 32>}, {pipeline_mode = #tpu.pipeline_mode<synchronous>, transform_indices = @transform_18, window_bounds = array<i64: 1, 32>}, {pipeline_mode = #tpu.pipeline_mode<synchronous>, transform_indices = @transform_19, window_bounds = array<i64: 8, 16>}, {pipeline_mode = #tpu.pipeline_mode<synchronous>, transform_indices = @transform_20, window_bounds = array<i64: 8, 32>}]} {
    %c0 = arith.constant 0 : index
    %c0_0 = arith.constant 0 : index
    %0 = vector.load %arg3[%c0, %c0_0] : memref<8x32xf32, #tpu.memory_space<vmem>>, vector<8x32xf32>
    %c0_1 = arith.constant 0 : index
    %c0_2 = arith.constant 0 : index
    %1 = vector.load %arg4[%c0_1, %c0_2] : memref<8x32xf32, #tpu.memory_space<vmem>>, vector<8x32xf32>
    %c0_3 = arith.constant 0 : index
    %c0_4 = arith.constant 0 : index
    %2 = vector.load %arg1[%c0_3, %c0_4] : memref<8x2xf32, #tpu.memory_space<vmem>>, vector<8x2xf32>
    %3 = vector.extract_strided_slice %2 {offsets = [0, 0], sizes = [8, 1], strides = [1, 1]} : vector<8x2xf32> to vector<8x1xf32>
    %4 = vector.extract_strided_slice %2 {offsets = [0, 1], sizes = [8, 1], strides = [1, 1]} : vector<8x2xf32> to vector<8x1xf32>
    %c0_5 = arith.constant 0 : index
    %c0_6 = arith.constant 0 : index
    %5 = vector.load %arg2[%c0_5, %c0_6] : memref<8x2xf32, #tpu.memory_space<vmem>>, vector<8x2xf32>
    %6 = vector.extract_strided_slice %5 {offsets = [0, 0], sizes = [8, 1], strides = [1, 1]} : vector<8x2xf32> to vector<8x1xf32>
    %7 = vector.extract_strided_slice %5 {offsets = [0, 1], sizes = [8, 1], strides = [1, 1]} : vector<8x2xf32> to vector<8x1xf32>
    %c0_7 = arith.constant 0 : index
    %c0_8 = arith.constant 0 : index
    %8 = vector.load %arg6[%c0_7, %c0_8] : memref<2x128xf32, #tpu.memory_space<vmem>>, vector<1x128xf32>
    %9 = vector.broadcast %6 : vector<8x1xf32> to vector<8x128xf32>
    %10 = vector.broadcast %8 : vector<1x128xf32> to vector<8x128xf32>
    %11 = arith.mulf %9, %10 : vector<8x128xf32>
    %c1 = arith.constant 1 : index
    %c0_9 = arith.constant 0 : index
    %12 = vector.load %arg6[%c1, %c0_9] : memref<2x128xf32, #tpu.memory_space<vmem>>, vector<1x128xf32>
    %13 = vector.broadcast %7 : vector<8x1xf32> to vector<8x128xf32>
    %14 = vector.broadcast %12 : vector<1x128xf32> to vector<8x128xf32>
    %15 = arith.mulf %13, %14 : vector<8x128xf32>
    %16 = arith.addf %11, %15 : vector<8x128xf32>
    %c0_10 = arith.constant 0 : index
    %c0_11 = arith.constant 0 : index
    %17 = vector.load %arg7[%c0_10, %c0_11] : memref<1x128xf32, #tpu.memory_space<vmem>>, vector<1x128xf32>
    %18 = vector.broadcast %17 : vector<1x128xf32> to vector<8x128xf32>
    %19 = arith.addf %16, %18 : vector<8x128xf32>
    %c0_12 = arith.constant 0 : index
    %c0_13 = arith.constant 0 : index
    %20 = vector.load %arg8[%c0_12, %c0_13] : memref<32x128xf32, #tpu.memory_space<vmem>>, vector<32x128xf32>
    %cst = arith.constant dense<0.000000e+00> : vector<8x128xf32>
    %21 = tpu.matmul %0, %20, %cst {dimension_numbers = #tpu.dot_dimension_numbers<[1], [0], [0], [1], [0, 0, 1, 1], [], []>} : vector<8x32xf32>, vector<32x128xf32>, vector<8x128xf32> -> vector<8x128xf32>
    %22 = arith.addf %19, %21 : vector<8x128xf32>
    %23 = arith.negf %22 : vector<8x128xf32>
    %24 = math.exp %23 : vector<8x128xf32>
    %cst_14 = arith.constant 1.000000e+00 : f32
    %25 = vector.broadcast %cst_14 : f32 to vector<8x128xf32>
    %26 = arith.addf %25, %24 : vector<8x128xf32>
    %27 = arith.divf %25, %26 : vector<8x128xf32>
    %28 = vector.extract_strided_slice %22 {offsets = [0, 64], sizes = [8, 32], strides = [1, 1]} : vector<8x128xf32> to vector<8x32xf32>
    %29 = math.tanh %28 : vector<8x32xf32>
    %30 = vector.extract_strided_slice %27 {offsets = [0, 32], sizes = [8, 32], strides = [1, 1]} : vector<8x128xf32> to vector<8x32xf32>
    %31 = arith.mulf %30, %1 : vector<8x32xf32>
    %32 = vector.extract_strided_slice %27 {offsets = [0, 0], sizes = [8, 32], strides = [1, 1]} : vector<8x128xf32> to vector<8x32xf32>
    %33 = arith.mulf %32, %29 : vector<8x32xf32>
    %34 = arith.addf %31, %33 : vector<8x32xf32>
    %35 = vector.extract_strided_slice %27 {offsets = [0, 96], sizes = [8, 32], strides = [1, 1]} : vector<8x128xf32> to vector<8x32xf32>
    %36 = math.tanh %34 : vector<8x32xf32>
    %37 = arith.mulf %35, %36 : vector<8x32xf32>
    %c0_15 = arith.constant 0 : index
    %c0_16 = arith.constant 0 : index
    %38 = vector.load %arg13[%c0_15, %c0_16] : memref<32x128xf32, #tpu.memory_space<vmem>>, vector<32x128xf32>
    %cst_17 = arith.constant dense<0.000000e+00> : vector<8x128xf32>
    %39 = tpu.matmul %37, %38, %cst_17 {dimension_numbers = #tpu.dot_dimension_numbers<[1], [0], [0], [1], [0, 0, 1, 1], [], []>} : vector<8x32xf32>, vector<32x128xf32>, vector<8x128xf32> -> vector<8x128xf32>
    %40 = vector.extract_strided_slice %39 {offsets = [0, 0], sizes = [8, 64], strides = [1, 1]} : vector<8x128xf32> to vector<8x64xf32>
    %41 = vector.extract_strided_slice %39 {offsets = [0, 64], sizes = [8, 64], strides = [1, 1]} : vector<8x128xf32> to vector<8x64xf32>
    %c0_18 = arith.constant 0 : index
    %c0_19 = arith.constant 0 : index
    %42 = vector.load %arg9[%c0_18, %c0_19] : memref<2x32xf32, #tpu.memory_space<vmem>>, vector<1x32xf32>
    %43 = vector.broadcast %42 : vector<1x32xf32> to vector<8x32xf32>
    %44 = arith.mulf %37, %43 : vector<8x32xf32>
    %cst_20 = arith.constant dense<0.000000e+00> : vector<8xf32>
    %45 = vector.multi_reduction <add>, %44, %cst_20 [1] : vector<8x32xf32> to vector<8xf32>
    %46 = vector.shape_cast %45 : vector<8xf32> to vector<8x1xf32>
    %c0_21 = arith.constant 0 : index
    %c0_22 = arith.constant 0 : index
    %47 = vector.load %arg10[%c0_21, %c0_22] : memref<1x2xf32, #tpu.memory_space<vmem>>, vector<1x1xf32>
    %48 = vector.broadcast %47 : vector<1x1xf32> to vector<8x1xf32>
    %49 = arith.addf %46, %48 : vector<8x1xf32>
    %c1_23 = arith.constant 1 : index
    %c0_24 = arith.constant 0 : index
    %50 = vector.load %arg9[%c1_23, %c0_24] : memref<2x32xf32, #tpu.memory_space<vmem>>, vector<1x32xf32>
    %51 = vector.broadcast %50 : vector<1x32xf32> to vector<8x32xf32>
    %52 = arith.mulf %37, %51 : vector<8x32xf32>
    %cst_25 = arith.constant dense<0.000000e+00> : vector<8xf32>
    %53 = vector.multi_reduction <add>, %52, %cst_25 [1] : vector<8x32xf32> to vector<8xf32>
    %54 = vector.shape_cast %53 : vector<8xf32> to vector<8x1xf32>
    %c0_26 = arith.constant 0 : index
    %c1_27 = arith.constant 1 : index
    %55 = vector.load %arg10[%c0_26, %c1_27] : memref<1x2xf32, #tpu.memory_space<vmem>>, vector<1x1xf32>
    %56 = vector.broadcast %55 : vector<1x1xf32> to vector<8x1xf32>
    %57 = arith.addf %54, %56 : vector<8x1xf32>
    %58 = arith.addf %3, %49 : vector<8x1xf32>
    %59 = arith.addf %4, %57 : vector<8x1xf32>
    %c0_28 = arith.constant 0 : index
    %c0_29 = arith.constant 0 : index
    %60 = vector.load %arg11[%c0_28, %c0_29] : memref<2x64xf32, #tpu.memory_space<vmem>>, vector<1x64xf32>
    %61 = vector.broadcast %58 : vector<8x1xf32> to vector<8x64xf32>
    %62 = vector.broadcast %60 : vector<1x64xf32> to vector<8x64xf32>
    %63 = arith.mulf %61, %62 : vector<8x64xf32>
    %c1_30 = arith.constant 1 : index
    %c0_31 = arith.constant 0 : index
    %64 = vector.load %arg11[%c1_30, %c0_31] : memref<2x64xf32, #tpu.memory_space<vmem>>, vector<1x64xf32>
    %65 = vector.broadcast %59 : vector<8x1xf32> to vector<8x64xf32>
    %66 = vector.broadcast %64 : vector<1x64xf32> to vector<8x64xf32>
    %67 = arith.mulf %65, %66 : vector<8x64xf32>
    %68 = arith.addf %63, %67 : vector<8x64xf32>
    %69 = arith.addf %68, %40 : vector<8x64xf32>
    %c0_32 = arith.constant 0 : index
    %c0_33 = arith.constant 0 : index
    %70 = vector.load %arg12[%c0_32, %c0_33] : memref<1x64xf32, #tpu.memory_space<vmem>>, vector<1x64xf32>
    %71 = vector.broadcast %70 : vector<1x64xf32> to vector<8x64xf32>
    %72 = arith.addf %69, %71 : vector<8x64xf32>
    %73 = vector.shape_cast %72 : vector<8x64xf32> to vector<1x8x64xf32>
    %74 = vector.shape_cast %68 : vector<8x64xf32> to vector<8x1x64xf32>
    %75 = vector.broadcast %73 : vector<1x8x64xf32> to vector<8x8x64xf32>
    %76 = vector.broadcast %74 : vector<8x1x64xf32> to vector<8x8x64xf32>
    %77 = arith.subf %75, %76 : vector<8x8x64xf32>
    %cst_34 = arith.constant 0.000000e+00 : f32
    %78 = vector.broadcast %cst_34 : f32 to vector<8x8x64xf32>
    %79 = arith.maximumf %77, %78 : vector<8x8x64xf32>
    %80 = vector.shape_cast %79 : vector<8x8x64xf32> to vector<64x64xf32>
    %c0_35 = arith.constant 0 : index
    %c0_36 = arith.constant 0 : index
    %81 = vector.load %arg14[%c0_35, %c0_36] : memref<64x32xf32, #tpu.memory_space<vmem>>, vector<64x32xf32>
    %cst_37 = arith.constant dense<0.000000e+00> : vector<64x32xf32>
    %82 = tpu.matmul %80, %81, %cst_37 {dimension_numbers = #tpu.dot_dimension_numbers<[1], [0], [0], [1], [0, 0, 1, 1], [], []>} : vector<64x64xf32>, vector<64x32xf32>, vector<64x32xf32> -> vector<64x32xf32>
    %c0_38 = arith.constant 0 : index
    %c0_39 = arith.constant 0 : index
    %83 = vector.load %arg15[%c0_38, %c0_39] : memref<1x32xf32, #tpu.memory_space<vmem>>, vector<1x32xf32>
    %84 = vector.broadcast %83 : vector<1x32xf32> to vector<64x32xf32>
    %85 = arith.addf %82, %84 : vector<64x32xf32>
    %cst_40 = arith.constant 0.000000e+00 : f32
    %86 = vector.broadcast %cst_40 : f32 to vector<64x32xf32>
    %87 = arith.maximumf %85, %86 : vector<64x32xf32>
    %c0_41 = arith.constant 0 : index
    %c0_42 = arith.constant 0 : index
    %88 = vector.load %arg5[%c0_41, %c0_42] : memref<64x1xf32, #tpu.memory_space<vmem>>, vector<64x1xf32>
    %89 = vector.broadcast %88 : vector<64x1xf32> to vector<64x32xf32>
    %90 = arith.mulf %87, %89 : vector<64x32xf32>
    %91 = vector.shape_cast %90 : vector<64x32xf32> to vector<8x8x32xf32>
    %cst_43 = arith.constant dense<0xFF800000> : vector<8x32xf32>
    %92 = vector.multi_reduction <maximumf>, %91, %cst_43 [1] : vector<8x8x32xf32> to vector<8x32xf32>
    %c0_44 = arith.constant 0 : index
    %c0_45 = arith.constant 0 : index
    %93 = vector.load %arg16[%c0_44, %c0_45] : memref<32x64xf32, #tpu.memory_space<vmem>>, vector<32x64xf32>
    %cst_46 = arith.constant dense<0.000000e+00> : vector<8x64xf32>
    %94 = tpu.matmul %92, %93, %cst_46 {dimension_numbers = #tpu.dot_dimension_numbers<[1], [0], [0], [1], [0, 0, 1, 1], [], []>} : vector<8x32xf32>, vector<32x64xf32>, vector<8x64xf32> -> vector<8x64xf32>
    %95 = arith.addf %41, %94 : vector<8x64xf32>
    %c0_47 = arith.constant 0 : index
    %c0_48 = arith.constant 0 : index
    %96 = vector.load %arg17[%c0_47, %c0_48] : memref<1x64xf32, #tpu.memory_space<vmem>>, vector<1x64xf32>
    %97 = vector.broadcast %96 : vector<1x64xf32> to vector<8x64xf32>
    %98 = arith.addf %95, %97 : vector<8x64xf32>
    %cst_49 = arith.constant 0.000000e+00 : f32
    %99 = vector.broadcast %cst_49 : f32 to vector<8x64xf32>
    %100 = arith.maximumf %98, %99 : vector<8x64xf32>
    %c0_50 = arith.constant 0 : index
    %c0_51 = arith.constant 0 : index
    %101 = vector.load %arg18[%c0_50, %c0_51] : memref<64x32xf32, #tpu.memory_space<vmem>>, vector<64x32xf32>
    %cst_52 = arith.constant dense<0.000000e+00> : vector<8x32xf32>
    %102 = tpu.matmul %100, %101, %cst_52 {dimension_numbers = #tpu.dot_dimension_numbers<[1], [0], [0], [1], [0, 0, 1, 1], [], []>} : vector<8x64xf32>, vector<64x32xf32>, vector<8x32xf32> -> vector<8x32xf32>
    %c0_53 = arith.constant 0 : index
    %c0_54 = arith.constant 0 : index
    %103 = vector.load %arg19[%c0_53, %c0_54] : memref<1x32xf32, #tpu.memory_space<vmem>>, vector<1x32xf32>
    %104 = vector.broadcast %103 : vector<1x32xf32> to vector<8x32xf32>
    %105 = arith.addf %102, %104 : vector<8x32xf32>
    %cst_55 = arith.constant 0.000000e+00 : f32
    %106 = vector.broadcast %cst_55 : f32 to vector<8x32xf32>
    %107 = arith.maximumf %105, %106 : vector<8x32xf32>
    %c0_56 = arith.constant 0 : index
    %c0_57 = arith.constant 0 : index
    %108 = vector.load %arg6[%c0_56, %c0_57] : memref<2x128xf32, #tpu.memory_space<vmem>>, vector<1x128xf32>
    %109 = vector.broadcast %49 : vector<8x1xf32> to vector<8x128xf32>
    %110 = vector.broadcast %108 : vector<1x128xf32> to vector<8x128xf32>
    %111 = arith.mulf %109, %110 : vector<8x128xf32>
    %c1_58 = arith.constant 1 : index
    %c0_59 = arith.constant 0 : index
    %112 = vector.load %arg6[%c1_58, %c0_59] : memref<2x128xf32, #tpu.memory_space<vmem>>, vector<1x128xf32>
    %113 = vector.broadcast %57 : vector<8x1xf32> to vector<8x128xf32>
    %114 = vector.broadcast %112 : vector<1x128xf32> to vector<8x128xf32>
    %115 = arith.mulf %113, %114 : vector<8x128xf32>
    %116 = arith.addf %111, %115 : vector<8x128xf32>
    %c0_60 = arith.constant 0 : index
    %c0_61 = arith.constant 0 : index
    %117 = vector.load %arg7[%c0_60, %c0_61] : memref<1x128xf32, #tpu.memory_space<vmem>>, vector<1x128xf32>
    %118 = vector.broadcast %117 : vector<1x128xf32> to vector<8x128xf32>
    %119 = arith.addf %116, %118 : vector<8x128xf32>
    %c0_62 = arith.constant 0 : index
    %c0_63 = arith.constant 0 : index
    %120 = vector.load %arg8[%c0_62, %c0_63] : memref<32x128xf32, #tpu.memory_space<vmem>>, vector<32x128xf32>
    %cst_64 = arith.constant dense<0.000000e+00> : vector<8x128xf32>
    %121 = tpu.matmul %107, %120, %cst_64 {dimension_numbers = #tpu.dot_dimension_numbers<[1], [0], [0], [1], [0, 0, 1, 1], [], []>} : vector<8x32xf32>, vector<32x128xf32>, vector<8x128xf32> -> vector<8x128xf32>
    %122 = arith.addf %119, %121 : vector<8x128xf32>
    %123 = arith.negf %122 : vector<8x128xf32>
    %124 = math.exp %123 : vector<8x128xf32>
    %cst_65 = arith.constant 1.000000e+00 : f32
    %125 = vector.broadcast %cst_65 : f32 to vector<8x128xf32>
    %126 = arith.addf %125, %124 : vector<8x128xf32>
    %127 = arith.divf %125, %126 : vector<8x128xf32>
    %128 = vector.extract_strided_slice %122 {offsets = [0, 64], sizes = [8, 32], strides = [1, 1]} : vector<8x128xf32> to vector<8x32xf32>
    %129 = math.tanh %128 : vector<8x32xf32>
    %130 = vector.extract_strided_slice %127 {offsets = [0, 32], sizes = [8, 32], strides = [1, 1]} : vector<8x128xf32> to vector<8x32xf32>
    %131 = arith.mulf %130, %34 : vector<8x32xf32>
    %132 = vector.extract_strided_slice %127 {offsets = [0, 0], sizes = [8, 32], strides = [1, 1]} : vector<8x128xf32> to vector<8x32xf32>
    %133 = arith.mulf %132, %129 : vector<8x32xf32>
    %134 = arith.addf %131, %133 : vector<8x32xf32>
    %135 = vector.extract_strided_slice %127 {offsets = [0, 96], sizes = [8, 32], strides = [1, 1]} : vector<8x128xf32> to vector<8x32xf32>
    %136 = math.tanh %134 : vector<8x32xf32>
    %137 = arith.mulf %135, %136 : vector<8x32xf32>
    %c0_66 = arith.constant 0 : index
    %c0_67 = arith.constant 0 : index
    %138 = vector.load %arg13[%c0_66, %c0_67] : memref<32x128xf32, #tpu.memory_space<vmem>>, vector<32x128xf32>
    %cst_68 = arith.constant dense<0.000000e+00> : vector<8x128xf32>
    %139 = tpu.matmul %137, %138, %cst_68 {dimension_numbers = #tpu.dot_dimension_numbers<[1], [0], [0], [1], [0, 0, 1, 1], [], []>} : vector<8x32xf32>, vector<32x128xf32>, vector<8x128xf32> -> vector<8x128xf32>
    %140 = vector.extract_strided_slice %139 {offsets = [0, 0], sizes = [8, 64], strides = [1, 1]} : vector<8x128xf32> to vector<8x64xf32>
    %141 = vector.extract_strided_slice %139 {offsets = [0, 64], sizes = [8, 64], strides = [1, 1]} : vector<8x128xf32> to vector<8x64xf32>
    %c0_69 = arith.constant 0 : index
    %c0_70 = arith.constant 0 : index
    %142 = vector.load %arg9[%c0_69, %c0_70] : memref<2x32xf32, #tpu.memory_space<vmem>>, vector<1x32xf32>
    %143 = vector.broadcast %142 : vector<1x32xf32> to vector<8x32xf32>
    %144 = arith.mulf %137, %143 : vector<8x32xf32>
    %cst_71 = arith.constant dense<0.000000e+00> : vector<8xf32>
    %145 = vector.multi_reduction <add>, %144, %cst_71 [1] : vector<8x32xf32> to vector<8xf32>
    %146 = vector.shape_cast %145 : vector<8xf32> to vector<8x1xf32>
    %c0_72 = arith.constant 0 : index
    %c0_73 = arith.constant 0 : index
    %147 = vector.load %arg10[%c0_72, %c0_73] : memref<1x2xf32, #tpu.memory_space<vmem>>, vector<1x1xf32>
    %148 = vector.broadcast %147 : vector<1x1xf32> to vector<8x1xf32>
    %149 = arith.addf %146, %148 : vector<8x1xf32>
    %c1_74 = arith.constant 1 : index
    %c0_75 = arith.constant 0 : index
    %150 = vector.load %arg9[%c1_74, %c0_75] : memref<2x32xf32, #tpu.memory_space<vmem>>, vector<1x32xf32>
    %151 = vector.broadcast %150 : vector<1x32xf32> to vector<8x32xf32>
    %152 = arith.mulf %137, %151 : vector<8x32xf32>
    %cst_76 = arith.constant dense<0.000000e+00> : vector<8xf32>
    %153 = vector.multi_reduction <add>, %152, %cst_76 [1] : vector<8x32xf32> to vector<8xf32>
    %154 = vector.shape_cast %153 : vector<8xf32> to vector<8x1xf32>
    %c0_77 = arith.constant 0 : index
    %c1_78 = arith.constant 1 : index
    %155 = vector.load %arg10[%c0_77, %c1_78] : memref<1x2xf32, #tpu.memory_space<vmem>>, vector<1x1xf32>
    %156 = vector.broadcast %155 : vector<1x1xf32> to vector<8x1xf32>
    %157 = arith.addf %154, %156 : vector<8x1xf32>
    %158 = arith.addf %58, %149 : vector<8x1xf32>
    %159 = arith.addf %59, %157 : vector<8x1xf32>
    %c0_79 = arith.constant 0 : index
    %c0_80 = arith.constant 0 : index
    %160 = vector.load %arg11[%c0_79, %c0_80] : memref<2x64xf32, #tpu.memory_space<vmem>>, vector<1x64xf32>
    %161 = vector.broadcast %158 : vector<8x1xf32> to vector<8x64xf32>
    %162 = vector.broadcast %160 : vector<1x64xf32> to vector<8x64xf32>
    %163 = arith.mulf %161, %162 : vector<8x64xf32>
    %c1_81 = arith.constant 1 : index
    %c0_82 = arith.constant 0 : index
    %164 = vector.load %arg11[%c1_81, %c0_82] : memref<2x64xf32, #tpu.memory_space<vmem>>, vector<1x64xf32>
    %165 = vector.broadcast %159 : vector<8x1xf32> to vector<8x64xf32>
    %166 = vector.broadcast %164 : vector<1x64xf32> to vector<8x64xf32>
    %167 = arith.mulf %165, %166 : vector<8x64xf32>
    %168 = arith.addf %163, %167 : vector<8x64xf32>
    %169 = arith.addf %168, %140 : vector<8x64xf32>
    %c0_83 = arith.constant 0 : index
    %c0_84 = arith.constant 0 : index
    %170 = vector.load %arg12[%c0_83, %c0_84] : memref<1x64xf32, #tpu.memory_space<vmem>>, vector<1x64xf32>
    %171 = vector.broadcast %170 : vector<1x64xf32> to vector<8x64xf32>
    %172 = arith.addf %169, %171 : vector<8x64xf32>
    %173 = vector.shape_cast %172 : vector<8x64xf32> to vector<1x8x64xf32>
    %174 = vector.shape_cast %168 : vector<8x64xf32> to vector<8x1x64xf32>
    %175 = vector.broadcast %173 : vector<1x8x64xf32> to vector<8x8x64xf32>
    %176 = vector.broadcast %174 : vector<8x1x64xf32> to vector<8x8x64xf32>
    %177 = arith.subf %175, %176 : vector<8x8x64xf32>
    %cst_85 = arith.constant 0.000000e+00 : f32
    %178 = vector.broadcast %cst_85 : f32 to vector<8x8x64xf32>
    %179 = arith.maximumf %177, %178 : vector<8x8x64xf32>
    %180 = vector.shape_cast %179 : vector<8x8x64xf32> to vector<64x64xf32>
    %c0_86 = arith.constant 0 : index
    %c0_87 = arith.constant 0 : index
    %181 = vector.load %arg14[%c0_86, %c0_87] : memref<64x32xf32, #tpu.memory_space<vmem>>, vector<64x32xf32>
    %cst_88 = arith.constant dense<0.000000e+00> : vector<64x32xf32>
    %182 = tpu.matmul %180, %181, %cst_88 {dimension_numbers = #tpu.dot_dimension_numbers<[1], [0], [0], [1], [0, 0, 1, 1], [], []>} : vector<64x64xf32>, vector<64x32xf32>, vector<64x32xf32> -> vector<64x32xf32>
    %c0_89 = arith.constant 0 : index
    %c0_90 = arith.constant 0 : index
    %183 = vector.load %arg15[%c0_89, %c0_90] : memref<1x32xf32, #tpu.memory_space<vmem>>, vector<1x32xf32>
    %184 = vector.broadcast %183 : vector<1x32xf32> to vector<64x32xf32>
    %185 = arith.addf %182, %184 : vector<64x32xf32>
    %cst_91 = arith.constant 0.000000e+00 : f32
    %186 = vector.broadcast %cst_91 : f32 to vector<64x32xf32>
    %187 = arith.maximumf %185, %186 : vector<64x32xf32>
    %c0_92 = arith.constant 0 : index
    %c0_93 = arith.constant 0 : index
    %188 = vector.load %arg5[%c0_92, %c0_93] : memref<64x1xf32, #tpu.memory_space<vmem>>, vector<64x1xf32>
    %189 = vector.broadcast %188 : vector<64x1xf32> to vector<64x32xf32>
    %190 = arith.mulf %187, %189 : vector<64x32xf32>
    %191 = vector.shape_cast %190 : vector<64x32xf32> to vector<8x8x32xf32>
    %cst_94 = arith.constant dense<0xFF800000> : vector<8x32xf32>
    %192 = vector.multi_reduction <maximumf>, %191, %cst_94 [1] : vector<8x8x32xf32> to vector<8x32xf32>
    %c0_95 = arith.constant 0 : index
    %c0_96 = arith.constant 0 : index
    %193 = vector.load %arg16[%c0_95, %c0_96] : memref<32x64xf32, #tpu.memory_space<vmem>>, vector<32x64xf32>
    %cst_97 = arith.constant dense<0.000000e+00> : vector<8x64xf32>
    %194 = tpu.matmul %192, %193, %cst_97 {dimension_numbers = #tpu.dot_dimension_numbers<[1], [0], [0], [1], [0, 0, 1, 1], [], []>} : vector<8x32xf32>, vector<32x64xf32>, vector<8x64xf32> -> vector<8x64xf32>
    %195 = arith.addf %141, %194 : vector<8x64xf32>
    %c0_98 = arith.constant 0 : index
    %c0_99 = arith.constant 0 : index
    %196 = vector.load %arg17[%c0_98, %c0_99] : memref<1x64xf32, #tpu.memory_space<vmem>>, vector<1x64xf32>
    %197 = vector.broadcast %196 : vector<1x64xf32> to vector<8x64xf32>
    %198 = arith.addf %195, %197 : vector<8x64xf32>
    %cst_100 = arith.constant 0.000000e+00 : f32
    %199 = vector.broadcast %cst_100 : f32 to vector<8x64xf32>
    %200 = arith.maximumf %198, %199 : vector<8x64xf32>
    %c0_101 = arith.constant 0 : index
    %c0_102 = arith.constant 0 : index
    %201 = vector.load %arg18[%c0_101, %c0_102] : memref<64x32xf32, #tpu.memory_space<vmem>>, vector<64x32xf32>
    %cst_103 = arith.constant dense<0.000000e+00> : vector<8x32xf32>
    %202 = tpu.matmul %200, %201, %cst_103 {dimension_numbers = #tpu.dot_dimension_numbers<[1], [0], [0], [1], [0, 0, 1, 1], [], []>} : vector<8x64xf32>, vector<64x32xf32>, vector<8x32xf32> -> vector<8x32xf32>
    %c0_104 = arith.constant 0 : index
    %c0_105 = arith.constant 0 : index
    %203 = vector.load %arg19[%c0_104, %c0_105] : memref<1x32xf32, #tpu.memory_space<vmem>>, vector<1x32xf32>
    %204 = vector.broadcast %203 : vector<1x32xf32> to vector<8x32xf32>
    %205 = arith.addf %202, %204 : vector<8x32xf32>
    %cst_106 = arith.constant 0.000000e+00 : f32
    %206 = vector.broadcast %cst_106 : f32 to vector<8x32xf32>
    %207 = arith.maximumf %205, %206 : vector<8x32xf32>
    %c0_107 = arith.constant 0 : index
    %c0_108 = arith.constant 0 : index
    %208 = vector.load %arg6[%c0_107, %c0_108] : memref<2x128xf32, #tpu.memory_space<vmem>>, vector<1x128xf32>
    %209 = vector.broadcast %149 : vector<8x1xf32> to vector<8x128xf32>
    %210 = vector.broadcast %208 : vector<1x128xf32> to vector<8x128xf32>
    %211 = arith.mulf %209, %210 : vector<8x128xf32>
    %c1_109 = arith.constant 1 : index
    %c0_110 = arith.constant 0 : index
    %212 = vector.load %arg6[%c1_109, %c0_110] : memref<2x128xf32, #tpu.memory_space<vmem>>, vector<1x128xf32>
    %213 = vector.broadcast %157 : vector<8x1xf32> to vector<8x128xf32>
    %214 = vector.broadcast %212 : vector<1x128xf32> to vector<8x128xf32>
    %215 = arith.mulf %213, %214 : vector<8x128xf32>
    %216 = arith.addf %211, %215 : vector<8x128xf32>
    %c0_111 = arith.constant 0 : index
    %c0_112 = arith.constant 0 : index
    %217 = vector.load %arg7[%c0_111, %c0_112] : memref<1x128xf32, #tpu.memory_space<vmem>>, vector<1x128xf32>
    %218 = vector.broadcast %217 : vector<1x128xf32> to vector<8x128xf32>
    %219 = arith.addf %216, %218 : vector<8x128xf32>
    %c0_113 = arith.constant 0 : index
    %c0_114 = arith.constant 0 : index
    %220 = vector.load %arg8[%c0_113, %c0_114] : memref<32x128xf32, #tpu.memory_space<vmem>>, vector<32x128xf32>
    %cst_115 = arith.constant dense<0.000000e+00> : vector<8x128xf32>
    %221 = tpu.matmul %207, %220, %cst_115 {dimension_numbers = #tpu.dot_dimension_numbers<[1], [0], [0], [1], [0, 0, 1, 1], [], []>} : vector<8x32xf32>, vector<32x128xf32>, vector<8x128xf32> -> vector<8x128xf32>
    %222 = arith.addf %219, %221 : vector<8x128xf32>
    %223 = arith.negf %222 : vector<8x128xf32>
    %224 = math.exp %223 : vector<8x128xf32>
    %cst_116 = arith.constant 1.000000e+00 : f32
    %225 = vector.broadcast %cst_116 : f32 to vector<8x128xf32>
    %226 = arith.addf %225, %224 : vector<8x128xf32>
    %227 = arith.divf %225, %226 : vector<8x128xf32>
    %228 = vector.extract_strided_slice %222 {offsets = [0, 64], sizes = [8, 32], strides = [1, 1]} : vector<8x128xf32> to vector<8x32xf32>
    %229 = math.tanh %228 : vector<8x32xf32>
    %230 = vector.extract_strided_slice %227 {offsets = [0, 32], sizes = [8, 32], strides = [1, 1]} : vector<8x128xf32> to vector<8x32xf32>
    %231 = arith.mulf %230, %134 : vector<8x32xf32>
    %232 = vector.extract_strided_slice %227 {offsets = [0, 0], sizes = [8, 32], strides = [1, 1]} : vector<8x128xf32> to vector<8x32xf32>
    %233 = arith.mulf %232, %229 : vector<8x32xf32>
    %234 = arith.addf %231, %233 : vector<8x32xf32>
    %235 = vector.extract_strided_slice %227 {offsets = [0, 96], sizes = [8, 32], strides = [1, 1]} : vector<8x128xf32> to vector<8x32xf32>
    %236 = math.tanh %234 : vector<8x32xf32>
    %237 = arith.mulf %235, %236 : vector<8x32xf32>
    %c0_117 = arith.constant 0 : index
    %c0_118 = arith.constant 0 : index
    %238 = vector.load %arg13[%c0_117, %c0_118] : memref<32x128xf32, #tpu.memory_space<vmem>>, vector<32x128xf32>
    %cst_119 = arith.constant dense<0.000000e+00> : vector<8x128xf32>
    %239 = tpu.matmul %237, %238, %cst_119 {dimension_numbers = #tpu.dot_dimension_numbers<[1], [0], [0], [1], [0, 0, 1, 1], [], []>} : vector<8x32xf32>, vector<32x128xf32>, vector<8x128xf32> -> vector<8x128xf32>
    %240 = vector.extract_strided_slice %239 {offsets = [0, 0], sizes = [8, 64], strides = [1, 1]} : vector<8x128xf32> to vector<8x64xf32>
    %241 = vector.extract_strided_slice %239 {offsets = [0, 64], sizes = [8, 64], strides = [1, 1]} : vector<8x128xf32> to vector<8x64xf32>
    %c0_120 = arith.constant 0 : index
    %c0_121 = arith.constant 0 : index
    %242 = vector.load %arg9[%c0_120, %c0_121] : memref<2x32xf32, #tpu.memory_space<vmem>>, vector<1x32xf32>
    %243 = vector.broadcast %242 : vector<1x32xf32> to vector<8x32xf32>
    %244 = arith.mulf %237, %243 : vector<8x32xf32>
    %cst_122 = arith.constant dense<0.000000e+00> : vector<8xf32>
    %245 = vector.multi_reduction <add>, %244, %cst_122 [1] : vector<8x32xf32> to vector<8xf32>
    %246 = vector.shape_cast %245 : vector<8xf32> to vector<8x1xf32>
    %c0_123 = arith.constant 0 : index
    %c0_124 = arith.constant 0 : index
    %247 = vector.load %arg10[%c0_123, %c0_124] : memref<1x2xf32, #tpu.memory_space<vmem>>, vector<1x1xf32>
    %248 = vector.broadcast %247 : vector<1x1xf32> to vector<8x1xf32>
    %249 = arith.addf %246, %248 : vector<8x1xf32>
    %c1_125 = arith.constant 1 : index
    %c0_126 = arith.constant 0 : index
    %250 = vector.load %arg9[%c1_125, %c0_126] : memref<2x32xf32, #tpu.memory_space<vmem>>, vector<1x32xf32>
    %251 = vector.broadcast %250 : vector<1x32xf32> to vector<8x32xf32>
    %252 = arith.mulf %237, %251 : vector<8x32xf32>
    %cst_127 = arith.constant dense<0.000000e+00> : vector<8xf32>
    %253 = vector.multi_reduction <add>, %252, %cst_127 [1] : vector<8x32xf32> to vector<8xf32>
    %254 = vector.shape_cast %253 : vector<8xf32> to vector<8x1xf32>
    %c0_128 = arith.constant 0 : index
    %c1_129 = arith.constant 1 : index
    %255 = vector.load %arg10[%c0_128, %c1_129] : memref<1x2xf32, #tpu.memory_space<vmem>>, vector<1x1xf32>
    %256 = vector.broadcast %255 : vector<1x1xf32> to vector<8x1xf32>
    %257 = arith.addf %254, %256 : vector<8x1xf32>
    %258 = arith.addf %158, %249 : vector<8x1xf32>
    %259 = arith.addf %159, %257 : vector<8x1xf32>
    %c0_130 = arith.constant 0 : index
    %c0_131 = arith.constant 0 : index
    %260 = vector.load %arg11[%c0_130, %c0_131] : memref<2x64xf32, #tpu.memory_space<vmem>>, vector<1x64xf32>
    %261 = vector.broadcast %258 : vector<8x1xf32> to vector<8x64xf32>
    %262 = vector.broadcast %260 : vector<1x64xf32> to vector<8x64xf32>
    %263 = arith.mulf %261, %262 : vector<8x64xf32>
    %c1_132 = arith.constant 1 : index
    %c0_133 = arith.constant 0 : index
    %264 = vector.load %arg11[%c1_132, %c0_133] : memref<2x64xf32, #tpu.memory_space<vmem>>, vector<1x64xf32>
    %265 = vector.broadcast %259 : vector<8x1xf32> to vector<8x64xf32>
    %266 = vector.broadcast %264 : vector<1x64xf32> to vector<8x64xf32>
    %267 = arith.mulf %265, %266 : vector<8x64xf32>
    %268 = arith.addf %263, %267 : vector<8x64xf32>
    %269 = arith.addf %268, %240 : vector<8x64xf32>
    %c0_134 = arith.constant 0 : index
    %c0_135 = arith.constant 0 : index
    %270 = vector.load %arg12[%c0_134, %c0_135] : memref<1x64xf32, #tpu.memory_space<vmem>>, vector<1x64xf32>
    %271 = vector.broadcast %270 : vector<1x64xf32> to vector<8x64xf32>
    %272 = arith.addf %269, %271 : vector<8x64xf32>
    %273 = vector.shape_cast %272 : vector<8x64xf32> to vector<1x8x64xf32>
    %274 = vector.shape_cast %268 : vector<8x64xf32> to vector<8x1x64xf32>
    %275 = vector.broadcast %273 : vector<1x8x64xf32> to vector<8x8x64xf32>
    %276 = vector.broadcast %274 : vector<8x1x64xf32> to vector<8x8x64xf32>
    %277 = arith.subf %275, %276 : vector<8x8x64xf32>
    %cst_136 = arith.constant 0.000000e+00 : f32
    %278 = vector.broadcast %cst_136 : f32 to vector<8x8x64xf32>
    %279 = arith.maximumf %277, %278 : vector<8x8x64xf32>
    %280 = vector.shape_cast %279 : vector<8x8x64xf32> to vector<64x64xf32>
    %c0_137 = arith.constant 0 : index
    %c0_138 = arith.constant 0 : index
    %281 = vector.load %arg14[%c0_137, %c0_138] : memref<64x32xf32, #tpu.memory_space<vmem>>, vector<64x32xf32>
    %cst_139 = arith.constant dense<0.000000e+00> : vector<64x32xf32>
    %282 = tpu.matmul %280, %281, %cst_139 {dimension_numbers = #tpu.dot_dimension_numbers<[1], [0], [0], [1], [0, 0, 1, 1], [], []>} : vector<64x64xf32>, vector<64x32xf32>, vector<64x32xf32> -> vector<64x32xf32>
    %c0_140 = arith.constant 0 : index
    %c0_141 = arith.constant 0 : index
    %283 = vector.load %arg15[%c0_140, %c0_141] : memref<1x32xf32, #tpu.memory_space<vmem>>, vector<1x32xf32>
    %284 = vector.broadcast %283 : vector<1x32xf32> to vector<64x32xf32>
    %285 = arith.addf %282, %284 : vector<64x32xf32>
    %cst_142 = arith.constant 0.000000e+00 : f32
    %286 = vector.broadcast %cst_142 : f32 to vector<64x32xf32>
    %287 = arith.maximumf %285, %286 : vector<64x32xf32>
    %c0_143 = arith.constant 0 : index
    %c0_144 = arith.constant 0 : index
    %288 = vector.load %arg5[%c0_143, %c0_144] : memref<64x1xf32, #tpu.memory_space<vmem>>, vector<64x1xf32>
    %289 = vector.broadcast %288 : vector<64x1xf32> to vector<64x32xf32>
    %290 = arith.mulf %287, %289 : vector<64x32xf32>
    %291 = vector.shape_cast %290 : vector<64x32xf32> to vector<8x8x32xf32>
    %cst_145 = arith.constant dense<0xFF800000> : vector<8x32xf32>
    %292 = vector.multi_reduction <maximumf>, %291, %cst_145 [1] : vector<8x8x32xf32> to vector<8x32xf32>
    %c0_146 = arith.constant 0 : index
    %c0_147 = arith.constant 0 : index
    %293 = vector.load %arg16[%c0_146, %c0_147] : memref<32x64xf32, #tpu.memory_space<vmem>>, vector<32x64xf32>
    %cst_148 = arith.constant dense<0.000000e+00> : vector<8x64xf32>
    %294 = tpu.matmul %292, %293, %cst_148 {dimension_numbers = #tpu.dot_dimension_numbers<[1], [0], [0], [1], [0, 0, 1, 1], [], []>} : vector<8x32xf32>, vector<32x64xf32>, vector<8x64xf32> -> vector<8x64xf32>
    %295 = arith.addf %241, %294 : vector<8x64xf32>
    %c0_149 = arith.constant 0 : index
    %c0_150 = arith.constant 0 : index
    %296 = vector.load %arg17[%c0_149, %c0_150] : memref<1x64xf32, #tpu.memory_space<vmem>>, vector<1x64xf32>
    %297 = vector.broadcast %296 : vector<1x64xf32> to vector<8x64xf32>
    %298 = arith.addf %295, %297 : vector<8x64xf32>
    %cst_151 = arith.constant 0.000000e+00 : f32
    %299 = vector.broadcast %cst_151 : f32 to vector<8x64xf32>
    %300 = arith.maximumf %298, %299 : vector<8x64xf32>
    %c0_152 = arith.constant 0 : index
    %c0_153 = arith.constant 0 : index
    %301 = vector.load %arg18[%c0_152, %c0_153] : memref<64x32xf32, #tpu.memory_space<vmem>>, vector<64x32xf32>
    %cst_154 = arith.constant dense<0.000000e+00> : vector<8x32xf32>
    %302 = tpu.matmul %300, %301, %cst_154 {dimension_numbers = #tpu.dot_dimension_numbers<[1], [0], [0], [1], [0, 0, 1, 1], [], []>} : vector<8x64xf32>, vector<64x32xf32>, vector<8x32xf32> -> vector<8x32xf32>
    %c0_155 = arith.constant 0 : index
    %c0_156 = arith.constant 0 : index
    %303 = vector.load %arg19[%c0_155, %c0_156] : memref<1x32xf32, #tpu.memory_space<vmem>>, vector<1x32xf32>
    %304 = vector.broadcast %303 : vector<1x32xf32> to vector<8x32xf32>
    %305 = arith.addf %302, %304 : vector<8x32xf32>
    %cst_157 = arith.constant 0.000000e+00 : f32
    %306 = vector.broadcast %cst_157 : f32 to vector<8x32xf32>
    %307 = arith.maximumf %305, %306 : vector<8x32xf32>
    %c0_158 = arith.constant 0 : index
    %c0_159 = arith.constant 0 : index
    %308 = vector.load %arg6[%c0_158, %c0_159] : memref<2x128xf32, #tpu.memory_space<vmem>>, vector<1x128xf32>
    %309 = vector.broadcast %249 : vector<8x1xf32> to vector<8x128xf32>
    %310 = vector.broadcast %308 : vector<1x128xf32> to vector<8x128xf32>
    %311 = arith.mulf %309, %310 : vector<8x128xf32>
    %c1_160 = arith.constant 1 : index
    %c0_161 = arith.constant 0 : index
    %312 = vector.load %arg6[%c1_160, %c0_161] : memref<2x128xf32, #tpu.memory_space<vmem>>, vector<1x128xf32>
    %313 = vector.broadcast %257 : vector<8x1xf32> to vector<8x128xf32>
    %314 = vector.broadcast %312 : vector<1x128xf32> to vector<8x128xf32>
    %315 = arith.mulf %313, %314 : vector<8x128xf32>
    %316 = arith.addf %311, %315 : vector<8x128xf32>
    %c0_162 = arith.constant 0 : index
    %c0_163 = arith.constant 0 : index
    %317 = vector.load %arg7[%c0_162, %c0_163] : memref<1x128xf32, #tpu.memory_space<vmem>>, vector<1x128xf32>
    %318 = vector.broadcast %317 : vector<1x128xf32> to vector<8x128xf32>
    %319 = arith.addf %316, %318 : vector<8x128xf32>
    %c0_164 = arith.constant 0 : index
    %c0_165 = arith.constant 0 : index
    %320 = vector.load %arg8[%c0_164, %c0_165] : memref<32x128xf32, #tpu.memory_space<vmem>>, vector<32x128xf32>
    %cst_166 = arith.constant dense<0.000000e+00> : vector<8x128xf32>
    %321 = tpu.matmul %307, %320, %cst_166 {dimension_numbers = #tpu.dot_dimension_numbers<[1], [0], [0], [1], [0, 0, 1, 1], [], []>} : vector<8x32xf32>, vector<32x128xf32>, vector<8x128xf32> -> vector<8x128xf32>
    %322 = arith.addf %319, %321 : vector<8x128xf32>
    %323 = arith.negf %322 : vector<8x128xf32>
    %324 = math.exp %323 : vector<8x128xf32>
    %cst_167 = arith.constant 1.000000e+00 : f32
    %325 = vector.broadcast %cst_167 : f32 to vector<8x128xf32>
    %326 = arith.addf %325, %324 : vector<8x128xf32>
    %327 = arith.divf %325, %326 : vector<8x128xf32>
    %328 = vector.extract_strided_slice %322 {offsets = [0, 64], sizes = [8, 32], strides = [1, 1]} : vector<8x128xf32> to vector<8x32xf32>
    %329 = math.tanh %328 : vector<8x32xf32>
    %330 = vector.extract_strided_slice %327 {offsets = [0, 32], sizes = [8, 32], strides = [1, 1]} : vector<8x128xf32> to vector<8x32xf32>
    %331 = arith.mulf %330, %234 : vector<8x32xf32>
    %332 = vector.extract_strided_slice %327 {offsets = [0, 0], sizes = [8, 32], strides = [1, 1]} : vector<8x128xf32> to vector<8x32xf32>
    %333 = arith.mulf %332, %329 : vector<8x32xf32>
    %334 = arith.addf %331, %333 : vector<8x32xf32>
    %335 = vector.extract_strided_slice %327 {offsets = [0, 96], sizes = [8, 32], strides = [1, 1]} : vector<8x128xf32> to vector<8x32xf32>
    %336 = math.tanh %334 : vector<8x32xf32>
    %337 = arith.mulf %335, %336 : vector<8x32xf32>
    %c0_168 = arith.constant 0 : index
    %c0_169 = arith.constant 0 : index
    %338 = vector.load %arg13[%c0_168, %c0_169] : memref<32x128xf32, #tpu.memory_space<vmem>>, vector<32x128xf32>
    %cst_170 = arith.constant dense<0.000000e+00> : vector<8x128xf32>
    %339 = tpu.matmul %337, %338, %cst_170 {dimension_numbers = #tpu.dot_dimension_numbers<[1], [0], [0], [1], [0, 0, 1, 1], [], []>} : vector<8x32xf32>, vector<32x128xf32>, vector<8x128xf32> -> vector<8x128xf32>
    %340 = vector.extract_strided_slice %339 {offsets = [0, 0], sizes = [8, 64], strides = [1, 1]} : vector<8x128xf32> to vector<8x64xf32>
    %341 = vector.extract_strided_slice %339 {offsets = [0, 64], sizes = [8, 64], strides = [1, 1]} : vector<8x128xf32> to vector<8x64xf32>
    %c0_171 = arith.constant 0 : index
    %c0_172 = arith.constant 0 : index
    %342 = vector.load %arg9[%c0_171, %c0_172] : memref<2x32xf32, #tpu.memory_space<vmem>>, vector<1x32xf32>
    %343 = vector.broadcast %342 : vector<1x32xf32> to vector<8x32xf32>
    %344 = arith.mulf %337, %343 : vector<8x32xf32>
    %cst_173 = arith.constant dense<0.000000e+00> : vector<8xf32>
    %345 = vector.multi_reduction <add>, %344, %cst_173 [1] : vector<8x32xf32> to vector<8xf32>
    %346 = vector.shape_cast %345 : vector<8xf32> to vector<8x1xf32>
    %c0_174 = arith.constant 0 : index
    %c0_175 = arith.constant 0 : index
    %347 = vector.load %arg10[%c0_174, %c0_175] : memref<1x2xf32, #tpu.memory_space<vmem>>, vector<1x1xf32>
    %348 = vector.broadcast %347 : vector<1x1xf32> to vector<8x1xf32>
    %349 = arith.addf %346, %348 : vector<8x1xf32>
    %c1_176 = arith.constant 1 : index
    %c0_177 = arith.constant 0 : index
    %350 = vector.load %arg9[%c1_176, %c0_177] : memref<2x32xf32, #tpu.memory_space<vmem>>, vector<1x32xf32>
    %351 = vector.broadcast %350 : vector<1x32xf32> to vector<8x32xf32>
    %352 = arith.mulf %337, %351 : vector<8x32xf32>
    %cst_178 = arith.constant dense<0.000000e+00> : vector<8xf32>
    %353 = vector.multi_reduction <add>, %352, %cst_178 [1] : vector<8x32xf32> to vector<8xf32>
    %354 = vector.shape_cast %353 : vector<8xf32> to vector<8x1xf32>
    %c0_179 = arith.constant 0 : index
    %c1_180 = arith.constant 1 : index
    %355 = vector.load %arg10[%c0_179, %c1_180] : memref<1x2xf32, #tpu.memory_space<vmem>>, vector<1x1xf32>
    %356 = vector.broadcast %355 : vector<1x1xf32> to vector<8x1xf32>
    %357 = arith.addf %354, %356 : vector<8x1xf32>
    %358 = arith.addf %258, %349 : vector<8x1xf32>
    %359 = arith.addf %259, %357 : vector<8x1xf32>
    %c0_181 = arith.constant 0 : index
    %c0_182 = arith.constant 0 : index
    %360 = vector.load %arg11[%c0_181, %c0_182] : memref<2x64xf32, #tpu.memory_space<vmem>>, vector<1x64xf32>
    %361 = vector.broadcast %358 : vector<8x1xf32> to vector<8x64xf32>
    %362 = vector.broadcast %360 : vector<1x64xf32> to vector<8x64xf32>
    %363 = arith.mulf %361, %362 : vector<8x64xf32>
    %c1_183 = arith.constant 1 : index
    %c0_184 = arith.constant 0 : index
    %364 = vector.load %arg11[%c1_183, %c0_184] : memref<2x64xf32, #tpu.memory_space<vmem>>, vector<1x64xf32>
    %365 = vector.broadcast %359 : vector<8x1xf32> to vector<8x64xf32>
    %366 = vector.broadcast %364 : vector<1x64xf32> to vector<8x64xf32>
    %367 = arith.mulf %365, %366 : vector<8x64xf32>
    %368 = arith.addf %363, %367 : vector<8x64xf32>
    %369 = arith.addf %368, %340 : vector<8x64xf32>
    %c0_185 = arith.constant 0 : index
    %c0_186 = arith.constant 0 : index
    %370 = vector.load %arg12[%c0_185, %c0_186] : memref<1x64xf32, #tpu.memory_space<vmem>>, vector<1x64xf32>
    %371 = vector.broadcast %370 : vector<1x64xf32> to vector<8x64xf32>
    %372 = arith.addf %369, %371 : vector<8x64xf32>
    %373 = vector.shape_cast %372 : vector<8x64xf32> to vector<1x8x64xf32>
    %374 = vector.shape_cast %368 : vector<8x64xf32> to vector<8x1x64xf32>
    %375 = vector.broadcast %373 : vector<1x8x64xf32> to vector<8x8x64xf32>
    %376 = vector.broadcast %374 : vector<8x1x64xf32> to vector<8x8x64xf32>
    %377 = arith.subf %375, %376 : vector<8x8x64xf32>
    %cst_187 = arith.constant 0.000000e+00 : f32
    %378 = vector.broadcast %cst_187 : f32 to vector<8x8x64xf32>
    %379 = arith.maximumf %377, %378 : vector<8x8x64xf32>
    %380 = vector.shape_cast %379 : vector<8x8x64xf32> to vector<64x64xf32>
    %c0_188 = arith.constant 0 : index
    %c0_189 = arith.constant 0 : index
    %381 = vector.load %arg14[%c0_188, %c0_189] : memref<64x32xf32, #tpu.memory_space<vmem>>, vector<64x32xf32>
    %cst_190 = arith.constant dense<0.000000e+00> : vector<64x32xf32>
    %382 = tpu.matmul %380, %381, %cst_190 {dimension_numbers = #tpu.dot_dimension_numbers<[1], [0], [0], [1], [0, 0, 1, 1], [], []>} : vector<64x64xf32>, vector<64x32xf32>, vector<64x32xf32> -> vector<64x32xf32>
    %c0_191 = arith.constant 0 : index
    %c0_192 = arith.constant 0 : index
    %383 = vector.load %arg15[%c0_191, %c0_192] : memref<1x32xf32, #tpu.memory_space<vmem>>, vector<1x32xf32>
    %384 = vector.broadcast %383 : vector<1x32xf32> to vector<64x32xf32>
    %385 = arith.addf %382, %384 : vector<64x32xf32>
    %cst_193 = arith.constant 0.000000e+00 : f32
    %386 = vector.broadcast %cst_193 : f32 to vector<64x32xf32>
    %387 = arith.maximumf %385, %386 : vector<64x32xf32>
    %c0_194 = arith.constant 0 : index
    %c0_195 = arith.constant 0 : index
    %388 = vector.load %arg5[%c0_194, %c0_195] : memref<64x1xf32, #tpu.memory_space<vmem>>, vector<64x1xf32>
    %389 = vector.broadcast %388 : vector<64x1xf32> to vector<64x32xf32>
    %390 = arith.mulf %387, %389 : vector<64x32xf32>
    %391 = vector.shape_cast %390 : vector<64x32xf32> to vector<8x8x32xf32>
    %cst_196 = arith.constant dense<0xFF800000> : vector<8x32xf32>
    %392 = vector.multi_reduction <maximumf>, %391, %cst_196 [1] : vector<8x8x32xf32> to vector<8x32xf32>
    %c0_197 = arith.constant 0 : index
    %c0_198 = arith.constant 0 : index
    %393 = vector.load %arg16[%c0_197, %c0_198] : memref<32x64xf32, #tpu.memory_space<vmem>>, vector<32x64xf32>
    %cst_199 = arith.constant dense<0.000000e+00> : vector<8x64xf32>
    %394 = tpu.matmul %392, %393, %cst_199 {dimension_numbers = #tpu.dot_dimension_numbers<[1], [0], [0], [1], [0, 0, 1, 1], [], []>} : vector<8x32xf32>, vector<32x64xf32>, vector<8x64xf32> -> vector<8x64xf32>
    %395 = arith.addf %341, %394 : vector<8x64xf32>
    %c0_200 = arith.constant 0 : index
    %c0_201 = arith.constant 0 : index
    %396 = vector.load %arg17[%c0_200, %c0_201] : memref<1x64xf32, #tpu.memory_space<vmem>>, vector<1x64xf32>
    %397 = vector.broadcast %396 : vector<1x64xf32> to vector<8x64xf32>
    %398 = arith.addf %395, %397 : vector<8x64xf32>
    %cst_202 = arith.constant 0.000000e+00 : f32
    %399 = vector.broadcast %cst_202 : f32 to vector<8x64xf32>
    %400 = arith.maximumf %398, %399 : vector<8x64xf32>
    %c0_203 = arith.constant 0 : index
    %c0_204 = arith.constant 0 : index
    %401 = vector.load %arg18[%c0_203, %c0_204] : memref<64x32xf32, #tpu.memory_space<vmem>>, vector<64x32xf32>
    %cst_205 = arith.constant dense<0.000000e+00> : vector<8x32xf32>
    %402 = tpu.matmul %400, %401, %cst_205 {dimension_numbers = #tpu.dot_dimension_numbers<[1], [0], [0], [1], [0, 0, 1, 1], [], []>} : vector<8x64xf32>, vector<64x32xf32>, vector<8x32xf32> -> vector<8x32xf32>
    %c0_206 = arith.constant 0 : index
    %c0_207 = arith.constant 0 : index
    %403 = vector.load %arg19[%c0_206, %c0_207] : memref<1x32xf32, #tpu.memory_space<vmem>>, vector<1x32xf32>
    %404 = vector.broadcast %403 : vector<1x32xf32> to vector<8x32xf32>
    %405 = arith.addf %402, %404 : vector<8x32xf32>
    %cst_208 = arith.constant 0.000000e+00 : f32
    %406 = vector.broadcast %cst_208 : f32 to vector<8x32xf32>
    %407 = arith.maximumf %405, %406 : vector<8x32xf32>
    %c0_209 = arith.constant 0 : index
    %c0_210 = arith.constant 0 : index
    %408 = vector.load %arg6[%c0_209, %c0_210] : memref<2x128xf32, #tpu.memory_space<vmem>>, vector<1x128xf32>
    %409 = vector.broadcast %349 : vector<8x1xf32> to vector<8x128xf32>
    %410 = vector.broadcast %408 : vector<1x128xf32> to vector<8x128xf32>
    %411 = arith.mulf %409, %410 : vector<8x128xf32>
    %c1_211 = arith.constant 1 : index
    %c0_212 = arith.constant 0 : index
    %412 = vector.load %arg6[%c1_211, %c0_212] : memref<2x128xf32, #tpu.memory_space<vmem>>, vector<1x128xf32>
    %413 = vector.broadcast %357 : vector<8x1xf32> to vector<8x128xf32>
    %414 = vector.broadcast %412 : vector<1x128xf32> to vector<8x128xf32>
    %415 = arith.mulf %413, %414 : vector<8x128xf32>
    %416 = arith.addf %411, %415 : vector<8x128xf32>
    %c0_213 = arith.constant 0 : index
    %c0_214 = arith.constant 0 : index
    %417 = vector.load %arg7[%c0_213, %c0_214] : memref<1x128xf32, #tpu.memory_space<vmem>>, vector<1x128xf32>
    %418 = vector.broadcast %417 : vector<1x128xf32> to vector<8x128xf32>
    %419 = arith.addf %416, %418 : vector<8x128xf32>
    %c0_215 = arith.constant 0 : index
    %c0_216 = arith.constant 0 : index
    %420 = vector.load %arg8[%c0_215, %c0_216] : memref<32x128xf32, #tpu.memory_space<vmem>>, vector<32x128xf32>
    %cst_217 = arith.constant dense<0.000000e+00> : vector<8x128xf32>
    %421 = tpu.matmul %407, %420, %cst_217 {dimension_numbers = #tpu.dot_dimension_numbers<[1], [0], [0], [1], [0, 0, 1, 1], [], []>} : vector<8x32xf32>, vector<32x128xf32>, vector<8x128xf32> -> vector<8x128xf32>
    %422 = arith.addf %419, %421 : vector<8x128xf32>
    %423 = arith.negf %422 : vector<8x128xf32>
    %424 = math.exp %423 : vector<8x128xf32>
    %cst_218 = arith.constant 1.000000e+00 : f32
    %425 = vector.broadcast %cst_218 : f32 to vector<8x128xf32>
    %426 = arith.addf %425, %424 : vector<8x128xf32>
    %427 = arith.divf %425, %426 : vector<8x128xf32>
    %428 = vector.extract_strided_slice %422 {offsets = [0, 64], sizes = [8, 32], strides = [1, 1]} : vector<8x128xf32> to vector<8x32xf32>
    %429 = math.tanh %428 : vector<8x32xf32>
    %430 = vector.extract_strided_slice %427 {offsets = [0, 32], sizes = [8, 32], strides = [1, 1]} : vector<8x128xf32> to vector<8x32xf32>
    %431 = arith.mulf %430, %334 : vector<8x32xf32>
    %432 = vector.extract_strided_slice %427 {offsets = [0, 0], sizes = [8, 32], strides = [1, 1]} : vector<8x128xf32> to vector<8x32xf32>
    %433 = arith.mulf %432, %429 : vector<8x32xf32>
    %434 = arith.addf %431, %433 : vector<8x32xf32>
    %435 = vector.extract_strided_slice %427 {offsets = [0, 96], sizes = [8, 32], strides = [1, 1]} : vector<8x128xf32> to vector<8x32xf32>
    %436 = math.tanh %434 : vector<8x32xf32>
    %437 = arith.mulf %435, %436 : vector<8x32xf32>
    %c0_219 = arith.constant 0 : index
    %c0_220 = arith.constant 0 : index
    %438 = vector.load %arg13[%c0_219, %c0_220] : memref<32x128xf32, #tpu.memory_space<vmem>>, vector<32x128xf32>
    %cst_221 = arith.constant dense<0.000000e+00> : vector<8x128xf32>
    %439 = tpu.matmul %437, %438, %cst_221 {dimension_numbers = #tpu.dot_dimension_numbers<[1], [0], [0], [1], [0, 0, 1, 1], [], []>} : vector<8x32xf32>, vector<32x128xf32>, vector<8x128xf32> -> vector<8x128xf32>
    %440 = vector.extract_strided_slice %439 {offsets = [0, 0], sizes = [8, 64], strides = [1, 1]} : vector<8x128xf32> to vector<8x64xf32>
    %441 = vector.extract_strided_slice %439 {offsets = [0, 64], sizes = [8, 64], strides = [1, 1]} : vector<8x128xf32> to vector<8x64xf32>
    %c0_222 = arith.constant 0 : index
    %c0_223 = arith.constant 0 : index
    %442 = vector.load %arg9[%c0_222, %c0_223] : memref<2x32xf32, #tpu.memory_space<vmem>>, vector<1x32xf32>
    %443 = vector.broadcast %442 : vector<1x32xf32> to vector<8x32xf32>
    %444 = arith.mulf %437, %443 : vector<8x32xf32>
    %cst_224 = arith.constant dense<0.000000e+00> : vector<8xf32>
    %445 = vector.multi_reduction <add>, %444, %cst_224 [1] : vector<8x32xf32> to vector<8xf32>
    %446 = vector.shape_cast %445 : vector<8xf32> to vector<8x1xf32>
    %c0_225 = arith.constant 0 : index
    %c0_226 = arith.constant 0 : index
    %447 = vector.load %arg10[%c0_225, %c0_226] : memref<1x2xf32, #tpu.memory_space<vmem>>, vector<1x1xf32>
    %448 = vector.broadcast %447 : vector<1x1xf32> to vector<8x1xf32>
    %449 = arith.addf %446, %448 : vector<8x1xf32>
    %c1_227 = arith.constant 1 : index
    %c0_228 = arith.constant 0 : index
    %450 = vector.load %arg9[%c1_227, %c0_228] : memref<2x32xf32, #tpu.memory_space<vmem>>, vector<1x32xf32>
    %451 = vector.broadcast %450 : vector<1x32xf32> to vector<8x32xf32>
    %452 = arith.mulf %437, %451 : vector<8x32xf32>
    %cst_229 = arith.constant dense<0.000000e+00> : vector<8xf32>
    %453 = vector.multi_reduction <add>, %452, %cst_229 [1] : vector<8x32xf32> to vector<8xf32>
    %454 = vector.shape_cast %453 : vector<8xf32> to vector<8x1xf32>
    %c0_230 = arith.constant 0 : index
    %c1_231 = arith.constant 1 : index
    %455 = vector.load %arg10[%c0_230, %c1_231] : memref<1x2xf32, #tpu.memory_space<vmem>>, vector<1x1xf32>
    %456 = vector.broadcast %455 : vector<1x1xf32> to vector<8x1xf32>
    %457 = arith.addf %454, %456 : vector<8x1xf32>
    %458 = arith.addf %358, %449 : vector<8x1xf32>
    %459 = arith.addf %359, %457 : vector<8x1xf32>
    %c0_232 = arith.constant 0 : index
    %c0_233 = arith.constant 0 : index
    %460 = vector.load %arg11[%c0_232, %c0_233] : memref<2x64xf32, #tpu.memory_space<vmem>>, vector<1x64xf32>
    %461 = vector.broadcast %458 : vector<8x1xf32> to vector<8x64xf32>
    %462 = vector.broadcast %460 : vector<1x64xf32> to vector<8x64xf32>
    %463 = arith.mulf %461, %462 : vector<8x64xf32>
    %c1_234 = arith.constant 1 : index
    %c0_235 = arith.constant 0 : index
    %464 = vector.load %arg11[%c1_234, %c0_235] : memref<2x64xf32, #tpu.memory_space<vmem>>, vector<1x64xf32>
    %465 = vector.broadcast %459 : vector<8x1xf32> to vector<8x64xf32>
    %466 = vector.broadcast %464 : vector<1x64xf32> to vector<8x64xf32>
    %467 = arith.mulf %465, %466 : vector<8x64xf32>
    %468 = arith.addf %463, %467 : vector<8x64xf32>
    %469 = arith.addf %468, %440 : vector<8x64xf32>
    %c0_236 = arith.constant 0 : index
    %c0_237 = arith.constant 0 : index
    %470 = vector.load %arg12[%c0_236, %c0_237] : memref<1x64xf32, #tpu.memory_space<vmem>>, vector<1x64xf32>
    %471 = vector.broadcast %470 : vector<1x64xf32> to vector<8x64xf32>
    %472 = arith.addf %469, %471 : vector<8x64xf32>
    %473 = vector.shape_cast %472 : vector<8x64xf32> to vector<1x8x64xf32>
    %474 = vector.shape_cast %468 : vector<8x64xf32> to vector<8x1x64xf32>
    %475 = vector.broadcast %473 : vector<1x8x64xf32> to vector<8x8x64xf32>
    %476 = vector.broadcast %474 : vector<8x1x64xf32> to vector<8x8x64xf32>
    %477 = arith.subf %475, %476 : vector<8x8x64xf32>
    %cst_238 = arith.constant 0.000000e+00 : f32
    %478 = vector.broadcast %cst_238 : f32 to vector<8x8x64xf32>
    %479 = arith.maximumf %477, %478 : vector<8x8x64xf32>
    %480 = vector.shape_cast %479 : vector<8x8x64xf32> to vector<64x64xf32>
    %c0_239 = arith.constant 0 : index
    %c0_240 = arith.constant 0 : index
    %481 = vector.load %arg14[%c0_239, %c0_240] : memref<64x32xf32, #tpu.memory_space<vmem>>, vector<64x32xf32>
    %cst_241 = arith.constant dense<0.000000e+00> : vector<64x32xf32>
    %482 = tpu.matmul %480, %481, %cst_241 {dimension_numbers = #tpu.dot_dimension_numbers<[1], [0], [0], [1], [0, 0, 1, 1], [], []>} : vector<64x64xf32>, vector<64x32xf32>, vector<64x32xf32> -> vector<64x32xf32>
    %c0_242 = arith.constant 0 : index
    %c0_243 = arith.constant 0 : index
    %483 = vector.load %arg15[%c0_242, %c0_243] : memref<1x32xf32, #tpu.memory_space<vmem>>, vector<1x32xf32>
    %484 = vector.broadcast %483 : vector<1x32xf32> to vector<64x32xf32>
    %485 = arith.addf %482, %484 : vector<64x32xf32>
    %cst_244 = arith.constant 0.000000e+00 : f32
    %486 = vector.broadcast %cst_244 : f32 to vector<64x32xf32>
    %487 = arith.maximumf %485, %486 : vector<64x32xf32>
    %c0_245 = arith.constant 0 : index
    %c0_246 = arith.constant 0 : index
    %488 = vector.load %arg5[%c0_245, %c0_246] : memref<64x1xf32, #tpu.memory_space<vmem>>, vector<64x1xf32>
    %489 = vector.broadcast %488 : vector<64x1xf32> to vector<64x32xf32>
    %490 = arith.mulf %487, %489 : vector<64x32xf32>
    %491 = vector.shape_cast %490 : vector<64x32xf32> to vector<8x8x32xf32>
    %cst_247 = arith.constant dense<0xFF800000> : vector<8x32xf32>
    %492 = vector.multi_reduction <maximumf>, %491, %cst_247 [1] : vector<8x8x32xf32> to vector<8x32xf32>
    %c0_248 = arith.constant 0 : index
    %c0_249 = arith.constant 0 : index
    %493 = vector.load %arg16[%c0_248, %c0_249] : memref<32x64xf32, #tpu.memory_space<vmem>>, vector<32x64xf32>
    %cst_250 = arith.constant dense<0.000000e+00> : vector<8x64xf32>
    %494 = tpu.matmul %492, %493, %cst_250 {dimension_numbers = #tpu.dot_dimension_numbers<[1], [0], [0], [1], [0, 0, 1, 1], [], []>} : vector<8x32xf32>, vector<32x64xf32>, vector<8x64xf32> -> vector<8x64xf32>
    %495 = arith.addf %441, %494 : vector<8x64xf32>
    %c0_251 = arith.constant 0 : index
    %c0_252 = arith.constant 0 : index
    %496 = vector.load %arg17[%c0_251, %c0_252] : memref<1x64xf32, #tpu.memory_space<vmem>>, vector<1x64xf32>
    %497 = vector.broadcast %496 : vector<1x64xf32> to vector<8x64xf32>
    %498 = arith.addf %495, %497 : vector<8x64xf32>
    %cst_253 = arith.constant 0.000000e+00 : f32
    %499 = vector.broadcast %cst_253 : f32 to vector<8x64xf32>
    %500 = arith.maximumf %498, %499 : vector<8x64xf32>
    %c0_254 = arith.constant 0 : index
    %c0_255 = arith.constant 0 : index
    %501 = vector.load %arg18[%c0_254, %c0_255] : memref<64x32xf32, #tpu.memory_space<vmem>>, vector<64x32xf32>
    %cst_256 = arith.constant dense<0.000000e+00> : vector<8x32xf32>
    %502 = tpu.matmul %500, %501, %cst_256 {dimension_numbers = #tpu.dot_dimension_numbers<[1], [0], [0], [1], [0, 0, 1, 1], [], []>} : vector<8x64xf32>, vector<64x32xf32>, vector<8x32xf32> -> vector<8x32xf32>
    %c0_257 = arith.constant 0 : index
    %c0_258 = arith.constant 0 : index
    %503 = vector.load %arg19[%c0_257, %c0_258] : memref<1x32xf32, #tpu.memory_space<vmem>>, vector<1x32xf32>
    %504 = vector.broadcast %503 : vector<1x32xf32> to vector<8x32xf32>
    %505 = arith.addf %502, %504 : vector<8x32xf32>
    %cst_259 = arith.constant 0.000000e+00 : f32
    %506 = vector.broadcast %cst_259 : f32 to vector<8x32xf32>
    %507 = arith.maximumf %505, %506 : vector<8x32xf32>
    %c0_260 = arith.constant 0 : index
    %c0_261 = arith.constant 0 : index
    %508 = vector.load %arg6[%c0_260, %c0_261] : memref<2x128xf32, #tpu.memory_space<vmem>>, vector<1x128xf32>
    %509 = vector.broadcast %449 : vector<8x1xf32> to vector<8x128xf32>
    %510 = vector.broadcast %508 : vector<1x128xf32> to vector<8x128xf32>
    %511 = arith.mulf %509, %510 : vector<8x128xf32>
    %c1_262 = arith.constant 1 : index
    %c0_263 = arith.constant 0 : index
    %512 = vector.load %arg6[%c1_262, %c0_263] : memref<2x128xf32, #tpu.memory_space<vmem>>, vector<1x128xf32>
    %513 = vector.broadcast %457 : vector<8x1xf32> to vector<8x128xf32>
    %514 = vector.broadcast %512 : vector<1x128xf32> to vector<8x128xf32>
    %515 = arith.mulf %513, %514 : vector<8x128xf32>
    %516 = arith.addf %511, %515 : vector<8x128xf32>
    %c0_264 = arith.constant 0 : index
    %c0_265 = arith.constant 0 : index
    %517 = vector.load %arg7[%c0_264, %c0_265] : memref<1x128xf32, #tpu.memory_space<vmem>>, vector<1x128xf32>
    %518 = vector.broadcast %517 : vector<1x128xf32> to vector<8x128xf32>
    %519 = arith.addf %516, %518 : vector<8x128xf32>
    %c0_266 = arith.constant 0 : index
    %c0_267 = arith.constant 0 : index
    %520 = vector.load %arg8[%c0_266, %c0_267] : memref<32x128xf32, #tpu.memory_space<vmem>>, vector<32x128xf32>
    %cst_268 = arith.constant dense<0.000000e+00> : vector<8x128xf32>
    %521 = tpu.matmul %507, %520, %cst_268 {dimension_numbers = #tpu.dot_dimension_numbers<[1], [0], [0], [1], [0, 0, 1, 1], [], []>} : vector<8x32xf32>, vector<32x128xf32>, vector<8x128xf32> -> vector<8x128xf32>
    %522 = arith.addf %519, %521 : vector<8x128xf32>
    %523 = arith.negf %522 : vector<8x128xf32>
    %524 = math.exp %523 : vector<8x128xf32>
    %cst_269 = arith.constant 1.000000e+00 : f32
    %525 = vector.broadcast %cst_269 : f32 to vector<8x128xf32>
    %526 = arith.addf %525, %524 : vector<8x128xf32>
    %527 = arith.divf %525, %526 : vector<8x128xf32>
    %528 = vector.extract_strided_slice %522 {offsets = [0, 64], sizes = [8, 32], strides = [1, 1]} : vector<8x128xf32> to vector<8x32xf32>
    %529 = math.tanh %528 : vector<8x32xf32>
    %530 = vector.extract_strided_slice %527 {offsets = [0, 32], sizes = [8, 32], strides = [1, 1]} : vector<8x128xf32> to vector<8x32xf32>
    %531 = arith.mulf %530, %434 : vector<8x32xf32>
    %532 = vector.extract_strided_slice %527 {offsets = [0, 0], sizes = [8, 32], strides = [1, 1]} : vector<8x128xf32> to vector<8x32xf32>
    %533 = arith.mulf %532, %529 : vector<8x32xf32>
    %534 = arith.addf %531, %533 : vector<8x32xf32>
    %535 = vector.extract_strided_slice %527 {offsets = [0, 96], sizes = [8, 32], strides = [1, 1]} : vector<8x128xf32> to vector<8x32xf32>
    %536 = math.tanh %534 : vector<8x32xf32>
    %537 = arith.mulf %535, %536 : vector<8x32xf32>
    %c0_270 = arith.constant 0 : index
    %c0_271 = arith.constant 0 : index
    %538 = vector.load %arg13[%c0_270, %c0_271] : memref<32x128xf32, #tpu.memory_space<vmem>>, vector<32x128xf32>
    %cst_272 = arith.constant dense<0.000000e+00> : vector<8x128xf32>
    %539 = tpu.matmul %537, %538, %cst_272 {dimension_numbers = #tpu.dot_dimension_numbers<[1], [0], [0], [1], [0, 0, 1, 1], [], []>} : vector<8x32xf32>, vector<32x128xf32>, vector<8x128xf32> -> vector<8x128xf32>
    %540 = vector.extract_strided_slice %539 {offsets = [0, 0], sizes = [8, 64], strides = [1, 1]} : vector<8x128xf32> to vector<8x64xf32>
    %541 = vector.extract_strided_slice %539 {offsets = [0, 64], sizes = [8, 64], strides = [1, 1]} : vector<8x128xf32> to vector<8x64xf32>
    %c0_273 = arith.constant 0 : index
    %c0_274 = arith.constant 0 : index
    %542 = vector.load %arg9[%c0_273, %c0_274] : memref<2x32xf32, #tpu.memory_space<vmem>>, vector<1x32xf32>
    %543 = vector.broadcast %542 : vector<1x32xf32> to vector<8x32xf32>
    %544 = arith.mulf %537, %543 : vector<8x32xf32>
    %cst_275 = arith.constant dense<0.000000e+00> : vector<8xf32>
    %545 = vector.multi_reduction <add>, %544, %cst_275 [1] : vector<8x32xf32> to vector<8xf32>
    %546 = vector.shape_cast %545 : vector<8xf32> to vector<8x1xf32>
    %c0_276 = arith.constant 0 : index
    %c0_277 = arith.constant 0 : index
    %547 = vector.load %arg10[%c0_276, %c0_277] : memref<1x2xf32, #tpu.memory_space<vmem>>, vector<1x1xf32>
    %548 = vector.broadcast %547 : vector<1x1xf32> to vector<8x1xf32>
    %549 = arith.addf %546, %548 : vector<8x1xf32>
    %c1_278 = arith.constant 1 : index
    %c0_279 = arith.constant 0 : index
    %550 = vector.load %arg9[%c1_278, %c0_279] : memref<2x32xf32, #tpu.memory_space<vmem>>, vector<1x32xf32>
    %551 = vector.broadcast %550 : vector<1x32xf32> to vector<8x32xf32>
    %552 = arith.mulf %537, %551 : vector<8x32xf32>
    %cst_280 = arith.constant dense<0.000000e+00> : vector<8xf32>
    %553 = vector.multi_reduction <add>, %552, %cst_280 [1] : vector<8x32xf32> to vector<8xf32>
    %554 = vector.shape_cast %553 : vector<8xf32> to vector<8x1xf32>
    %c0_281 = arith.constant 0 : index
    %c1_282 = arith.constant 1 : index
    %555 = vector.load %arg10[%c0_281, %c1_282] : memref<1x2xf32, #tpu.memory_space<vmem>>, vector<1x1xf32>
    %556 = vector.broadcast %555 : vector<1x1xf32> to vector<8x1xf32>
    %557 = arith.addf %554, %556 : vector<8x1xf32>
    %558 = arith.addf %458, %549 : vector<8x1xf32>
    %559 = arith.addf %459, %557 : vector<8x1xf32>
    %c0_283 = arith.constant 0 : index
    %c0_284 = arith.constant 0 : index
    %560 = vector.load %arg11[%c0_283, %c0_284] : memref<2x64xf32, #tpu.memory_space<vmem>>, vector<1x64xf32>
    %561 = vector.broadcast %558 : vector<8x1xf32> to vector<8x64xf32>
    %562 = vector.broadcast %560 : vector<1x64xf32> to vector<8x64xf32>
    %563 = arith.mulf %561, %562 : vector<8x64xf32>
    %c1_285 = arith.constant 1 : index
    %c0_286 = arith.constant 0 : index
    %564 = vector.load %arg11[%c1_285, %c0_286] : memref<2x64xf32, #tpu.memory_space<vmem>>, vector<1x64xf32>
    %565 = vector.broadcast %559 : vector<8x1xf32> to vector<8x64xf32>
    %566 = vector.broadcast %564 : vector<1x64xf32> to vector<8x64xf32>
    %567 = arith.mulf %565, %566 : vector<8x64xf32>
    %568 = arith.addf %563, %567 : vector<8x64xf32>
    %569 = arith.addf %568, %540 : vector<8x64xf32>
    %c0_287 = arith.constant 0 : index
    %c0_288 = arith.constant 0 : index
    %570 = vector.load %arg12[%c0_287, %c0_288] : memref<1x64xf32, #tpu.memory_space<vmem>>, vector<1x64xf32>
    %571 = vector.broadcast %570 : vector<1x64xf32> to vector<8x64xf32>
    %572 = arith.addf %569, %571 : vector<8x64xf32>
    %573 = vector.shape_cast %572 : vector<8x64xf32> to vector<1x8x64xf32>
    %574 = vector.shape_cast %568 : vector<8x64xf32> to vector<8x1x64xf32>
    %575 = vector.broadcast %573 : vector<1x8x64xf32> to vector<8x8x64xf32>
    %576 = vector.broadcast %574 : vector<8x1x64xf32> to vector<8x8x64xf32>
    %577 = arith.subf %575, %576 : vector<8x8x64xf32>
    %cst_289 = arith.constant 0.000000e+00 : f32
    %578 = vector.broadcast %cst_289 : f32 to vector<8x8x64xf32>
    %579 = arith.maximumf %577, %578 : vector<8x8x64xf32>
    %580 = vector.shape_cast %579 : vector<8x8x64xf32> to vector<64x64xf32>
    %c0_290 = arith.constant 0 : index
    %c0_291 = arith.constant 0 : index
    %581 = vector.load %arg14[%c0_290, %c0_291] : memref<64x32xf32, #tpu.memory_space<vmem>>, vector<64x32xf32>
    %cst_292 = arith.constant dense<0.000000e+00> : vector<64x32xf32>
    %582 = tpu.matmul %580, %581, %cst_292 {dimension_numbers = #tpu.dot_dimension_numbers<[1], [0], [0], [1], [0, 0, 1, 1], [], []>} : vector<64x64xf32>, vector<64x32xf32>, vector<64x32xf32> -> vector<64x32xf32>
    %c0_293 = arith.constant 0 : index
    %c0_294 = arith.constant 0 : index
    %583 = vector.load %arg15[%c0_293, %c0_294] : memref<1x32xf32, #tpu.memory_space<vmem>>, vector<1x32xf32>
    %584 = vector.broadcast %583 : vector<1x32xf32> to vector<64x32xf32>
    %585 = arith.addf %582, %584 : vector<64x32xf32>
    %cst_295 = arith.constant 0.000000e+00 : f32
    %586 = vector.broadcast %cst_295 : f32 to vector<64x32xf32>
    %587 = arith.maximumf %585, %586 : vector<64x32xf32>
    %c0_296 = arith.constant 0 : index
    %c0_297 = arith.constant 0 : index
    %588 = vector.load %arg5[%c0_296, %c0_297] : memref<64x1xf32, #tpu.memory_space<vmem>>, vector<64x1xf32>
    %589 = vector.broadcast %588 : vector<64x1xf32> to vector<64x32xf32>
    %590 = arith.mulf %587, %589 : vector<64x32xf32>
    %591 = vector.shape_cast %590 : vector<64x32xf32> to vector<8x8x32xf32>
    %cst_298 = arith.constant dense<0xFF800000> : vector<8x32xf32>
    %592 = vector.multi_reduction <maximumf>, %591, %cst_298 [1] : vector<8x8x32xf32> to vector<8x32xf32>
    %c0_299 = arith.constant 0 : index
    %c0_300 = arith.constant 0 : index
    %593 = vector.load %arg16[%c0_299, %c0_300] : memref<32x64xf32, #tpu.memory_space<vmem>>, vector<32x64xf32>
    %cst_301 = arith.constant dense<0.000000e+00> : vector<8x64xf32>
    %594 = tpu.matmul %592, %593, %cst_301 {dimension_numbers = #tpu.dot_dimension_numbers<[1], [0], [0], [1], [0, 0, 1, 1], [], []>} : vector<8x32xf32>, vector<32x64xf32>, vector<8x64xf32> -> vector<8x64xf32>
    %595 = arith.addf %541, %594 : vector<8x64xf32>
    %c0_302 = arith.constant 0 : index
    %c0_303 = arith.constant 0 : index
    %596 = vector.load %arg17[%c0_302, %c0_303] : memref<1x64xf32, #tpu.memory_space<vmem>>, vector<1x64xf32>
    %597 = vector.broadcast %596 : vector<1x64xf32> to vector<8x64xf32>
    %598 = arith.addf %595, %597 : vector<8x64xf32>
    %cst_304 = arith.constant 0.000000e+00 : f32
    %599 = vector.broadcast %cst_304 : f32 to vector<8x64xf32>
    %600 = arith.maximumf %598, %599 : vector<8x64xf32>
    %c0_305 = arith.constant 0 : index
    %c0_306 = arith.constant 0 : index
    %601 = vector.load %arg18[%c0_305, %c0_306] : memref<64x32xf32, #tpu.memory_space<vmem>>, vector<64x32xf32>
    %cst_307 = arith.constant dense<0.000000e+00> : vector<8x32xf32>
    %602 = tpu.matmul %600, %601, %cst_307 {dimension_numbers = #tpu.dot_dimension_numbers<[1], [0], [0], [1], [0, 0, 1, 1], [], []>} : vector<8x64xf32>, vector<64x32xf32>, vector<8x32xf32> -> vector<8x32xf32>
    %c0_308 = arith.constant 0 : index
    %c0_309 = arith.constant 0 : index
    %603 = vector.load %arg19[%c0_308, %c0_309] : memref<1x32xf32, #tpu.memory_space<vmem>>, vector<1x32xf32>
    %604 = vector.broadcast %603 : vector<1x32xf32> to vector<8x32xf32>
    %605 = arith.addf %602, %604 : vector<8x32xf32>
    %cst_310 = arith.constant 0.000000e+00 : f32
    %606 = vector.broadcast %cst_310 : f32 to vector<8x32xf32>
    %607 = arith.maximumf %605, %606 : vector<8x32xf32>
    %c0_311 = arith.constant 0 : index
    %c0_312 = arith.constant 0 : index
    %608 = vector.load %arg6[%c0_311, %c0_312] : memref<2x128xf32, #tpu.memory_space<vmem>>, vector<1x128xf32>
    %609 = vector.broadcast %549 : vector<8x1xf32> to vector<8x128xf32>
    %610 = vector.broadcast %608 : vector<1x128xf32> to vector<8x128xf32>
    %611 = arith.mulf %609, %610 : vector<8x128xf32>
    %c1_313 = arith.constant 1 : index
    %c0_314 = arith.constant 0 : index
    %612 = vector.load %arg6[%c1_313, %c0_314] : memref<2x128xf32, #tpu.memory_space<vmem>>, vector<1x128xf32>
    %613 = vector.broadcast %557 : vector<8x1xf32> to vector<8x128xf32>
    %614 = vector.broadcast %612 : vector<1x128xf32> to vector<8x128xf32>
    %615 = arith.mulf %613, %614 : vector<8x128xf32>
    %616 = arith.addf %611, %615 : vector<8x128xf32>
    %c0_315 = arith.constant 0 : index
    %c0_316 = arith.constant 0 : index
    %617 = vector.load %arg7[%c0_315, %c0_316] : memref<1x128xf32, #tpu.memory_space<vmem>>, vector<1x128xf32>
    %618 = vector.broadcast %617 : vector<1x128xf32> to vector<8x128xf32>
    %619 = arith.addf %616, %618 : vector<8x128xf32>
    %c0_317 = arith.constant 0 : index
    %c0_318 = arith.constant 0 : index
    %620 = vector.load %arg8[%c0_317, %c0_318] : memref<32x128xf32, #tpu.memory_space<vmem>>, vector<32x128xf32>
    %cst_319 = arith.constant dense<0.000000e+00> : vector<8x128xf32>
    %621 = tpu.matmul %607, %620, %cst_319 {dimension_numbers = #tpu.dot_dimension_numbers<[1], [0], [0], [1], [0, 0, 1, 1], [], []>} : vector<8x32xf32>, vector<32x128xf32>, vector<8x128xf32> -> vector<8x128xf32>
    %622 = arith.addf %619, %621 : vector<8x128xf32>
    %623 = arith.negf %622 : vector<8x128xf32>
    %624 = math.exp %623 : vector<8x128xf32>
    %cst_320 = arith.constant 1.000000e+00 : f32
    %625 = vector.broadcast %cst_320 : f32 to vector<8x128xf32>
    %626 = arith.addf %625, %624 : vector<8x128xf32>
    %627 = arith.divf %625, %626 : vector<8x128xf32>
    %628 = vector.extract_strided_slice %622 {offsets = [0, 64], sizes = [8, 32], strides = [1, 1]} : vector<8x128xf32> to vector<8x32xf32>
    %629 = math.tanh %628 : vector<8x32xf32>
    %630 = vector.extract_strided_slice %627 {offsets = [0, 32], sizes = [8, 32], strides = [1, 1]} : vector<8x128xf32> to vector<8x32xf32>
    %631 = arith.mulf %630, %534 : vector<8x32xf32>
    %632 = vector.extract_strided_slice %627 {offsets = [0, 0], sizes = [8, 32], strides = [1, 1]} : vector<8x128xf32> to vector<8x32xf32>
    %633 = arith.mulf %632, %629 : vector<8x32xf32>
    %634 = arith.addf %631, %633 : vector<8x32xf32>
    %635 = vector.extract_strided_slice %627 {offsets = [0, 96], sizes = [8, 32], strides = [1, 1]} : vector<8x128xf32> to vector<8x32xf32>
    %636 = math.tanh %634 : vector<8x32xf32>
    %637 = arith.mulf %635, %636 : vector<8x32xf32>
    %c0_321 = arith.constant 0 : index
    %c0_322 = arith.constant 0 : index
    %638 = vector.load %arg13[%c0_321, %c0_322] : memref<32x128xf32, #tpu.memory_space<vmem>>, vector<32x128xf32>
    %cst_323 = arith.constant dense<0.000000e+00> : vector<8x128xf32>
    %639 = tpu.matmul %637, %638, %cst_323 {dimension_numbers = #tpu.dot_dimension_numbers<[1], [0], [0], [1], [0, 0, 1, 1], [], []>} : vector<8x32xf32>, vector<32x128xf32>, vector<8x128xf32> -> vector<8x128xf32>
    %640 = vector.extract_strided_slice %639 {offsets = [0, 0], sizes = [8, 64], strides = [1, 1]} : vector<8x128xf32> to vector<8x64xf32>
    %641 = vector.extract_strided_slice %639 {offsets = [0, 64], sizes = [8, 64], strides = [1, 1]} : vector<8x128xf32> to vector<8x64xf32>
    %c0_324 = arith.constant 0 : index
    %c0_325 = arith.constant 0 : index
    %642 = vector.load %arg9[%c0_324, %c0_325] : memref<2x32xf32, #tpu.memory_space<vmem>>, vector<1x32xf32>
    %643 = vector.broadcast %642 : vector<1x32xf32> to vector<8x32xf32>
    %644 = arith.mulf %637, %643 : vector<8x32xf32>
    %cst_326 = arith.constant dense<0.000000e+00> : vector<8xf32>
    %645 = vector.multi_reduction <add>, %644, %cst_326 [1] : vector<8x32xf32> to vector<8xf32>
    %646 = vector.shape_cast %645 : vector<8xf32> to vector<8x1xf32>
    %c0_327 = arith.constant 0 : index
    %c0_328 = arith.constant 0 : index
    %647 = vector.load %arg10[%c0_327, %c0_328] : memref<1x2xf32, #tpu.memory_space<vmem>>, vector<1x1xf32>
    %648 = vector.broadcast %647 : vector<1x1xf32> to vector<8x1xf32>
    %649 = arith.addf %646, %648 : vector<8x1xf32>
    %c1_329 = arith.constant 1 : index
    %c0_330 = arith.constant 0 : index
    %650 = vector.load %arg9[%c1_329, %c0_330] : memref<2x32xf32, #tpu.memory_space<vmem>>, vector<1x32xf32>
    %651 = vector.broadcast %650 : vector<1x32xf32> to vector<8x32xf32>
    %652 = arith.mulf %637, %651 : vector<8x32xf32>
    %cst_331 = arith.constant dense<0.000000e+00> : vector<8xf32>
    %653 = vector.multi_reduction <add>, %652, %cst_331 [1] : vector<8x32xf32> to vector<8xf32>
    %654 = vector.shape_cast %653 : vector<8xf32> to vector<8x1xf32>
    %c0_332 = arith.constant 0 : index
    %c1_333 = arith.constant 1 : index
    %655 = vector.load %arg10[%c0_332, %c1_333] : memref<1x2xf32, #tpu.memory_space<vmem>>, vector<1x1xf32>
    %656 = vector.broadcast %655 : vector<1x1xf32> to vector<8x1xf32>
    %657 = arith.addf %654, %656 : vector<8x1xf32>
    %658 = arith.addf %558, %649 : vector<8x1xf32>
    %659 = arith.addf %559, %657 : vector<8x1xf32>
    %c0_334 = arith.constant 0 : index
    %c0_335 = arith.constant 0 : index
    %660 = vector.load %arg11[%c0_334, %c0_335] : memref<2x64xf32, #tpu.memory_space<vmem>>, vector<1x64xf32>
    %661 = vector.broadcast %658 : vector<8x1xf32> to vector<8x64xf32>
    %662 = vector.broadcast %660 : vector<1x64xf32> to vector<8x64xf32>
    %663 = arith.mulf %661, %662 : vector<8x64xf32>
    %c1_336 = arith.constant 1 : index
    %c0_337 = arith.constant 0 : index
    %664 = vector.load %arg11[%c1_336, %c0_337] : memref<2x64xf32, #tpu.memory_space<vmem>>, vector<1x64xf32>
    %665 = vector.broadcast %659 : vector<8x1xf32> to vector<8x64xf32>
    %666 = vector.broadcast %664 : vector<1x64xf32> to vector<8x64xf32>
    %667 = arith.mulf %665, %666 : vector<8x64xf32>
    %668 = arith.addf %663, %667 : vector<8x64xf32>
    %669 = arith.addf %668, %640 : vector<8x64xf32>
    %c0_338 = arith.constant 0 : index
    %c0_339 = arith.constant 0 : index
    %670 = vector.load %arg12[%c0_338, %c0_339] : memref<1x64xf32, #tpu.memory_space<vmem>>, vector<1x64xf32>
    %671 = vector.broadcast %670 : vector<1x64xf32> to vector<8x64xf32>
    %672 = arith.addf %669, %671 : vector<8x64xf32>
    %673 = vector.shape_cast %672 : vector<8x64xf32> to vector<1x8x64xf32>
    %674 = vector.shape_cast %668 : vector<8x64xf32> to vector<8x1x64xf32>
    %675 = vector.broadcast %673 : vector<1x8x64xf32> to vector<8x8x64xf32>
    %676 = vector.broadcast %674 : vector<8x1x64xf32> to vector<8x8x64xf32>
    %677 = arith.subf %675, %676 : vector<8x8x64xf32>
    %cst_340 = arith.constant 0.000000e+00 : f32
    %678 = vector.broadcast %cst_340 : f32 to vector<8x8x64xf32>
    %679 = arith.maximumf %677, %678 : vector<8x8x64xf32>
    %680 = vector.shape_cast %679 : vector<8x8x64xf32> to vector<64x64xf32>
    %c0_341 = arith.constant 0 : index
    %c0_342 = arith.constant 0 : index
    %681 = vector.load %arg14[%c0_341, %c0_342] : memref<64x32xf32, #tpu.memory_space<vmem>>, vector<64x32xf32>
    %cst_343 = arith.constant dense<0.000000e+00> : vector<64x32xf32>
    %682 = tpu.matmul %680, %681, %cst_343 {dimension_numbers = #tpu.dot_dimension_numbers<[1], [0], [0], [1], [0, 0, 1, 1], [], []>} : vector<64x64xf32>, vector<64x32xf32>, vector<64x32xf32> -> vector<64x32xf32>
    %c0_344 = arith.constant 0 : index
    %c0_345 = arith.constant 0 : index
    %683 = vector.load %arg15[%c0_344, %c0_345] : memref<1x32xf32, #tpu.memory_space<vmem>>, vector<1x32xf32>
    %684 = vector.broadcast %683 : vector<1x32xf32> to vector<64x32xf32>
    %685 = arith.addf %682, %684 : vector<64x32xf32>
    %cst_346 = arith.constant 0.000000e+00 : f32
    %686 = vector.broadcast %cst_346 : f32 to vector<64x32xf32>
    %687 = arith.maximumf %685, %686 : vector<64x32xf32>
    %c0_347 = arith.constant 0 : index
    %c0_348 = arith.constant 0 : index
    %688 = vector.load %arg5[%c0_347, %c0_348] : memref<64x1xf32, #tpu.memory_space<vmem>>, vector<64x1xf32>
    %689 = vector.broadcast %688 : vector<64x1xf32> to vector<64x32xf32>
    %690 = arith.mulf %687, %689 : vector<64x32xf32>
    %691 = vector.shape_cast %690 : vector<64x32xf32> to vector<8x8x32xf32>
    %cst_349 = arith.constant dense<0xFF800000> : vector<8x32xf32>
    %692 = vector.multi_reduction <maximumf>, %691, %cst_349 [1] : vector<8x8x32xf32> to vector<8x32xf32>
    %c0_350 = arith.constant 0 : index
    %c0_351 = arith.constant 0 : index
    %693 = vector.load %arg16[%c0_350, %c0_351] : memref<32x64xf32, #tpu.memory_space<vmem>>, vector<32x64xf32>
    %cst_352 = arith.constant dense<0.000000e+00> : vector<8x64xf32>
    %694 = tpu.matmul %692, %693, %cst_352 {dimension_numbers = #tpu.dot_dimension_numbers<[1], [0], [0], [1], [0, 0, 1, 1], [], []>} : vector<8x32xf32>, vector<32x64xf32>, vector<8x64xf32> -> vector<8x64xf32>
    %695 = arith.addf %641, %694 : vector<8x64xf32>
    %c0_353 = arith.constant 0 : index
    %c0_354 = arith.constant 0 : index
    %696 = vector.load %arg17[%c0_353, %c0_354] : memref<1x64xf32, #tpu.memory_space<vmem>>, vector<1x64xf32>
    %697 = vector.broadcast %696 : vector<1x64xf32> to vector<8x64xf32>
    %698 = arith.addf %695, %697 : vector<8x64xf32>
    %cst_355 = arith.constant 0.000000e+00 : f32
    %699 = vector.broadcast %cst_355 : f32 to vector<8x64xf32>
    %700 = arith.maximumf %698, %699 : vector<8x64xf32>
    %c0_356 = arith.constant 0 : index
    %c0_357 = arith.constant 0 : index
    %701 = vector.load %arg18[%c0_356, %c0_357] : memref<64x32xf32, #tpu.memory_space<vmem>>, vector<64x32xf32>
    %cst_358 = arith.constant dense<0.000000e+00> : vector<8x32xf32>
    %702 = tpu.matmul %700, %701, %cst_358 {dimension_numbers = #tpu.dot_dimension_numbers<[1], [0], [0], [1], [0, 0, 1, 1], [], []>} : vector<8x64xf32>, vector<64x32xf32>, vector<8x32xf32> -> vector<8x32xf32>
    %c0_359 = arith.constant 0 : index
    %c0_360 = arith.constant 0 : index
    %703 = vector.load %arg19[%c0_359, %c0_360] : memref<1x32xf32, #tpu.memory_space<vmem>>, vector<1x32xf32>
    %704 = vector.broadcast %703 : vector<1x32xf32> to vector<8x32xf32>
    %705 = arith.addf %702, %704 : vector<8x32xf32>
    %cst_361 = arith.constant 0.000000e+00 : f32
    %706 = vector.broadcast %cst_361 : f32 to vector<8x32xf32>
    %707 = arith.maximumf %705, %706 : vector<8x32xf32>
    %c0_362 = arith.constant 0 : index
    %c0_363 = arith.constant 0 : index
    %708 = vector.load %arg6[%c0_362, %c0_363] : memref<2x128xf32, #tpu.memory_space<vmem>>, vector<1x128xf32>
    %709 = vector.broadcast %649 : vector<8x1xf32> to vector<8x128xf32>
    %710 = vector.broadcast %708 : vector<1x128xf32> to vector<8x128xf32>
    %711 = arith.mulf %709, %710 : vector<8x128xf32>
    %c1_364 = arith.constant 1 : index
    %c0_365 = arith.constant 0 : index
    %712 = vector.load %arg6[%c1_364, %c0_365] : memref<2x128xf32, #tpu.memory_space<vmem>>, vector<1x128xf32>
    %713 = vector.broadcast %657 : vector<8x1xf32> to vector<8x128xf32>
    %714 = vector.broadcast %712 : vector<1x128xf32> to vector<8x128xf32>
    %715 = arith.mulf %713, %714 : vector<8x128xf32>
    %716 = arith.addf %711, %715 : vector<8x128xf32>
    %c0_366 = arith.constant 0 : index
    %c0_367 = arith.constant 0 : index
    %717 = vector.load %arg7[%c0_366, %c0_367] : memref<1x128xf32, #tpu.memory_space<vmem>>, vector<1x128xf32>
    %718 = vector.broadcast %717 : vector<1x128xf32> to vector<8x128xf32>
    %719 = arith.addf %716, %718 : vector<8x128xf32>
    %c0_368 = arith.constant 0 : index
    %c0_369 = arith.constant 0 : index
    %720 = vector.load %arg8[%c0_368, %c0_369] : memref<32x128xf32, #tpu.memory_space<vmem>>, vector<32x128xf32>
    %cst_370 = arith.constant dense<0.000000e+00> : vector<8x128xf32>
    %721 = tpu.matmul %707, %720, %cst_370 {dimension_numbers = #tpu.dot_dimension_numbers<[1], [0], [0], [1], [0, 0, 1, 1], [], []>} : vector<8x32xf32>, vector<32x128xf32>, vector<8x128xf32> -> vector<8x128xf32>
    %722 = arith.addf %719, %721 : vector<8x128xf32>
    %723 = arith.negf %722 : vector<8x128xf32>
    %724 = math.exp %723 : vector<8x128xf32>
    %cst_371 = arith.constant 1.000000e+00 : f32
    %725 = vector.broadcast %cst_371 : f32 to vector<8x128xf32>
    %726 = arith.addf %725, %724 : vector<8x128xf32>
    %727 = arith.divf %725, %726 : vector<8x128xf32>
    %728 = vector.extract_strided_slice %722 {offsets = [0, 64], sizes = [8, 32], strides = [1, 1]} : vector<8x128xf32> to vector<8x32xf32>
    %729 = math.tanh %728 : vector<8x32xf32>
    %730 = vector.extract_strided_slice %727 {offsets = [0, 32], sizes = [8, 32], strides = [1, 1]} : vector<8x128xf32> to vector<8x32xf32>
    %731 = arith.mulf %730, %634 : vector<8x32xf32>
    %732 = vector.extract_strided_slice %727 {offsets = [0, 0], sizes = [8, 32], strides = [1, 1]} : vector<8x128xf32> to vector<8x32xf32>
    %733 = arith.mulf %732, %729 : vector<8x32xf32>
    %734 = arith.addf %731, %733 : vector<8x32xf32>
    %735 = vector.extract_strided_slice %727 {offsets = [0, 96], sizes = [8, 32], strides = [1, 1]} : vector<8x128xf32> to vector<8x32xf32>
    %736 = math.tanh %734 : vector<8x32xf32>
    %737 = arith.mulf %735, %736 : vector<8x32xf32>
    %c0_372 = arith.constant 0 : index
    %c0_373 = arith.constant 0 : index
    %738 = vector.load %arg13[%c0_372, %c0_373] : memref<32x128xf32, #tpu.memory_space<vmem>>, vector<32x128xf32>
    %cst_374 = arith.constant dense<0.000000e+00> : vector<8x128xf32>
    %739 = tpu.matmul %737, %738, %cst_374 {dimension_numbers = #tpu.dot_dimension_numbers<[1], [0], [0], [1], [0, 0, 1, 1], [], []>} : vector<8x32xf32>, vector<32x128xf32>, vector<8x128xf32> -> vector<8x128xf32>
    %740 = vector.extract_strided_slice %739 {offsets = [0, 0], sizes = [8, 64], strides = [1, 1]} : vector<8x128xf32> to vector<8x64xf32>
    %741 = vector.extract_strided_slice %739 {offsets = [0, 64], sizes = [8, 64], strides = [1, 1]} : vector<8x128xf32> to vector<8x64xf32>
    %c0_375 = arith.constant 0 : index
    %c0_376 = arith.constant 0 : index
    %742 = vector.load %arg9[%c0_375, %c0_376] : memref<2x32xf32, #tpu.memory_space<vmem>>, vector<1x32xf32>
    %743 = vector.broadcast %742 : vector<1x32xf32> to vector<8x32xf32>
    %744 = arith.mulf %737, %743 : vector<8x32xf32>
    %cst_377 = arith.constant dense<0.000000e+00> : vector<8xf32>
    %745 = vector.multi_reduction <add>, %744, %cst_377 [1] : vector<8x32xf32> to vector<8xf32>
    %746 = vector.shape_cast %745 : vector<8xf32> to vector<8x1xf32>
    %c0_378 = arith.constant 0 : index
    %c0_379 = arith.constant 0 : index
    %747 = vector.load %arg10[%c0_378, %c0_379] : memref<1x2xf32, #tpu.memory_space<vmem>>, vector<1x1xf32>
    %748 = vector.broadcast %747 : vector<1x1xf32> to vector<8x1xf32>
    %749 = arith.addf %746, %748 : vector<8x1xf32>
    %c1_380 = arith.constant 1 : index
    %c0_381 = arith.constant 0 : index
    %750 = vector.load %arg9[%c1_380, %c0_381] : memref<2x32xf32, #tpu.memory_space<vmem>>, vector<1x32xf32>
    %751 = vector.broadcast %750 : vector<1x32xf32> to vector<8x32xf32>
    %752 = arith.mulf %737, %751 : vector<8x32xf32>
    %cst_382 = arith.constant dense<0.000000e+00> : vector<8xf32>
    %753 = vector.multi_reduction <add>, %752, %cst_382 [1] : vector<8x32xf32> to vector<8xf32>
    %754 = vector.shape_cast %753 : vector<8xf32> to vector<8x1xf32>
    %c0_383 = arith.constant 0 : index
    %c1_384 = arith.constant 1 : index
    %755 = vector.load %arg10[%c0_383, %c1_384] : memref<1x2xf32, #tpu.memory_space<vmem>>, vector<1x1xf32>
    %756 = vector.broadcast %755 : vector<1x1xf32> to vector<8x1xf32>
    %757 = arith.addf %754, %756 : vector<8x1xf32>
    %758 = arith.addf %658, %749 : vector<8x1xf32>
    %759 = arith.addf %659, %757 : vector<8x1xf32>
    %c0_385 = arith.constant 0 : index
    %c0_386 = arith.constant 0 : index
    %760 = vector.load %arg11[%c0_385, %c0_386] : memref<2x64xf32, #tpu.memory_space<vmem>>, vector<1x64xf32>
    %761 = vector.broadcast %758 : vector<8x1xf32> to vector<8x64xf32>
    %762 = vector.broadcast %760 : vector<1x64xf32> to vector<8x64xf32>
    %763 = arith.mulf %761, %762 : vector<8x64xf32>
    %c1_387 = arith.constant 1 : index
    %c0_388 = arith.constant 0 : index
    %764 = vector.load %arg11[%c1_387, %c0_388] : memref<2x64xf32, #tpu.memory_space<vmem>>, vector<1x64xf32>
    %765 = vector.broadcast %759 : vector<8x1xf32> to vector<8x64xf32>
    %766 = vector.broadcast %764 : vector<1x64xf32> to vector<8x64xf32>
    %767 = arith.mulf %765, %766 : vector<8x64xf32>
    %768 = arith.addf %763, %767 : vector<8x64xf32>
    %769 = arith.addf %768, %740 : vector<8x64xf32>
    %c0_389 = arith.constant 0 : index
    %c0_390 = arith.constant 0 : index
    %770 = vector.load %arg12[%c0_389, %c0_390] : memref<1x64xf32, #tpu.memory_space<vmem>>, vector<1x64xf32>
    %771 = vector.broadcast %770 : vector<1x64xf32> to vector<8x64xf32>
    %772 = arith.addf %769, %771 : vector<8x64xf32>
    %773 = vector.shape_cast %772 : vector<8x64xf32> to vector<1x8x64xf32>
    %774 = vector.shape_cast %768 : vector<8x64xf32> to vector<8x1x64xf32>
    %775 = vector.broadcast %773 : vector<1x8x64xf32> to vector<8x8x64xf32>
    %776 = vector.broadcast %774 : vector<8x1x64xf32> to vector<8x8x64xf32>
    %777 = arith.subf %775, %776 : vector<8x8x64xf32>
    %cst_391 = arith.constant 0.000000e+00 : f32
    %778 = vector.broadcast %cst_391 : f32 to vector<8x8x64xf32>
    %779 = arith.maximumf %777, %778 : vector<8x8x64xf32>
    %780 = vector.shape_cast %779 : vector<8x8x64xf32> to vector<64x64xf32>
    %c0_392 = arith.constant 0 : index
    %c0_393 = arith.constant 0 : index
    %781 = vector.load %arg14[%c0_392, %c0_393] : memref<64x32xf32, #tpu.memory_space<vmem>>, vector<64x32xf32>
    %cst_394 = arith.constant dense<0.000000e+00> : vector<64x32xf32>
    %782 = tpu.matmul %780, %781, %cst_394 {dimension_numbers = #tpu.dot_dimension_numbers<[1], [0], [0], [1], [0, 0, 1, 1], [], []>} : vector<64x64xf32>, vector<64x32xf32>, vector<64x32xf32> -> vector<64x32xf32>
    %c0_395 = arith.constant 0 : index
    %c0_396 = arith.constant 0 : index
    %783 = vector.load %arg15[%c0_395, %c0_396] : memref<1x32xf32, #tpu.memory_space<vmem>>, vector<1x32xf32>
    %784 = vector.broadcast %783 : vector<1x32xf32> to vector<64x32xf32>
    %785 = arith.addf %782, %784 : vector<64x32xf32>
    %cst_397 = arith.constant 0.000000e+00 : f32
    %786 = vector.broadcast %cst_397 : f32 to vector<64x32xf32>
    %787 = arith.maximumf %785, %786 : vector<64x32xf32>
    %c0_398 = arith.constant 0 : index
    %c0_399 = arith.constant 0 : index
    %788 = vector.load %arg5[%c0_398, %c0_399] : memref<64x1xf32, #tpu.memory_space<vmem>>, vector<64x1xf32>
    %789 = vector.broadcast %788 : vector<64x1xf32> to vector<64x32xf32>
    %790 = arith.mulf %787, %789 : vector<64x32xf32>
    %791 = vector.shape_cast %790 : vector<64x32xf32> to vector<8x8x32xf32>
    %cst_400 = arith.constant dense<0xFF800000> : vector<8x32xf32>
    %792 = vector.multi_reduction <maximumf>, %791, %cst_400 [1] : vector<8x8x32xf32> to vector<8x32xf32>
    %c0_401 = arith.constant 0 : index
    %c0_402 = arith.constant 0 : index
    %793 = vector.load %arg16[%c0_401, %c0_402] : memref<32x64xf32, #tpu.memory_space<vmem>>, vector<32x64xf32>
    %cst_403 = arith.constant dense<0.000000e+00> : vector<8x64xf32>
    %794 = tpu.matmul %792, %793, %cst_403 {dimension_numbers = #tpu.dot_dimension_numbers<[1], [0], [0], [1], [0, 0, 1, 1], [], []>} : vector<8x32xf32>, vector<32x64xf32>, vector<8x64xf32> -> vector<8x64xf32>
    %795 = arith.addf %741, %794 : vector<8x64xf32>
    %c0_404 = arith.constant 0 : index
    %c0_405 = arith.constant 0 : index
    %796 = vector.load %arg17[%c0_404, %c0_405] : memref<1x64xf32, #tpu.memory_space<vmem>>, vector<1x64xf32>
    %797 = vector.broadcast %796 : vector<1x64xf32> to vector<8x64xf32>
    %798 = arith.addf %795, %797 : vector<8x64xf32>
    %cst_406 = arith.constant 0.000000e+00 : f32
    %799 = vector.broadcast %cst_406 : f32 to vector<8x64xf32>
    %800 = arith.maximumf %798, %799 : vector<8x64xf32>
    %c0_407 = arith.constant 0 : index
    %c0_408 = arith.constant 0 : index
    %801 = vector.load %arg18[%c0_407, %c0_408] : memref<64x32xf32, #tpu.memory_space<vmem>>, vector<64x32xf32>
    %cst_409 = arith.constant dense<0.000000e+00> : vector<8x32xf32>
    %802 = tpu.matmul %800, %801, %cst_409 {dimension_numbers = #tpu.dot_dimension_numbers<[1], [0], [0], [1], [0, 0, 1, 1], [], []>} : vector<8x64xf32>, vector<64x32xf32>, vector<8x32xf32> -> vector<8x32xf32>
    %c0_410 = arith.constant 0 : index
    %c0_411 = arith.constant 0 : index
    %803 = vector.load %arg19[%c0_410, %c0_411] : memref<1x32xf32, #tpu.memory_space<vmem>>, vector<1x32xf32>
    %804 = vector.broadcast %803 : vector<1x32xf32> to vector<8x32xf32>
    %805 = arith.addf %802, %804 : vector<8x32xf32>
    %cst_412 = arith.constant 0.000000e+00 : f32
    %806 = vector.broadcast %cst_412 : f32 to vector<8x32xf32>
    %807 = arith.maximumf %805, %806 : vector<8x32xf32>
    %808 = tpu.concatenate %49, %57, %149, %157, %249, %257, %349, %357, %449, %457, %549, %557, %649, %657, %749, %757 in 1 : vector<8x1xf32>, vector<8x1xf32>, vector<8x1xf32>, vector<8x1xf32>, vector<8x1xf32>, vector<8x1xf32>, vector<8x1xf32>, vector<8x1xf32>, vector<8x1xf32>, vector<8x1xf32>, vector<8x1xf32>, vector<8x1xf32>, vector<8x1xf32>, vector<8x1xf32>, vector<8x1xf32>, vector<8x1xf32> -> vector<8x16xf32>
    %c0_413 = arith.constant 0 : index
    %c0_414 = arith.constant 0 : index
    %809 = vector.load %arg20[%c0_413, %c0_414] : memref<8x16xf32, #tpu.memory_space<vmem>>, vector<8x16xf32>
    tpu.vector_store %arg20[%c0_413, %c0_414], %808 {strides = array<i32>} : memref<8x16xf32, #tpu.memory_space<vmem>>, vector<8x16xf32>,
    %c0_415 = arith.constant 0 : index
    %c0_416 = arith.constant 0 : index
    %810 = vector.load %arg21[%c0_415, %c0_416] : memref<8x32xf32, #tpu.memory_space<vmem>>, vector<8x32xf32>
    tpu.vector_store %arg21[%c0_415, %c0_416], %807 {strides = array<i32>} : memref<8x32xf32, #tpu.memory_space<vmem>>, vector<8x32xf32>,
    return
  }
  func.func @transform_0(%arg0: i32) -> (i32, i32) {
    %c0_i32 = arith.constant 0 : i32
    %c0_i32_0 = arith.constant 0 : i32
    %c0_i32_1 = arith.constant 0 : i32
    return %c0_i32, %c0_i32_0 : i32, i32
  }
  func.func @transform_1(%arg0: i32) -> (i32, i32) {
    %c0_i32 = arith.constant 0 : i32
    %c0_i32_0 = arith.constant 0 : i32
    %c0_i32_1 = arith.constant 0 : i32
    return %c0_i32, %c0_i32_0 : i32, i32
  }
  func.func @transform_2(%arg0: i32) -> (i32, i32) {
    %c0_i32 = arith.constant 0 : i32
    %c0_i32_0 = arith.constant 0 : i32
    %c0_i32_1 = arith.constant 0 : i32
    return %c0_i32, %c0_i32_0 : i32, i32
  }
  func.func @transform_3(%arg0: i32) -> (i32, i32) {
    %c0_i32 = arith.constant 0 : i32
    %c0_i32_0 = arith.constant 0 : i32
    %c0_i32_1 = arith.constant 0 : i32
    return %c0_i32, %c0_i32_0 : i32, i32
  }
  func.func @transform_4(%arg0: i32) -> (i32, i32) {
    %c0_i32 = arith.constant 0 : i32
    %c0_i32_0 = arith.constant 0 : i32
    %c0_i32_1 = arith.constant 0 : i32
    return %c0_i32, %c0_i32_0 : i32, i32
  }
  func.func @transform_5(%arg0: i32) -> (i32, i32) {
    %c0_i32 = arith.constant 0 : i32
    %c0_i32_0 = arith.constant 0 : i32
    %c0_i32_1 = arith.constant 0 : i32
    return %c0_i32, %c0_i32_0 : i32, i32
  }
  func.func @transform_6(%arg0: i32) -> (i32, i32) {
    %c0_i32 = arith.constant 0 : i32
    %c0_i32_0 = arith.constant 0 : i32
    %c0_i32_1 = arith.constant 0 : i32
    return %c0_i32, %c0_i32_0 : i32, i32
  }
  func.func @transform_7(%arg0: i32) -> (i32, i32) {
    %c0_i32 = arith.constant 0 : i32
    %c0_i32_0 = arith.constant 0 : i32
    %c0_i32_1 = arith.constant 0 : i32
    return %c0_i32, %c0_i32_0 : i32, i32
  }
  func.func @transform_8(%arg0: i32) -> (i32, i32) {
    %c0_i32 = arith.constant 0 : i32
    %c0_i32_0 = arith.constant 0 : i32
    %c0_i32_1 = arith.constant 0 : i32
    return %c0_i32, %c0_i32_0 : i32, i32
  }
  func.func @transform_9(%arg0: i32) -> (i32, i32) {
    %c0_i32 = arith.constant 0 : i32
    %c0_i32_0 = arith.constant 0 : i32
    %c0_i32_1 = arith.constant 0 : i32
    return %c0_i32, %c0_i32_0 : i32, i32
  }
  func.func @transform_10(%arg0: i32) -> (i32, i32) {
    %c0_i32 = arith.constant 0 : i32
    %c0_i32_0 = arith.constant 0 : i32
    %c0_i32_1 = arith.constant 0 : i32
    return %c0_i32, %c0_i32_0 : i32, i32
  }
  func.func @transform_11(%arg0: i32) -> (i32, i32) {
    %c0_i32 = arith.constant 0 : i32
    %c0_i32_0 = arith.constant 0 : i32
    %c0_i32_1 = arith.constant 0 : i32
    return %c0_i32, %c0_i32_0 : i32, i32
  }
  func.func @transform_12(%arg0: i32) -> (i32, i32) {
    %c0_i32 = arith.constant 0 : i32
    %c0_i32_0 = arith.constant 0 : i32
    %c0_i32_1 = arith.constant 0 : i32
    return %c0_i32, %c0_i32_0 : i32, i32
  }
  func.func @transform_13(%arg0: i32) -> (i32, i32) {
    %c0_i32 = arith.constant 0 : i32
    %c0_i32_0 = arith.constant 0 : i32
    %c0_i32_1 = arith.constant 0 : i32
    return %c0_i32, %c0_i32_0 : i32, i32
  }
  func.func @transform_14(%arg0: i32) -> (i32, i32) {
    %c0_i32 = arith.constant 0 : i32
    %c0_i32_0 = arith.constant 0 : i32
    %c0_i32_1 = arith.constant 0 : i32
    return %c0_i32, %c0_i32_0 : i32, i32
  }
  func.func @transform_15(%arg0: i32) -> (i32, i32) {
    %c0_i32 = arith.constant 0 : i32
    %c0_i32_0 = arith.constant 0 : i32
    %c0_i32_1 = arith.constant 0 : i32
    return %c0_i32, %c0_i32_0 : i32, i32
  }
  func.func @transform_16(%arg0: i32) -> (i32, i32) {
    %c0_i32 = arith.constant 0 : i32
    %c0_i32_0 = arith.constant 0 : i32
    %c0_i32_1 = arith.constant 0 : i32
    return %c0_i32, %c0_i32_0 : i32, i32
  }
  func.func @transform_17(%arg0: i32) -> (i32, i32) {
    %c0_i32 = arith.constant 0 : i32
    %c0_i32_0 = arith.constant 0 : i32
    %c0_i32_1 = arith.constant 0 : i32
    return %c0_i32, %c0_i32_0 : i32, i32
  }
  func.func @transform_18(%arg0: i32) -> (i32, i32) {
    %c0_i32 = arith.constant 0 : i32
    %c0_i32_0 = arith.constant 0 : i32
    %c0_i32_1 = arith.constant 0 : i32
    return %c0_i32, %c0_i32_0 : i32, i32
  }
  func.func @transform_19(%arg0: i32) -> (i32, i32) {
    %c0_i32 = arith.constant 0 : i32
    %c0_i32_0 = arith.constant 0 : i32
    %c0_i32_1 = arith.constant 0 : i32
    return %c0_i32, %c0_i32_0 : i32, i32
  }
  func.func @transform_20(%arg0: i32) -> (i32, i32) {
    %c0_i32 = arith.constant 0 : i32
    %c0_i32_0 = arith.constant 0 : i32
    %c0_i32_1 = arith.constant 0 : i32
    return %c0_i32, %c0_i32_0 : i32, i32
  }
}

</mosaic_0001>

<bundles_post_ra>
// kernel: decoder_forward.1
= control target key start
LH: loop header
LB: loop body
LE: loop exit
PB: predicated region body
PF: predicated region fallthrough
CT: control target
= control target key end

     0   :  { %s9105_s0 = inlined_call_operand.vmem [shape: f32[8,2], index: 0, kind: input, shape index: {}]   ;;  %s9106_s1 = inlined_call_operand.vmem [shape: f32[8,2], index: 1, kind: input, shape index: {}]   ;;  %s9107_s2 = inlined_call_operand.vmem [shape: f32[8,32], index: 2, kind: input, shape index: {}]   ;;  %s9108_s3 = inlined_call_operand.vmem [shape: f32[8,32], index: 3, kind: input, shape index: {}]   ;;  %s9109_s4 = inlined_call_operand.vmem [shape: f32[64,1], index: 4, kind: input, shape index: {}]   ;;  %s9110_s5 = inlined_call_operand.vmem [shape: f32[2,128], index: 5, kind: input, shape index: {}]   ;;  %s9111_s6 = inlined_call_operand.vmem [shape: f32[1,128], index: 6, kind: input, shape index: {}]   ;;  %s9112_s7 = inlined_call_operand.vmem [shape: f32[32,128], index: 7, kind: input, shape index: {}]   ;;  %s9113_s8 = inlined_call_operand.vmem [shape: f32[2,32], index: 8, kind: input, shape index: {}]   ;;  %s9114_s9 = inlined_call_operand.vmem [shape: f32[1,2], index: 9, kind: input, shape index: {}]   ;;  %s9115_s10 = inlined_call_operand.vmem [shape: f32[2,64], index: 10, kind: input, shape index: {}]   ;;  %s9116_s11 = inlined_call_operand.vmem [shape: f32[1,64], index: 11, kind: input, shape index: {}]   ;;  %s9117_s12 = inlined_call_operand.vmem [shape: f32[32,128], index: 12, kind: input, shape index: {}]   ;;  %s9118_s13 = inlined_call_operand.vmem [shape: f32[64,32], index: 13, kind: input, shape index: {}]   ;;  %s9119_s14 = inlined_call_operand.vmem [shape: f32[1,32], index: 14, kind: input, shape index: {}]   ;;  %s9120_s15 = inlined_call_operand.vmem [shape: f32[32,64], index: 15, kind: input, shape index: {}]   ;;  %s9121_s16 = inlined_call_operand.vmem [shape: f32[1,64], index: 16, kind: input, shape index: {}]   ;;  %s9122_s17 = inlined_call_operand.vmem [shape: f32[64,32], index: 17, kind: input, shape index: {}]   ;;  %s9123_s18 = inlined_call_operand.vmem [shape: f32[1,32], index: 18, kind: input, shape index: {}]   ;;  %s9124_s19 = inlined_call_operand.vmem [shape: f32[8,16], index: 19, kind: output, shape index: {0}]   ;;  %s9125_s20 = inlined_call_operand.hbm [shape: f32[8,32], index: 20, kind: output, shape index: {1}]  }
   0x1   :  { %9188 = sst [smem:[#allocation28_spill]] %s9105_s0 }
   0x2   :  { %9189 = sst [smem:[#allocation29_spill]] %s9106_s1 }
   0x3   :  { %9190 = sst [smem:[#allocation30_spill]] %s9107_s2 }
   0x4   :  { %9191 = sst [smem:[#allocation31_spill]] %s9108_s3 }
   0x5   :  { %9192 = sst [smem:[#allocation32_spill]] %s9109_s4 }
   0x6   :  { %v99_v0 = vld [vmem:[%s9112_s7] sm:$0xff]  ;;  %v100_v1 = vld [vmem:[%s9112_s7 + $0x8] sm:$0xff]  ;;  %v101_v2 = vld [vmem:[%s9112_s7 + $0x10] sm:$0xff]  ;;  %v9131_v3 = vmov 0.0|0.0   ;;  %vm7512_vm0 = vmmov 0   ;;  %v9133_v6 = vmov 0.0  }
   0x7   :  { %7002 = vmatprep.subr.bf16.mxu0 %v9131_v3  ;;  %v7643_v4 = vpack.c.bf16 %v100_v1, %v99_v0  ;;  %v102_v5 = vld [vmem:[%s9112_s7 + $0x18] sm:$0xff]  ;;  %6370 = vmatprep.mubr.msk.f32.mxu0 %vm7512_vm0, %v9133_v6  ;;  %s9194_s4 = sld [smem:[#allocation29_spill]]  ;;  %v9129_v8 = vmov 0  }
   0x8   :  { %7387 = vset.pattern.permute.xlu0 %v9129_v8  ;;  %7008 = vmatprep.subr.bf16.mxu1 %v9131_v3 }
   0x9   :  { %9193 = vst [vmem:[#allocation5_spill] sm:$0xff] %v7643_v4 }
   0xd   :  { %v68_v7 = vld [vmem:[%s9194_s4] sm:$0xff] }
   0xe   :  { %26 = vsyncpa [#allocation3], 0  ;;  %7004 = vmatpush3.bf16.msra.mxu0 %v7643_v4  ;;  %v7656_v9 = vpack.c.bf16 %v102_v5, %v101_v2  ;;  %72 = vperm.xlu0 %7387, %v68_v7   ;;  %v9127_v10 = vmov 1   ;;  %s9196_s30 = sld [smem:[#allocation30_spill]]  ;;  %vm103_vm1 = vcmask 261120   ;;  %s7516_s2 = smov 64  }
   0xf   :  { %7005 = vmatprep.subr.bf16.mxu0 %v9131_v3  ;;  %6381 = vmatprep.mubr.msk.f32.mxu1 %vm7512_vm0, %v9133_v6  ;;  %v7672_v13 = vld [vmem:[%s9110_s5] ss:$0 sm:$0xff]  ;;  %v7677_v14 = vld [vmem:[%s9110_s5 + $0x1] ss:$0 sm:$0xff]  ;;  %s9197_s26 = sld [smem:[#allocation31_spill]]  ;;  %s7517_s27 = smov 32  }
  0x10   :  { %9195 = vst [vmem:[#allocation6_spill] sm:$0xff] %v7656_v9  ;;  %7390 = vset.pattern.permute.xlu1 %v9127_v10  ;;  %v7684_v19 = vld [vmem:[%s9111_s6] ss:$0 sm:$0xff]  ;;  %v207_v37 = vld [vmem:[%s9117_s12 + $0x8] sm:$0xff]  ;;  %v208_v38 = vld [vmem:[%s9117_s12 + $0x10] sm:$0xff]  ;;  %s7518_s24 = smov 96  }
  0x11   :  { %v206_v36 = vld [vmem:[%s9117_s12] sm:$0xff]  ;;  %v209_v40 = vld [vmem:[%s9117_s12 + $0x18] sm:$0xff]  ;;  %s9198_s4 = sld [smem:[#allocation28_spill]]  ;;  %v469_v5 = vld [vmem:[%s9118_s13 + $0x8] sm:$0xff]  ;;  %vm483_vm2 = vcmask 523264   ;;  %vm745_vm3 = vcmask 1041409  }
  0x12   :  { %7007 = vmatpush3.bf16.msra.mxu0 %v7656_v9  ;;  %7388 = vset.pattern.permute.xlu0 %v9127_v10  ;;  %v7705_v39 = vpack.c.bf16 %v207_v37, %v206_v36  ;;  %v7711_v41 = vpack.c.bf16 %v209_v40, %v208_v38  ;;  %v5932_v43 = vld [vmem:[%s9113_s8] ss:$0 sm:$0xff]  ;;  %v5934_v47 = vld [vmem:[%s9113_s8 + $0x1] ss:$0 sm:$0xff]  ;;  %vm747_vm4 = vcmask 1042434   ;;  %vm749_vm5 = vcmask 1043459  }
  0x13   :  { %82 = vperm.xlu0 %7388, %v68_v7   ;;  %v7740_v56 = vld [vmem:[%s9114_s9] ss:$0 sm:$0xff]  ;;  %vm751_vm6 = vcmask 1044484   ;;  %vm753_vm7 = vcmask 1045509   ;;  %vm755_vm8 = vcmask 1046534   ;;  %vm757_vm9 = vcmask 1047559  }
  0x14   :  { %v65_v11 = vld [vmem:[%s9196_s30] sm:$0xff]  ;;  %7010 = vmatpush3.bf16.msra.mxu1 %v7705_v39  ;;  %s9200_s30 = sld [smem:[#allocation32_spill]]  ;;  %s7522_s12 = smov 6   ;;  %vm5875_vm10 = vcmask 7168   ;;  %vm5877_vm11 = vcmask 15360   ;;  %vm5879_vm12 = vcmask 23552  }
  0x15   :  { %6371 = vmatmul.mubr.msk.f32.vlgmr.msra.gmra.mrb[0].mxu0 %vm103_vm1, %v65_v11  ;;  %v66_v25 = vld [vmem:[%s9197_s26] sm:$0xff]  ;;  %7011 = vmatprep.subr.bf16.mxu1 %v9131_v3  ;;  %s7523_s25 = smov 8   ;;  %s7524_s8 = smov 10   ;;  %vm5881_vm13 = vcmask 31744   ;;  %vm5883_vm14 = vcmask 39936   ;;  %vm5885_vm15 = vcmask 48128  }
  0x16   :  { %v468_v2 = vld [vmem:[%s9118_s13] sm:$0xff]  ;;  %s7525_s3 = smov 12  }
  0x17   :  { %7389 = vset.pattern.permute.xlu0 %v9129_v8  ;;  %v67_v58 = vld [vmem:[%s9198_s4] sm:$0xff]  ;;  %v7770_v11 = vpack.c.bf16 %v469_v5, %v468_v2 }
  0x18   :  { %7013 = vmatpush3.bf16.msra.mxu1 %v7711_v41  ;;  %v7837_v38 = vld [vmem:[%s9115_s10] ss:$0 sm:$0xff] }
  0x19   :  { %7030 = vmatprep.subr.bf16.mxu1 %v9131_v3  ;;  %7015 = vmatprep.subr.bf16.mxu0 %v7770_v11 }
  0x1a   :  { %v627_v61 = vld [vmem:[%s9200_s30 + $0x30] sm:$0xff]  ;;  %7017 = vmatpush3.bf16.msra.mxu0 %v7770_v11 }
  0x8d   :  { %v73_v12 = vpop.permute.xlu0 %72 }
  0x8e   :  { %v79_v16 = vmul.f32 %v7672_v13, %v73_v12  ;;  %v470_v12 = vld [vmem:[%s9118_s13 + $0x10] sm:$0xff] }
  0x92   :  { %v83_v15 = vpop.permute.xlu0 %82 }
  0x93   :  { %v89_v17 = vmul.f32 %v7677_v14, %v83_v15  ;;  %v471_v15 = vld [vmem:[%s9118_s13 + $0x18] sm:$0xff] }
  0x95   :  { %v90_v18 = vadd.f32 %v89_v17, %v79_v16  ;;  %v621_v16 = vld [vmem:[%s9200_s30] sm:$0xff]  ;;  %v7784_v17 = vpack.c.bf16 %v471_v15, %v470_v12 }
  0x97   :  { %v98_v20 = vadd.f32 %v7684_v19, %v90_v18  ;;  %7019 = vmatprep.subr.bf16.mxu0 %v7784_v17  ;;  %v472_v18 = vld [vmem:[%s9118_s13 + $0x20] sm:$0xff] }
  0x98   :  { %7021 = vmatpush3.bf16.msra.mxu0 %v7784_v17 }
  0xe8   :  { %v173_v21 = vpop.f32.mrb[0].mxu0 }
  0xe9   :  { %v177_v22 = vadd.f32 %v173_v21, %v98_v20  ;;  %v6372_v23 = vpop.f32.mrb[1].mxu0  ;;  %v473_v20 = vld [vmem:[%s9118_s13 + $0x28] sm:$0xff] }
  0xea   :  { %v622_v21 = vld [vmem:[%s9200_s30 + $0x8] sm:$0xff]  ;;  %v474_v23 = vld [vmem:[%s9118_s13 + $0x30] sm:$0xff] }
  0xeb   :  { %7404 = vtanh.f32 %v177_v22  ;;  %v5930_v26 = vmul.f32 -1.442695, %v177_v22  ;;  %v7798_v22 = vpack.c.bf16 %v473_v20, %v472_v18 }
  0xed   :  { %7406 = vpow2.f32 %v5930_v26  ;;  %7023 = vmatprep.subr.bf16.mxu0 %v7798_v22 }
  0xee   :  { %7025 = vmatpush3.bf16.msra.mxu0 %v7798_v22 }
  0xf5   :  { %v7405_v24 = vpop.eup %7404 }
  0xf6   :  { %191 = vrot.lane.b32.xlu1 %v7405_v24, %s7516_s2  ;;  %v475_v24 = vld [vmem:[%s9118_s13 + $0x38] sm:$0xff]  ;;  %s7526_s13 = smov 14  }
  0xf7   :  { %v7407_v27 = vpop.eup %7406  ;;  %v7811_v26 = vpack.c.bf16 %v475_v24, %v474_v23 }
  0xf8   :  { %v181_v28 = vadd.f32 1.0, %v7407_v27  ;;  %v624_v27 = vld [vmem:[%s9200_s30 + $0x18] sm:$0xff] }
  0xf9   :  { %7027 = vmatprep.subr.bf16.mxu0 %v7811_v26 }
  0xfa   :  { %186 = vrot.lane.b32.xlu1 %v66_v25, %s7517_s27  ;;  %7408 = vrcp.f32 %v181_v28  ;;  %v623_v25 = vld [vmem:[%s9200_s30 + $0x10] sm:$0xff]  ;;  %7029 = vmatpush3.bf16.msra.mxu0 %v7811_v26  ;;  %v625_v28 = vld [vmem:[%s9200_s30 + $0x20] sm:$0xff] }
  0xfb   :  { %7048 = vmatprep.subr.bf16.mxu0 %v9131_v3 }
 0x104   :  { %v7409_v29 = vpop.eup %7408 }
 0x168   :  { %v192_v30 = vpop.permute.xlu1 %191 }
 0x169   :  { %v194_v31 = vmul.f32 %v7409_v29, %v192_v30  ;;  %v628_v30 = vld [vmem:[%s9200_s30 + $0x38] sm:$0xff] }
 0x16b   :  { %196 = vrot.lane.b32.xlu1 %v194_v31, %s7517_s27  ;;  %v5948_v31 = vld [vmem:[%s9121_s16] ss:$0 sm:$0xff] }
 0x16c   :  { %v187_v32 = vpop.permute.xlu1 %186 }
 0x16d   :  { %v189_v33 = vmul.f32 %v7409_v29, %v187_v32  ;;  %v7519_v32 = vmov 1966171168  }
 0x1dd   :  { %v197_v34 = vpop.permute.xlu1 %196 }
 0x1de   :  { %v7693_v35 = vadd.f32 %v197_v34, %v189_v33  ;;  %v365_v33 = vunpack.c.l.s4 %v7519_v32  ;;  %v367_v34 = vlaneseq }
 0x1e0   :  { %7410 = vtanh.f32 %v7693_v35  ;;  %v366_v36 = vunpack.c.0.s8 %v365_v33  ;;  %v368_v37 = vshrl.u32 %v367_v34, 7 }
 0x1ea   :  { %v7411_v42 = vpop.eup %7410 }
 0x1eb   :  { %202 = vrot.lane.b32.xlu0 %v7411_v42, %s7516_s2  ;;  %v7842_v42 = vld [vmem:[%s9115_s10 + $0x1] ss:$0 sm:$0xff] }
 0x1ef   :  { %291 = vrot.lane.b32.xlu0 %v5932_v43, %s7518_s24 }
 0x25d   :  { %v203_v44 = vpop.permute.xlu0 %202 }
 0x25e   :  { %v205_v45 = vmul.f32 %v7409_v29, %v203_v44  ;;  %v626_v29 = vld [vmem:[%s9200_s30 + $0x28] sm:$0xff] }
 0x260   :  { %211 = vrot.lane.b32.xlu1 %v205_v45, %s7517_s27 }
 0x261   :  { %v7721_v46 = vpop.permute.xlu0 %291 }
 0x262   :  { %v294_v48 = vmul.f32 %v7721_v46, %v205_v45 }
 0x264   :  { %316 = vrot.lane.b32.xlu1 %v5934_v47, %s7518_s24  ;;  %296 = vrot.lane.b32.xlu0 %v294_v48, %s7517_s27 }
 0x2d2   :  { %v212_v49 = vpop.permute.xlu1 %211 }
 0x2d3   :  { %6382 = vmatmul.mubr.msk.f32.vlgmr.msra.gmra.mrb[0].mxu1 %vm103_vm1, %v212_v49  ;;  %v7851_v49 = vld [vmem:[%s9116_s11] ss:$0 sm:$0xff] }
 0x2d4   :  { %6420 = vmatprep.mubr.msk.f32.mxu1 %vm7512_vm0, %v9133_v6 }
 0x2d6   :  { %v7731_v50 = vpop.permute.xlu1 %316  ;;  %v297_v51 = vpop.permute.xlu0 %296 }
 0x2d7   :  { %v299_v52 = vsel %vm103_vm1, %v297_v51, 0.0  ;;  %v319_v53 = vmul.f32 %v7731_v50, %v205_v45  ;;  %v7845_v45 = vsub.s32 %v366_v36, %v368_v37  ;;  %v7853_v51 = vsub.s32 0, %v368_v37 }
 0x2d8   :  { %300 = vadd.xlane.f32.xlu0 %v299_v52 }
 0x2d9   :  { %321 = vrot.lane.b32.xlu1 %v319_v53, %s7517_s27  ;;  %9202 = vst [vmem:[#allocation9_spill] sm:$0xff] %v7845_v45  ;;  %9203 = vst [vmem:[#allocation10_spill] sm:$0xff] %v7853_v51 }
 0x34b   :  { %v322_v54 = vpop.permute.xlu1 %321 }
 0x34c   :  { %v324_v55 = vsel %vm103_vm1, %v322_v54, 0.0 }
 0x34d   :  { %325 = vadd.xlane.f32.xlu1 %v324_v55 }
 0x365   :  { %v301_v57 = vpop.xlane.xlu0 %300 }
 0x366   :  { %v7746_v59 = vadd.f32 %v7740_v56, %v301_v57 }
 0x368   :  { %9199 = vst [vmem:[#allocation7_spill] sm:$0xff] %v7746_v59  ;;  %v7749_v60 = vadd.f32 %v7746_v59, %v67_v58 }
 0x36a   :  { %333 = vperm.xlu0 %7389, %v7749_v60  }
 0x36e   :  { %661 = vperm.xlu0 %7389, %v627_v61  }
 0x372   :  { %7392 = vset.pattern.permute.xlu0 %v9127_v10 }
 0x3a6   :  { %v7756_v62 = vpop.f32.mrb[0].mxu1 }
 0x3a7   :  { %v6383_v63 = vpop.f32.mrb[1].mxu1 }
 0x3da   :  { %v326_v0 = vpop.xlane.xlu1 %325 }
 0x3db   :  { %v7759_v1 = vadd.f32 %v7740_v56, %v326_v0 }
 0x3dd   :  { %9201 = vst [vmem:[#allocation8_spill] sm:$0xff] %v7759_v1  ;;  %v7768_v7 = vadd.f32 %v7759_v1, %v67_v58 }
 0x3df   :  { %344 = vperm.xlu1 %7390, %v7768_v7  }
 0x3e3   :  { %7391 = vset.pattern.permute.xlu1 %v9129_v8 }
 0x3e4   :  { %631 = vperm.xlu1 %7391, %v621_v16  }
 0x3e8   :  { %636 = vperm.xlu1 %7391, %v622_v21  }
 0x3e9   :  { %v334_v40 = vpop.permute.xlu0 %333 }
 0x3ea   :  { %v340_v44 = vmul.f32 %v7837_v38, %v334_v40 }
 0x3ec   :  { %641 = vperm.xlu1 %7391, %v623_v25  }
 0x3f0   :  { %646 = vperm.xlu1 %7391, %v624_v27  }
 0x3f4   :  { %651 = vperm.xlu1 %7391, %v625_v28  }
 0x3f8   :  { %656 = vperm.xlu1 %7391, %v626_v29  }
 0x3fc   :  { %666 = vperm.xlu1 %7391, %v628_v30  }
 0x400   :  { %842 = vrot.lane.b32.xlu1 %v5948_v31, %s7516_s2 }
 0x404   :  { %940 = vperm.xlu1 %7391, %v7746_v59  }
 0x408   :  { %7394 = vset.pattern.permute.xlu1 %v9127_v10 }
 0x45e   :  { %v345_v43 = vpop.permute.xlu1 %344 }
 0x45f   :  { %v351_v47 = vmul.f32 %v7842_v42, %v345_v43 }
 0x461   :  { %v352_v48 = vadd.f32 %v351_v47, %v340_v44 }
 0x463   :  { %v353_v52 = vadd.f32 %v352_v48, %v7756_v62  ;;  %v363_v53 = vcombine.high %v352_v48, %v352_v48  ;;  %v370_v54 = vrot.slane %v352_v48, %v7845_v45 }
 0x465   :  { %v377_v55 = vrot.slane %v363_v53, %v7845_v45  ;;  %v378_v57 = vcombine.high %v370_v54, %v370_v54  ;;  %v386_v58 = vrot.slane %v370_v54, %v7845_v45  ;;  %v361_v61 = vadd.f32 %v7851_v49, %v353_v52 }
 0x467   :  { %v379_v63 = vcombine.high %v377_v55, %v377_v55  ;;  %v400_v0 = vrot.slane %v378_v57, %v7845_v45  ;;  %v415_v2 = vrot.slane %v386_v58, %v7853_v51  ;;  %v408_v5 = vcombine.high %v386_v58, %v386_v58  ;;  %v733_v57 = vld [vmem:[%s9120_s15] sm:$0xff]  ;;  %v734_v58 = vld [vmem:[%s9120_s15 + $0x8] sm:$0xff] }
 0x468   :  { %v393_v12 = vrot.slane %v377_v55, %v7845_v45 }
 0x469   :  { %v419_v15 = vrot.slane %v400_v0, %v7853_v51  ;;  %v452_v16 = vsub.f32 %v361_v61, %v415_v2  ;;  %v423_v18 = vrot.slane %v408_v5, %v7853_v51  ;;  %v410_v20 = vcombine.high %v400_v0, %v400_v0  ;;  %v736_v0 = vld [vmem:[%s9120_s15 + $0x18] sm:$0xff]  ;;  %v7905_v5 = vpop.permute.xlu1 %631 }
 0x46a   :  { %v431_v21 = vrot.slane %v393_v12, %v7853_v51  ;;  %v407_v23 = vrot.slane %v379_v63, %v7845_v45  ;;  %v409_v24 = vcombine.high %v393_v12, %v393_v12  ;;  %v735_v63 = vld [vmem:[%s9120_s15 + $0x10] sm:$0xff]  ;;  %9204 = vst [vmem:[#allocation11_spill] sm:$0xff] %v7905_v5 }
 0x46b   :  { %v460_v25 = vmax.f32 %v452_v16, 0.0  ;;  %v453_v27 = vsub.f32 %v361_v61, %v419_v15  ;;  %v454_v28 = vsub.f32 %v361_v61, %v423_v18  ;;  %v427_v29 = vrot.slane %v410_v20, %v7853_v51  ;;  %v7916_v18 = vld [vmem:[%s9119_s14] ss:$0 sm:$0xff] }
 0x46c   :  { %v435_v30 = vrot.slane %v407_v23, %v7853_v51  ;;  %v411_v34 = vcombine.high %v407_v23, %v407_v23  ;;  %v456_v36 = vsub.f32 %v361_v61, %v431_v21  ;;  %v439_v37 = vrot.slane %v409_v24, %v7853_v51 }
 0x46d   :  { %6400 = vmatprep.mubr.msk.f32.mxu0 %vm483_vm2, %v460_v25  ;;  %v461_v31 = vmax.f32 %v453_v27, 0.0  ;;  %v462_v32 = vmax.f32 %v454_v28, 0.0  ;;  %v455_v33 = vsub.f32 %v361_v61, %v427_v29  ;;  %v7901_v2 = vpack.c.bf16 %v736_v0, %v735_v63  ;;  %v7907_v12 = vpop.permute.xlu1 %636 }
 0x46e   :  { %v457_v43 = vsub.f32 %v361_v61, %v435_v30  ;;  %v443_v44 = vrot.slane %v411_v34, %v7853_v51  ;;  %v464_v47 = vmax.f32 %v456_v36, 0.0  ;;  %v458_v48 = vsub.f32 %v361_v61, %v439_v37  ;;  %9205 = vst [vmem:[#allocation12_spill] sm:$0xff] %v7907_v12 }
 0x46f   :  { %6401 = vmatmul.mubr.msk.f32.vlgmr.msra.gmra.mrb[2].mxu0 %vm483_vm2, %v461_v31  ;;  %v463_v40 = vmax.f32 %v455_v33, 0.0 }
 0x470   :  { %6403 = vmatprep.mubr.msk.f32.mxu0 %vm483_vm2, %v462_v32  ;;  %7050 = vmatpush3.bf16.msra.mxu0 %v7643_v4  ;;  %v465_v52 = vmax.f32 %v457_v43, 0.0  ;;  %v459_v53 = vsub.f32 %v361_v61, %v443_v44  ;;  %v466_v54 = vmax.f32 %v458_v48, 0.0  ;;  %v7891_v61 = vpack.c.bf16 %v734_v58, %v733_v57 }
 0x471   :  { %7051 = vmatprep.subr.bf16.mxu0 %v9131_v3  ;;  %v7909_v15 = vpop.permute.xlu1 %641 }
 0x472   :  { %v467_v55 = vmax.f32 %v459_v53, 0.0  ;;  %7032 = vmatpush3.bf16.msra.mxu1 %v7891_v61  ;;  %9206 = vst [vmem:[#allocation13_spill] sm:$0xff] %v7909_v15 }
 0x473   :  { %6404 = vmatmul.mubr.msk.f32.gmra.mrb[4].mxu0 %vm483_vm2, %v463_v40  ;;  %7033 = vmatprep.subr.bf16.mxu1 %v9131_v3 }
 0x474   :  { %6406 = vmatprep.mubr.msk.f32.mxu0 %vm483_vm2, %v464_v47  ;;  %7053 = vmatpush3.bf16.msra.mxu0 %v7656_v9 }
 0x475   :  { %7061 = vmatprep.subr.bf16.mxu0 %v7770_v11  ;;  %v7911_v16 = vpop.permute.xlu1 %646 }
 0x476   :  { %7035 = vmatpush3.bf16.msra.mxu1 %v7901_v2  ;;  %9207 = vst [vmem:[#allocation14_spill] sm:$0xff] %v7911_v16 }
 0x477   :  { %6407 = vmatmul.mubr.msk.f32.gmra.mrb[6].mxu0 %vm483_vm2, %v465_v52  ;;  %7036 = vmatprep.subr.bf16.mxu1 %v9131_v3 }
 0x478   :  { %6409 = vmatprep.mubr.msk.f32.mxu0 %vm483_vm2, %v466_v54 }
 0x479   :  { %v7920_v27 = vpop.permute.xlu1 %651 }
 0x47a   :  { %9208 = vst [vmem:[#allocation15_spill] sm:$0xff] %v7920_v27 }
 0x47b   :  { %6410 = vmatmul.mubr.msk.f32.gmra.mrb[8].mxu0 %vm483_vm2, %v467_v55 }
 0x47c   :  { %6450 = vmatprep.mubr.msk.f32.mxu0 %vm7512_vm0, %v9133_v6 }
 0x47d   :  { %v7930_v55 = vpop.permute.xlu1 %656 }
 0x47e   :  { %9209 = vst [vmem:[#allocation16_spill] sm:$0xff] %v7930_v55 }
 0x542   :  { %v6402_v20 = vpop.f32.mrb[2].mxu0 }
 0x543   :  { %v580_v21 = vadd.f32 %v6402_v20, %v7916_v18  ;;  %v574_v23 = vpop.f32.mrb[3].mxu0 }
 0x544   :  { %v575_v24 = vadd.f32 %v7916_v18, %v574_v23 }
 0x545   :  { %v614_v25 = vmax.f32 %v580_v21, 0.0 }
 0x546   :  { %v613_v28 = vmax.f32 %v575_v24, 0.0  ;;  %v6405_v29 = vpop.f32.mrb[4].mxu0 }
 0x547   :  { %v670_v30 = vmul.f32 %v7907_v12, %v614_v25  ;;  %v590_v31 = vadd.f32 %v6405_v29, %v7916_v18  ;;  %v584_v32 = vpop.f32.mrb[5].mxu0 }
 0x548   :  { %v669_v33 = vmul.f32 %v7905_v5, %v613_v28  ;;  %v585_v34 = vadd.f32 %v7916_v18, %v584_v32 }
 0x549   :  { %v684_v36 = vsel %vm103_vm1, %v670_v30, -inf  ;;  %v616_v37 = vmax.f32 %v590_v31, 0.0 }
 0x54a   :  { %v685_v40 = vrot.slane %v684_v36, 4  ;;  %v677_v43 = vsel %vm103_vm1, %v669_v33, -inf  ;;  %v615_v44 = vmax.f32 %v585_v34, 0.0  ;;  %v6408_v47 = vpop.f32.mrb[6].mxu0 }
 0x54b   :  { %v678_v48 = vrot.slane %v677_v43, 4  ;;  %v672_v52 = vmul.f32 %v7911_v16, %v616_v37  ;;  %v600_v53 = vadd.f32 %v6408_v47, %v7916_v18  ;;  %v594_v54 = vpop.f32.mrb[7].mxu0 }
 0x54c   :  { %v686_v57 = vmax.f32 %v684_v36, %v685_v40  ;;  %v671_v58 = vmul.f32 %v7909_v15, %v615_v44  ;;  %v595_v63 = vadd.f32 %v7916_v18, %v594_v54 }
 0x54d   :  { %v679_v0 = vmax.f32 %v677_v43, %v678_v48  ;;  %v698_v20 = vsel %vm103_vm1, %v672_v52, -inf  ;;  %v618_v21 = vmax.f32 %v600_v53, 0.0  ;;  %v7941_v53 = vpop.permute.xlu1 %666 }
 0x54e   :  { %v687_v23 = vrot.slane %v686_v57, 2  ;;  %v699_v24 = vrot.slane %v698_v20, 4  ;;  %v691_v25 = vsel %vm103_vm1, %v671_v58, -inf  ;;  %v617_v28 = vmax.f32 %v595_v63, 0.0  ;;  %v6411_v29 = vpop.f32.mrb[8].mxu0 }
 0x54f   :  { %v680_v30 = vrot.slane %v679_v0, 2  ;;  %v692_v31 = vrot.slane %v691_v25, 4  ;;  %v674_v32 = vmul.f32 %v7930_v55, %v618_v21  ;;  %v610_v33 = vadd.f32 %v6411_v29, %v7916_v18  ;;  %v604_v34 = vpop.f32.mrb[9].mxu0 }
 0x550   :  { %v688_v36 = vmax.f32 %v686_v57, %v687_v23  ;;  %v700_v37 = vmax.f32 %v698_v20, %v699_v24  ;;  %v673_v40 = vmul.f32 %v7920_v27, %v617_v28  ;;  %v605_v43 = vadd.f32 %v7916_v18, %v604_v34 }
 0x551   :  { %v681_v44 = vmax.f32 %v679_v0, %v680_v30  ;;  %v693_v47 = vmax.f32 %v691_v25, %v692_v31  ;;  %v712_v48 = vsel %vm103_vm1, %v674_v32, -inf  ;;  %v620_v52 = vmax.f32 %v610_v33, 0.0  ;;  %v7945_v25 = vpop.permute.xlu0 %661 }
 0x552   :  { %v689_v54 = vrot.slane %v688_v36, 1  ;;  %v701_v58 = vrot.slane %v700_v37, 2  ;;  %v713_v63 = vrot.slane %v712_v48, 4  ;;  %v705_v21 = vsel %vm103_vm1, %v673_v40, -inf }
 0x553   :  { %v682_v29 = vrot.slane %v681_v44, 1  ;;  %v694_v10 = vrot.slane %v693_v47, 2  ;;  %v706_v57 = vrot.slane %v705_v21, 4  ;;  %v676_v20 = vmul.f32 %v7941_v53, %v620_v52 }
 0x554   :  { %v690_v23 = vmax.f32 %v688_v36, %v689_v54  ;;  %v702_v24 = vmax.f32 %v700_v37, %v701_v58  ;;  %v714_v28 = vmax.f32 %v712_v48, %v713_v63  ;;  %v619_v0 = vmax.f32 %v605_v43, 0.0 }
 0x555   :  { %v683_v30 = vmax.f32 %v681_v44, %v682_v29  ;;  %v695_v31 = vmax.f32 %v693_v47, %v694_v10  ;;  %v707_v32 = vmax.f32 %v705_v21, %v706_v57  ;;  %v726_v33 = vsel %vm103_vm1, %v676_v20, -inf }
 0x556   :  { %v703_v34 = vrot.slane %v702_v24, 1  ;;  %v715_v8 = vrot.slane %v714_v28, 2  ;;  %v727_v3 = vrot.slane %v726_v33, 4  ;;  %v675_v40 = vmul.f32 %v7945_v25, %v619_v0 }
 0x557   :  { %v746_v6 = vsel %vm745_vm3, %v690_v23, %v683_v30  ;;  %v696_v59 = vrot.slane %v695_v31, 1  ;;  %v708_v52 = vrot.slane %v707_v32, 2 }
 0x558   :  { %v716_v36 = vmax.f32 %v714_v28, %v715_v8  ;;  %v728_v37 = vmax.f32 %v726_v33, %v727_v3  ;;  %v719_v43 = vsel %vm103_vm1, %v675_v40, -inf  ;;  %v704_v47 = vmax.f32 %v702_v24, %v703_v34  ;;  %v847_v40 = vld [vmem:[%s9122_s17] sm:$0xff] }
 0x559   :  { %v697_v48 = vmax.f32 %v695_v31, %v696_v59  ;;  %v709_v44 = vmax.f32 %v707_v32, %v708_v52  ;;  %v720_v10 = vrot.slane %v719_v43, 4  ;;  %v9210_v34 = vmov 0.0   ;;  %v848_v52 = vld [vmem:[%s9122_s17 + $0x8] sm:$0xff] }
 0x55a   :  { %v717_v54 = vrot.slane %v716_v36, 1  ;;  %v729_v58 = vrot.slane %v728_v37, 2 }
 0x55b   :  { %v748_v63 = vsel %vm747_vm4, %v697_v48, %v746_v6  ;;  %v710_v21 = vrot.slane %v709_v44, 1  ;;  %v721_v29 = vmax.f32 %v719_v43, %v720_v10  ;;  %v850_v43 = vld [vmem:[%s9122_s17 + $0x18] sm:$0xff] }
 0x55c   :  { %v730_v57 = vmax.f32 %v728_v37, %v729_v58  ;;  %v750_v20 = vsel %vm749_vm5, %v704_v47, %v748_v63  ;;  %v718_v3 = vmax.f32 %v716_v36, %v717_v54  ;;  %v849_v36 = vld [vmem:[%s9122_s17 + $0x10] sm:$0xff]  ;;  %v7969_v37 = vpack.c.bf16 %v848_v52, %v847_v40  ;;  %v851_v54 = vld [vmem:[%s9122_s17 + $0x20] sm:$0xff]  ;;  %v852_v58 = vld [vmem:[%s9122_s17 + $0x28] sm:$0xff] }
 0x55d   :  { %v711_v23 = vmax.f32 %v709_v44, %v710_v21  ;;  %v722_v8 = vrot.slane %v721_v29, 2  ;;  %v7976_v10 = vpack.c.bf16 %v850_v43, %v849_v36  ;;  %v9211_v47 = vmov 0.0|0.0   ;;  %v853_v21 = vld [vmem:[%s9122_s17 + $0x30] sm:$0xff] }
 0x55e   :  { %v731_v0 = vrot.slane %v730_v57, 1  ;;  %v7986_v63 = vpack.c.bf16 %v852_v58, %v851_v54 }
 0x55f   :  { %v723_v28 = vmax.f32 %v721_v29, %v722_v8  ;;  %v752_v59 = vsel %vm751_vm6, %v711_v23, %v750_v20  ;;  %v854_v29 = vld [vmem:[%s9122_s17 + $0x38] sm:$0xff]  ;;  %v8002_v8 = vpop.permute.xlu1 %842  ;;  %s7527_s17 = smov [#allocation2]  }
 0x560   :  { %v754_v24 = vsel %vm753_vm7, %v718_v3, %v752_v59  ;;  %v732_v6 = vmax.f32 %v730_v57, %v731_v0  ;;  %v7996_v57 = vpack.c.bf16 %v854_v29, %v853_v21  ;;  %v9212_v59 = vmov 0   ;;  %s5916_s28 = sshll.u32 %s7527_s17, 4  ;;  %s5917_s28 = int_to_ptr.vmem [resolvable:$true] %s5916_s28 }
 0x561   :  { %v724_v30 = vrot.slane %v723_v28, 1  ;;  %s7487_s4 = scalar_lea.vmem %s5917_s28, 128  ;;  %p7492_p1 = scmp.lt.s32.totalorder %s5917_s28, %s5917_s28 }
 0x562   :  { %p7488_p0 = scmp.ne.s32.totalorder %s5917_s28, %s7487_s4  ;;  %p7493_p2 = scmp.lt.s32.totalorder %s7487_s4, %s7487_s4 }
 0x563   :  { %v725_v31 = vmax.f32 %v723_v28, %v724_v30 }
 0x564   :  { %p7494_p3 = por %p7493_p2, %p7492_p1 }
 0x565   :  { %v756_v32 = vsel %vm755_vm8, %v725_v31, %v754_v24 }
 0x566   :  { %v758_v33 = vsel %vm757_vm9, %v732_v6, %v756_v32  ;;  %p7495_p4 = pnand %p7494_p3, %p7488_p0 }
 0x567   :  { %6421 = vmatmul.mubr.msk.f32.vlgmr.msra.gmra.mrb[2].mxu1 %vm103_vm1, %v758_v33  ;;  %v941_v33 = vpop.permute.xlu1 %940 }
 0x568   :  { %6439 = vmatprep.mubr.msk.f32.mxu1 %vm7512_vm0, %v9210_v34  ;;  %7038 = vmatpush3.bf16.msra.mxu1 %v7969_v37  ;;  %v943_v52 = vmul.f32 %v7672_v13, %v941_v33 }
 0x569   :  { %7039 = vmatprep.subr.bf16.mxu1 %v9211_v47 }
 0x56c   :  { %7041 = vmatpush3.bf16.msra.mxu1 %v7976_v10 }
 0x56d   :  { %7042 = vmatprep.subr.bf16.mxu1 %v9211_v47 }
 0x570   :  { %7044 = vmatpush3.bf16.msra.mxu1 %v7986_v63 }
 0x571   :  { %7045 = vmatprep.subr.bf16.mxu1 %v9211_v47 }
 0x574   :  { %7047 = vmatpush3.bf16.msra.mxu1 %v7996_v57 }
 0x575   :  { %7054 = vmatprep.subr.bf16.mxu1 %v9211_v47 }
 0x63a   :  { %v827_v48 = vpop.f32.mrb[2].mxu1 }
 0x63b   :  { %832 = vrot.lane.b32.xlu0 %v827_v48, %s7516_s2  ;;  %v6422_v44 = vpop.f32.mrb[3].mxu1 }
 0x6ad   :  { %v833_v20 = vpop.permute.xlu0 %832 }
 0x6ae   :  { %v835_v23 = vadd.f32 %v833_v20, %v7756_v62  ;;  %v8018_v62 = vld [vmem:[%s9123_s18] ss:$0 sm:$0xff] }
 0x6b0   :  { %v845_v3 = vadd.f32 %v8002_v8, %v835_v23 }
 0x6b2   :  { %v846_v28 = vmax.f32 %v845_v3, 0.0 }
 0x6b4   :  { %863 = vrot.lane.b32.xlu0 %v846_v28, %s7516_s2 }
 0x6b8   :  { %946 = vperm.xlu0 %7392, %v7759_v1  }
 0x6bc   :  { %7393 = vset.pattern.permute.xlu0 %v9212_v59 }
 0x726   :  { %v864_v0 = vpop.permute.xlu0 %863 }
 0x727   :  { %6440 = vmatmul.mubr.msk.f32.vlgmr.msra.gmra.mrb[4].mxu1 %vm483_vm2, %v864_v0 }
 0x728   :  { %7056 = vmatpush3.bf16.msra.mxu1 %v7705_v39  ;;  %6461 = vmatprep.mubr.msk.f32.mxu1 %vm7512_vm0, %v9210_v34 }
 0x729   :  { %7057 = vmatprep.subr.bf16.mxu1 %v9211_v47 }
 0x72c   :  { %7059 = vmatpush3.bf16.msra.mxu1 %v7711_v41 }
 0x72d   :  { %7076 = vmatprep.subr.bf16.mxu1 %v9211_v47 }
 0x737   :  { %v947_v32 = vpop.permute.xlu0 %946 }
 0x738   :  { %v949_v40 = vmul.f32 %v7677_v14, %v947_v32 }
 0x73a   :  { %v950_v36 = vadd.f32 %v949_v40, %v943_v52 }
 0x73c   :  { %v951_v43 = vadd.f32 %v7684_v19, %v950_v36 }
 0x7fa   :  { %v933_v24 = vpop.f32.mrb[4].mxu1 }
 0x7fb   :  { %v934_v30 = vadd.f32 %v8018_v62, %v933_v24  ;;  %v6441_v31 = vpop.f32.mrb[5].mxu1 }
 0x7fd   :  { %v937_v6 = vmax.f32 %v934_v30, 0.0 }
 0x7ff   :  { %6451 = vmatmul.mubr.msk.f32.vlgmr.msra.gmra.mrb[10].mxu0 %vm103_vm1, %v937_v6 }
 0x800   :  { %7063 = vmatpush3.bf16.msra.mxu0 %v7770_v11 }
 0x801   :  { %7065 = vmatprep.subr.bf16.mxu0 %v7784_v17 }
 0x804   :  { %7067 = vmatpush3.bf16.msra.mxu0 %v7784_v17 }
 0x805   :  { %7069 = vmatprep.subr.bf16.mxu0 %v7798_v22 }
 0x808   :  { %7071 = vmatpush3.bf16.msra.mxu0 %v7798_v22 }
 0x809   :  { %7073 = vmatprep.subr.bf16.mxu0 %v7811_v26 }
 0x80c   :  { %7075 = vmatpush3.bf16.msra.mxu0 %v7811_v26 }
 0x80d   :  { %7094 = vmatprep.subr.bf16.mxu0 %v9211_v47 }
 0x8d2   :  { %v1021_v48 = vpop.f32.mrb[10].mxu0 }
 0x8d3   :  { %v1025_v44 = vadd.f32 %v1021_v48, %v951_v43  ;;  %v6452_v54 = vpop.f32.mrb[11].mxu0 }
 0x8d5   :  { %7412 = vtanh.f32 %v1025_v44  ;;  %v5952_v21 = vmul.f32 -1.442695, %v1025_v44 }
 0x8d7   :  { %7414 = vpow2.f32 %v5952_v21 }
 0x8df   :  { %v7413_v58 = vpop.eup %7412 }
 0x8e0   :  { %1035 = vrot.lane.b32.xlu1 %v7413_v58, %s7516_s2 }
 0x8e1   :  { %v7415_v29 = vpop.eup %7414 }
 0x8e2   :  { %v1029_v20 = vadd.f32 1.0, %v7415_v29 }
 0x8e4   :  { %7416 = vrcp.f32 %v1029_v20 }
 0x8ee   :  { %v7417_v23 = vpop.eup %7416 }
 0x8ef   :  { %v1033_v13 = vmul.f32 %v7417_v23, %v7693_v35 }
 0x952   :  { %v1036_v3 = vpop.permute.xlu1 %1035 }
 0x953   :  { %v1038_v14 = vmul.f32 %v7417_v23, %v1036_v3 }
 0x955   :  { %1040 = vrot.lane.b32.xlu1 %v1038_v14, %s7517_s27 }
 0x9c7   :  { %v1041_v19 = vpop.permute.xlu1 %1040 }
 0x9c8   :  { %v8036_v28 = vadd.f32 %v1041_v19, %v1033_v13 }
 0x9ca   :  { %7418 = vtanh.f32 %v8036_v28 }
 0x9d4   :  { %v7419_v0 = vpop.eup %7418 }
 0x9d5   :  { %1046 = vrot.lane.b32.xlu0 %v7419_v0, %s7516_s2 }
 0xa47   :  { %v1047_v24 = vpop.permute.xlu0 %1046 }
 0xa48   :  { %v1049_v30 = vmul.f32 %v7417_v23, %v1047_v24 }
 0xa4a   :  { %1051 = vrot.lane.b32.xlu1 %v1049_v30, %s7517_s27  ;;  %v1125_v31 = vmul.f32 %v1049_v30, %v7721_v46  ;;  %v1134_v6 = vmul.f32 %v1049_v30, %v7731_v50 }
 0xa4c   :  { %1127 = vrot.lane.b32.xlu0 %v1125_v31, %s7517_s27 }
 0xa4e   :  { %1136 = vrot.lane.b32.xlu1 %v1134_v6, %s7517_s27 }
 0xabc   :  { %v1052_v35 = vpop.permute.xlu1 %1051 }
 0xabd   :  { %6462 = vmatmul.mubr.msk.f32.vlgmr.msra.gmra.mrb[6].mxu1 %vm103_vm1, %v1052_v35 }
 0xabe   :  { %v1128_v32 = vpop.permute.xlu0 %1127  ;;  %7078 = vmatpush3.bf16.msra.mxu1 %v7891_v61  ;;  %6500 = vmatprep.mubr.msk.f32.mxu1 %vm7512_vm0, %v9210_v34 }
 0xabf   :  { %v1130_v33 = vsel %vm103_vm1, %v1128_v32, 0.0  ;;  %7079 = vmatprep.subr.bf16.mxu1 %v9211_v47 }
 0xac0   :  { %v1137_v40 = vpop.permute.xlu1 %1136  ;;  %1131 = vadd.xlane.f32.xlu0 %v1130_v33 }
 0xac1   :  { %v1139_v52 = vsel %vm103_vm1, %v1137_v40, 0.0 }
 0xac2   :  { %1140 = vadd.xlane.f32.xlu1 %v1139_v52  ;;  %7081 = vmatpush3.bf16.msra.mxu1 %v7901_v2 }
 0xac3   :  { %7082 = vmatprep.subr.bf16.mxu1 %v9211_v47 }
 0xb4d   :  { %v1132_v36 = vpop.xlane.xlu0 %1131 }
 0xb4e   :  { %v8055_v43 = vadd.f32 %v7740_v56, %v1132_v36 }
 0xb4f   :  { %v1141_v48 = vpop.xlane.xlu1 %1140 }
 0xb50   :  { %9213 = vst [vmem:[#allocation17_spill] sm:$0xff] %v8055_v43  ;;  %v8058_v44 = vadd.f32 %v7740_v56, %v1141_v48  ;;  %v8062_v54 = vadd.f32 %v8055_v43, %v7749_v60 }
 0xb52   :  { %9214 = vst [vmem:[#allocation18_spill] sm:$0xff] %v8058_v44  ;;  %1147 = vperm.xlu0 %7393, %v8062_v54   ;;  %v8067_v58 = vadd.f32 %v8058_v44, %v7768_v7 }
 0xb54   :  { %1153 = vperm.xlu1 %7394, %v8067_v58  }
 0xb58   :  { %7395 = vset.pattern.permute.xlu1 %v9212_v59 }
 0xb90   :  { %v8071_v21 = vpop.f32.mrb[6].mxu1 }
 0xb91   :  { %v6463_v29 = vpop.f32.mrb[7].mxu1 }
 0xbd1   :  { %v1148_v20 = vpop.permute.xlu0 %1147 }
 0xbd2   :  { %v1150_v23 = vmul.f32 %v7837_v38, %v1148_v20 }
 0xbd3   :  { %v1154_v56 = vpop.permute.xlu1 %1153 }
 0xbd4   :  { %v1156_v60 = vmul.f32 %v7842_v42, %v1154_v56 }
 0xbd6   :  { %v1157_v3 = vadd.f32 %v1156_v60, %v1150_v23 }
 0xbd8   :  { %v1158_v14 = vadd.f32 %v1157_v3, %v8071_v21  ;;  %v1161_v13 = vcombine.high %v1157_v3, %v1157_v3  ;;  %v1168_v7 = vrot.slane %v1157_v3, %v7845_v45 }
 0xbda   :  { %v1175_v19 = vrot.slane %v1161_v13, %v7845_v45  ;;  %v1176_v0 = vcombine.high %v1168_v7, %v1168_v7  ;;  %v1184_v24 = vrot.slane %v1168_v7, %v7845_v45  ;;  %v1159_v30 = vadd.f32 %v7851_v49, %v1158_v14 }
 0xbdc   :  { %v1177_v31 = vcombine.high %v1175_v19, %v1175_v19  ;;  %v1198_v6 = vrot.slane %v1176_v0, %v7845_v45  ;;  %v1213_v38 = vrot.slane %v1184_v24, %v7853_v51  ;;  %v1206_v35 = vcombine.high %v1184_v24, %v1184_v24 }
 0xbdd   :  { %v1191_v42 = vrot.slane %v1175_v19, %v7845_v45 }
 0xbde   :  { %v1217_v32 = vrot.slane %v1198_v6, %v7853_v51  ;;  %v1250_v33 = vsub.f32 %v1159_v30, %v1213_v38  ;;  %v1221_v40 = vrot.slane %v1206_v35, %v7853_v51  ;;  %v1208_v52 = vcombine.high %v1198_v6, %v1198_v6 }
 0xbdf   :  { %v1229_v36 = vrot.slane %v1191_v42, %v7853_v51  ;;  %v1205_v48 = vrot.slane %v1177_v31, %v7845_v45  ;;  %v1207_v29 = vcombine.high %v1191_v42, %v1191_v42 }
 0xbe0   :  { %v1258_v49 = vmax.f32 %v1250_v33, 0.0  ;;  %v1251_v20 = vsub.f32 %v1159_v30, %v1217_v32  ;;  %v1252_v56 = vsub.f32 %v1159_v30, %v1221_v40  ;;  %v1225_v23 = vrot.slane %v1208_v52, %v7853_v51 }
 0xbe1   :  { %v1233_v60 = vrot.slane %v1205_v48, %v7853_v51  ;;  %v1209_v7 = vcombine.high %v1205_v48, %v1205_v48  ;;  %v1254_v19 = vsub.f32 %v1159_v30, %v1229_v36  ;;  %v1237_v0 = vrot.slane %v1207_v29, %v7853_v51 }
 0xbe2   :  { %6480 = vmatprep.mubr.msk.f32.mxu0 %vm483_vm2, %v1258_v49  ;;  %v1259_v3 = vmax.f32 %v1251_v20, 0.0  ;;  %v1260_v14 = vmax.f32 %v1252_v56, 0.0  ;;  %v1253_v13 = vsub.f32 %v1159_v30, %v1225_v23 }
 0xbe3   :  { %v1255_v31 = vsub.f32 %v1159_v30, %v1233_v60  ;;  %v1241_v6 = vrot.slane %v1209_v7, %v7853_v51  ;;  %v1262_v38 = vmax.f32 %v1254_v19, 0.0  ;;  %v1256_v35 = vsub.f32 %v1159_v30, %v1237_v0 }
 0xbe4   :  { %6481 = vmatmul.mubr.msk.f32.vlgmr.msra.gmra.mrb[12].mxu0 %vm483_vm2, %v1259_v3  ;;  %v1261_v24 = vmax.f32 %v1253_v13, 0.0 }
 0xbe5   :  { %6483 = vmatprep.mubr.msk.f32.mxu0 %vm483_vm2, %v1260_v14  ;;  %7096 = vmatpush3.bf16.msra.mxu0 %v7643_v4  ;;  %v1263_v42 = vmax.f32 %v1255_v31, 0.0  ;;  %v1257_v32 = vsub.f32 %v1159_v30, %v1241_v6  ;;  %v1264_v33 = vmax.f32 %v1256_v35, 0.0 }
 0xbe6   :  { %7097 = vmatprep.subr.bf16.mxu0 %v9211_v47 }
 0xbe7   :  { %v1265_v40 = vmax.f32 %v1257_v32, 0.0 }
 0xbe8   :  { %6484 = vmatmul.mubr.msk.f32.gmra.mrb[14].mxu0 %vm483_vm2, %v1261_v24 }
 0xbe9   :  { %6486 = vmatprep.mubr.msk.f32.mxu0 %vm483_vm2, %v1262_v38  ;;  %7099 = vmatpush3.bf16.msra.mxu0 %v7656_v9 }
 0xbea   :  { %7107 = vmatprep.subr.bf16.mxu0 %v7770_v11 }
 0xbec   :  { %6487 = vmatmul.mubr.msk.f32.gmra.mrb[16].mxu0 %vm483_vm2, %v1263_v42 }
 0xbed   :  { %6489 = vmatprep.mubr.msk.f32.mxu0 %vm483_vm2, %v1264_v33 }
 0xbf0   :  { %6490 = vmatmul.mubr.msk.f32.gmra.mrb[18].mxu0 %vm483_vm2, %v1265_v40 }
 0xbf1   :  { %6530 = vmatprep.mubr.msk.f32.mxu0 %vm7512_vm0, %v9210_v34 }
 0xcb7   :  { %v6482_v52 = vpop.f32.mrb[12].mxu0 }
 0xcb8   :  { %v1362_v36 = vadd.f32 %v6482_v52, %v7916_v18  ;;  %v1356_v48 = vpop.f32.mrb[13].mxu0 }
 0xcb9   :  { %v1357_v29 = vadd.f32 %v7916_v18, %v1356_v48 }
 0xcba   :  { %v1396_v30 = vmax.f32 %v1362_v36, 0.0 }
 0xcbb   :  { %v1395_v49 = vmax.f32 %v1357_v29, 0.0  ;;  %v6485_v20 = vpop.f32.mrb[14].mxu0 }
 0xcbc   :  { %v1404_v56 = vmul.f32 %v1396_v30, %v7907_v12  ;;  %v1372_v23 = vadd.f32 %v6485_v20, %v7916_v18  ;;  %v1366_v60 = vpop.f32.mrb[15].mxu0 }
 0xcbd   :  { %v1403_v3 = vmul.f32 %v1395_v49, %v7905_v5  ;;  %v1367_v14 = vadd.f32 %v7916_v18, %v1366_v60 }
 0xcbe   :  { %v1418_v13 = vsel %vm103_vm1, %v1404_v56, -inf  ;;  %v1398_v7 = vmax.f32 %v1372_v23, 0.0 }
 0xcbf   :  { %v1419_v19 = vrot.slane %v1418_v13, 4  ;;  %v1411_v0 = vsel %vm103_vm1, %v1403_v3, -inf  ;;  %v1397_v24 = vmax.f32 %v1367_v14, 0.0  ;;  %v6488_v31 = vpop.f32.mrb[16].mxu0 }
 0xcc0   :  { %v1412_v6 = vrot.slane %v1411_v0, 4  ;;  %v1406_v38 = vmul.f32 %v1398_v7, %v7911_v16  ;;  %v1382_v35 = vadd.f32 %v6488_v31, %v7916_v18  ;;  %v1376_v42 = vpop.f32.mrb[17].mxu0 }
 0xcc1   :  { %v1420_v32 = vmax.f32 %v1418_v13, %v1419_v19  ;;  %v1405_v33 = vmul.f32 %v1397_v24, %v7909_v15  ;;  %v1377_v40 = vadd.f32 %v7916_v18, %v1376_v42 }
 0xcc2   :  { %v1413_v52 = vmax.f32 %v1411_v0, %v1412_v6  ;;  %v1432_v36 = vsel %vm103_vm1, %v1406_v38, -inf  ;;  %v1400_v48 = vmax.f32 %v1382_v35, 0.0 }
 0xcc3   :  { %v1421_v29 = vrot.slane %v1420_v32, 2  ;;  %v1433_v30 = vrot.slane %v1432_v36, 4  ;;  %v1425_v49 = vsel %vm103_vm1, %v1405_v33, -inf  ;;  %v1399_v20 = vmax.f32 %v1377_v40, 0.0  ;;  %v6491_v56 = vpop.f32.mrb[18].mxu0 }
 0xcc4   :  { %v1414_v23 = vrot.slane %v1413_v52, 2  ;;  %v1426_v60 = vrot.slane %v1425_v49, 4  ;;  %v1408_v3 = vmul.f32 %v1400_v48, %v7930_v55  ;;  %v1392_v14 = vadd.f32 %v6491_v56, %v7916_v18  ;;  %v1386_v13 = vpop.f32.mrb[19].mxu0 }
 0xcc5   :  { %v1422_v7 = vmax.f32 %v1420_v32, %v1421_v29  ;;  %v1434_v19 = vmax.f32 %v1432_v36, %v1433_v30  ;;  %v1407_v0 = vmul.f32 %v1399_v20, %v7920_v27  ;;  %v1387_v24 = vadd.f32 %v7916_v18, %v1386_v13 }
 0xcc6   :  { %v1415_v31 = vmax.f32 %v1413_v52, %v1414_v23  ;;  %v1427_v6 = vmax.f32 %v1425_v49, %v1426_v60  ;;  %v1446_v38 = vsel %vm103_vm1, %v1408_v3, -inf  ;;  %v1402_v35 = vmax.f32 %v1392_v14, 0.0 }
 0xcc7   :  { %v1423_v42 = vrot.slane %v1422_v7, 1  ;;  %v1435_v33 = vrot.slane %v1434_v19, 2  ;;  %v1447_v40 = vrot.slane %v1446_v38, 4  ;;  %v1439_v1 = vsel %vm103_vm1, %v1407_v0, -inf }
 0xcc8   :  { %v1416_v48 = vrot.slane %v1415_v31, 1  ;;  %v1428_v55 = vrot.slane %v1427_v6, 2  ;;  %v1440_v56 = vrot.slane %v1439_v1, 4  ;;  %v1410_v32 = vmul.f32 %v1402_v35, %v7941_v53 }
 0xcc9   :  { %v1424_v36 = vmax.f32 %v1422_v7, %v1423_v42  ;;  %v1436_v29 = vmax.f32 %v1434_v19, %v1435_v33  ;;  %v1448_v30 = vmax.f32 %v1446_v38, %v1447_v40  ;;  %v1401_v20 = vmax.f32 %v1387_v24, 0.0 }
 0xcca   :  { %v1417_v18 = vmax.f32 %v1415_v31, %v1416_v48  ;;  %v1429_v52 = vmax.f32 %v1427_v6, %v1428_v55  ;;  %v1441_v49 = vmax.f32 %v1439_v1, %v1440_v56  ;;  %v1460_v23 = vsel %vm103_vm1, %v1410_v32, -inf }
 0xccb   :  { %v1437_v60 = vrot.slane %v1436_v29, 1  ;;  %v1449_v3 = vrot.slane %v1448_v30, 2  ;;  %v1461_v14 = vrot.slane %v1460_v23, 4  ;;  %v1409_v13 = vmul.f32 %v1401_v20, %v7945_v25 }
 0xccc   :  { %v1475_v0 = vsel %vm745_vm3, %v1424_v36, %v1417_v18  ;;  %v1430_v27 = vrot.slane %v1429_v52, 1  ;;  %v1442_v15 = vrot.slane %v1441_v49, 2 }
 0xccd   :  { %v1450_v16 = vmax.f32 %v1448_v30, %v1449_v3  ;;  %v1462_v35 = vmax.f32 %v1460_v23, %v1461_v14  ;;  %v1453_v7 = vsel %vm103_vm1, %v1409_v13, -inf  ;;  %v1438_v55 = vmax.f32 %v1436_v29, %v1437_v60 }
 0xcce   :  { %v1431_v19 = vmax.f32 %v1429_v52, %v1430_v27  ;;  %v1443_v24 = vmax.f32 %v1441_v49, %v1442_v15  ;;  %v1454_v31 = vrot.slane %v1453_v7, 4 }
 0xccf   :  { %v1451_v1 = vrot.slane %v1450_v16, 1  ;;  %v1463_v6 = vrot.slane %v1462_v35, 2 }
 0xcd0   :  { %v1476_v38 = vsel %vm747_vm4, %v1431_v19, %v1475_v0  ;;  %v1444_v42 = vrot.slane %v1443_v24, 1  ;;  %v1455_v33 = vmax.f32 %v1453_v7, %v1454_v31 }
 0xcd1   :  { %v1464_v40 = vmax.f32 %v1462_v35, %v1463_v6  ;;  %v1477_v48 = vsel %vm749_vm5, %v1438_v55, %v1476_v38  ;;  %v1452_v36 = vmax.f32 %v1450_v16, %v1451_v1  ;;  %v9215_v35 = vmov 1   ;;  %v8174_v6 = vld [vmem:[%s9110_s5 + $0x1] ss:$0 sm:$0xff] }
 0xcd2   :  { %v1445_v56 = vmax.f32 %v1443_v24, %v1444_v42  ;;  %v1456_v32 = vrot.slane %v1455_v33, 2  ;;  %v8180_v42 = vld [vmem:[%s9110_s5] ss:$0 sm:$0xff] }
 0xcd3   :  { %v1465_v18 = vrot.slane %v1464_v40, 1 }
 0xcd4   :  { %v1457_v30 = vmax.f32 %v1455_v33, %v1456_v32  ;;  %v1478_v20 = vsel %vm751_vm6, %v1445_v56, %v1477_v48  ;;  %v8186_v48 = vld [vmem:[%s9111_s6] ss:$0 sm:$0xff] }
 0xcd5   :  { %v1479_v15 = vsel %vm753_vm7, %v1452_v36, %v1478_v20  ;;  %v1466_v52 = vmax.f32 %v1464_v40, %v1465_v18 }
 0xcd6   :  { %v1458_v27 = vrot.slane %v1457_v30, 1 }
 0xcd8   :  { %v1459_v29 = vmax.f32 %v1457_v30, %v1458_v27 }
 0xcda   :  { %v1480_v49 = vsel %vm755_vm8, %v1459_v29, %v1479_v15 }
 0xcdb   :  { %v1481_v23 = vsel %vm757_vm9, %v1466_v52, %v1480_v49 }
 0xcdc   :  { %6501 = vmatmul.mubr.msk.f32.vlgmr.msra.gmra.mrb[8].mxu1 %vm103_vm1, %v1481_v23 }
 0xcdd   :  { %7084 = vmatpush3.bf16.msra.mxu1 %v7969_v37  ;;  %6519 = vmatprep.mubr.msk.f32.mxu1 %vm7512_vm0, %v9210_v34 }
 0xcde   :  { %7085 = vmatprep.subr.bf16.mxu1 %v9211_v47 }
 0xce1   :  { %7087 = vmatpush3.bf16.msra.mxu1 %v7976_v10 }
 0xce2   :  { %7088 = vmatprep.subr.bf16.mxu1 %v9211_v47 }
 0xce5   :  { %7090 = vmatpush3.bf16.msra.mxu1 %v7986_v63 }
 0xce6   :  { %7091 = vmatprep.subr.bf16.mxu1 %v9211_v47 }
 0xce9   :  { %7093 = vmatpush3.bf16.msra.mxu1 %v7996_v57 }
 0xcea   :  { %7100 = vmatprep.subr.bf16.mxu1 %v9211_v47 }
 0xdaf   :  { %v1550_v16 = vpop.f32.mrb[8].mxu1 }
 0xdb0   :  { %1555 = vrot.lane.b32.xlu1 %v1550_v16, %s7516_s2  ;;  %v6502_v60 = vpop.f32.mrb[9].mxu1 }
 0xe22   :  { %v1556_v3 = vpop.permute.xlu1 %1555 }
 0xe23   :  { %v1558_v14 = vadd.f32 %v1556_v3, %v8071_v21 }
 0xe25   :  { %v1559_v13 = vadd.f32 %v1558_v14, %v8002_v8 }
 0xe27   :  { %v1560_v0 = vmax.f32 %v1559_v13, 0.0 }
 0xe29   :  { %1562 = vrot.lane.b32.xlu1 %v1560_v0, %s7516_s2 }
 0xe2d   :  { %1639 = vperm.xlu1 %7395, %v8055_v43  }
 0xe31   :  { %7396 = vset.pattern.permute.xlu1 %v9215_v35 }
 0xe32   :  { %1645 = vperm.xlu1 %7396, %v8058_v44  }
 0xe9b   :  { %v1563_v7 = vpop.permute.xlu1 %1562 }
 0xe9c   :  { %6520 = vmatmul.mubr.msk.f32.vlgmr.msra.gmra.mrb[10].mxu1 %vm483_vm2, %v1563_v7 }
 0xe9d   :  { %7102 = vmatpush3.bf16.msra.mxu1 %v7705_v39  ;;  %6541 = vmatprep.mubr.msk.f32.mxu1 %vm7512_vm0, %v9210_v34 }
 0xe9e   :  { %7103 = vmatprep.subr.bf16.mxu1 %v9211_v47 }
 0xea1   :  { %7105 = vmatpush3.bf16.msra.mxu1 %v7711_v41 }
 0xea2   :  { %7122 = vmatprep.subr.bf16.mxu1 %v9211_v47 }
 0xeac   :  { %v1640_v55 = vpop.permute.xlu1 %1639 }
 0xead   :  { %v1642_v33 = vmul.f32 %v8180_v42, %v1640_v55 }
 0xeb1   :  { %v1646_v1 = vpop.permute.xlu1 %1645 }
 0xeb2   :  { %v1648_v38 = vmul.f32 %v8174_v6, %v1646_v1  ;;  %v8213_v1 = vld [vmem:[%s9114_s9] ss:$0 sm:$0xff] }
 0xeb4   :  { %v1649_v40 = vadd.f32 %v1648_v38, %v1642_v33 }
 0xeb6   :  { %v1650_v56 = vadd.f32 %v8186_v48, %v1649_v40 }
 0xf6f   :  { %v1632_v21 = vpop.f32.mrb[10].mxu1 }
 0xf70   :  { %v1633_v19 = vadd.f32 %v8018_v62, %v1632_v21  ;;  %v6521_v24 = vpop.f32.mrb[11].mxu1 }
 0xf72   :  { %v1636_v31 = vmax.f32 %v1633_v19, 0.0 }
 0xf74   :  { %6531 = vmatmul.mubr.msk.f32.vlgmr.msra.gmra.mrb[20].mxu0 %vm103_vm1, %v1636_v31 }
 0xf75   :  { %7109 = vmatpush3.bf16.msra.mxu0 %v7770_v11 }
 0xf76   :  { %7111 = vmatprep.subr.bf16.mxu0 %v7784_v17 }
 0xf79   :  { %7113 = vmatpush3.bf16.msra.mxu0 %v7784_v17 }
 0xf7a   :  { %7115 = vmatprep.subr.bf16.mxu0 %v7798_v22 }
 0xf7d   :  { %7117 = vmatpush3.bf16.msra.mxu0 %v7798_v22 }
 0xf7e   :  { %7119 = vmatprep.subr.bf16.mxu0 %v7811_v26 }
 0xf81   :  { %7121 = vmatpush3.bf16.msra.mxu0 %v7811_v26 }
 0xf82   :  { %7140 = vmatprep.subr.bf16.mxu0 %v9211_v47 }
0x1047   :  { %v1720_v32 = vpop.f32.mrb[20].mxu0 }
0x1048   :  { %v1724_v36 = vadd.f32 %v1720_v32, %v1650_v56  ;;  %v6532_v30 = vpop.f32.mrb[21].mxu0 }
0x104a   :  { %7420 = vtanh.f32 %v1724_v36  ;;  %v5965_v18 = vmul.f32 -1.442695, %v1724_v36 }
0x104c   :  { %7422 = vpow2.f32 %v5965_v18 }
0x1054   :  { %v7421_v20 = vpop.eup %7420 }
0x1055   :  { %1734 = vrot.lane.b32.xlu1 %v7421_v20, %s7516_s2 }
0x1056   :  { %v7423_v15 = vpop.eup %7422 }
0x1057   :  { %v1728_v27 = vadd.f32 1.0, %v7423_v15 }
0x1059   :  { %7424 = vrcp.f32 %v1728_v27 }
0x1063   :  { %v7425_v29 = vpop.eup %7424 }
0x1064   :  { %v1732_v23 = vmul.f32 %v7425_v29, %v8036_v28 }
0x10c7   :  { %v1735_v52 = vpop.permute.xlu1 %1734 }
0x10c8   :  { %v1737_v49 = vmul.f32 %v7425_v29, %v1735_v52 }
0x10ca   :  { %1739 = vrot.lane.b32.xlu0 %v1737_v49, %s7517_s27 }
0x113c   :  { %v1740_v16 = vpop.permute.xlu0 %1739 }
0x113d   :  { %v8192_v60 = vadd.f32 %v1740_v16, %v1732_v23 }
0x113f   :  { %7426 = vtanh.f32 %v8192_v60 }
0x1149   :  { %v7427_v3 = vpop.eup %7426 }
0x114a   :  { %1745 = vrot.lane.b32.xlu1 %v7427_v3, %s7516_s2 }
0x11bc   :  { %v1746_v14 = vpop.permute.xlu1 %1745 }
0x11bd   :  { %v1748_v13 = vmul.f32 %v7425_v29, %v1746_v14 }
0x11bf   :  { %1750 = vrot.lane.b32.xlu0 %v1748_v13, %s7517_s27  ;;  %v1824_v0 = vmul.f32 %v1748_v13, %v7721_v46  ;;  %v1833_v7 = vmul.f32 %v1748_v13, %v7731_v50 }
0x11c1   :  { %1826 = vrot.lane.b32.xlu1 %v1824_v0, %s7517_s27 }
0x11c3   :  { %1835 = vrot.lane.b32.xlu0 %v1833_v7, %s7517_s27 }
0x1231   :  { %v1751_v28 = vpop.permute.xlu0 %1750 }
0x1232   :  { %6542 = vmatmul.mubr.msk.f32.vlgmr.msra.gmra.mrb[12].mxu1 %vm103_vm1, %v1751_v28 }
0x1233   :  { %v1827_v21 = vpop.permute.xlu1 %1826  ;;  %7124 = vmatpush3.bf16.msra.mxu1 %v7891_v61  ;;  %6580 = vmatprep.mubr.msk.f32.mxu1 %vm7512_vm0, %v9210_v34 }
0x1234   :  { %v1829_v19 = vsel %vm103_vm1, %v1827_v21, 0.0  ;;  %7125 = vmatprep.subr.bf16.mxu1 %v9211_v47  ;;  %v8256_v21 = vld [vmem:[%s9116_s11] ss:$0 sm:$0xff] }
0x1235   :  { %v1836_v24 = vpop.permute.xlu0 %1835  ;;  %1830 = vadd.xlane.f32.xlu1 %v1829_v19  ;;  %9219 = vst [vmem:[#allocation22_spill] sm:$0xff] %v8256_v21 }
0x1236   :  { %v1838_v31 = vsel %vm103_vm1, %v1836_v24, 0.0 }
0x1237   :  { %1839 = vadd.xlane.f32.xlu0 %v1838_v31  ;;  %7127 = vmatpush3.bf16.msra.mxu1 %v7901_v2 }
0x1238   :  { %7128 = vmatprep.subr.bf16.mxu1 %v9211_v47 }
0x12c2   :  { %v1831_v55 = vpop.xlane.xlu1 %1830 }
0x12c3   :  { %v8216_v38 = vadd.f32 %v8213_v1, %v1831_v55 }
0x12c4   :  { %v1840_v33 = vpop.xlane.xlu0 %1839 }
0x12c5   :  { %9216 = vst [vmem:[#allocation19_spill] sm:$0xff] %v8216_v38  ;;  %v8219_v40 = vadd.f32 %v8213_v1, %v1840_v33  ;;  %v8223_v56 = vadd.f32 %v8216_v38, %v8062_v54  ;;  %v8238_v54 = vld [vmem:[%s9115_s10] ss:$0 sm:$0xff] }
0x12c7   :  { %9217 = vst [vmem:[#allocation20_spill] sm:$0xff] %v8219_v40  ;;  %1846 = vperm.xlu0 %7393, %v8223_v56   ;;  %v8228_v32 = vadd.f32 %v8219_v40, %v8067_v58  ;;  %v8244_v58 = vld [vmem:[%s9115_s10 + $0x1] ss:$0 sm:$0xff] }
0x12c8   :  { %9218 = vst [vmem:[#allocation21_spill] sm:$0xff] %v8244_v58 }
0x12c9   :  { %1852 = vperm.xlu1 %7396, %v8228_v32  }
0x12cb   :  { %7398 = vset.pattern.permute.xlu0 %v9215_v35 }
0x12cd   :  { %7397 = vset.pattern.permute.xlu1 %v9212_v59 }
0x1305   :  { %v8233_v36 = vpop.f32.mrb[12].mxu1 }
0x1306   :  { %v6543_v30 = vpop.f32.mrb[13].mxu1 }
0x1346   :  { %v1847_v20 = vpop.permute.xlu0 %1846 }
0x1347   :  { %v1849_v15 = vmul.f32 %v8238_v54, %v1847_v20 }
0x1348   :  { %v1853_v18 = vpop.permute.xlu1 %1852 }
0x1349   :  { %v1855_v27 = vmul.f32 %v8244_v58, %v1853_v18 }
0x134b   :  { %v1856_v29 = vadd.f32 %v1855_v27, %v1849_v15 }
0x134d   :  { %v1860_v52 = vcombine.high %v1856_v29, %v1856_v29  ;;  %v1867_v49 = vrot.slane %v1856_v29, %v7845_v45  ;;  %v1857_v23 = vadd.f32 %v1856_v29, %v8233_v36 }
0x134f   :  { %v1874_v16 = vrot.slane %v1860_v52, %v7845_v45  ;;  %v1875_v3 = vcombine.high %v1867_v49, %v1867_v49  ;;  %v1883_v14 = vrot.slane %v1867_v49, %v7845_v45  ;;  %v1858_v19 = vadd.f32 %v8256_v21, %v1857_v23 }
0x1351   :  { %v1876_v13 = vcombine.high %v1874_v16, %v1874_v16  ;;  %v1890_v0 = vrot.slane %v1874_v16, %v7845_v45  ;;  %v1897_v7 = vrot.slane %v1875_v3, %v7845_v45  ;;  %v1905_v28 = vcombine.high %v1883_v14, %v1883_v14 }
0x1352   :  { %v1912_v24 = vrot.slane %v1883_v14, %v7853_v51 }
0x1353   :  { %v1916_v31 = vrot.slane %v1897_v7, %v7853_v51  ;;  %v1920_v55 = vrot.slane %v1905_v28, %v7853_v51  ;;  %v1907_v33 = vcombine.high %v1897_v7, %v1897_v7  ;;  %v1928_v20 = vrot.slane %v1890_v0, %v7853_v51 }
0x1354   :  { %v1949_v30 = vsub.f32 %v1858_v19, %v1912_v24  ;;  %v1904_v18 = vrot.slane %v1876_v13, %v7845_v45  ;;  %v1906_v15 = vcombine.high %v1890_v0, %v1890_v0 }
0x1355   :  { %v1950_v27 = vsub.f32 %v1858_v19, %v1916_v31  ;;  %v1951_v29 = vsub.f32 %v1858_v19, %v1920_v55  ;;  %v1924_v52 = vrot.slane %v1907_v33, %v7853_v51  ;;  %v1953_v7 = vsub.f32 %v1858_v19, %v1928_v20 }
0x1356   :  { %v1957_v49 = vmax.f32 %v1949_v30, 0.0  ;;  %v1932_v23 = vrot.slane %v1904_v18, %v7853_v51  ;;  %v1908_v44 = vcombine.high %v1904_v18, %v1904_v18  ;;  %v1936_v28 = vrot.slane %v1906_v15, %v7853_v51  ;;  %v8285_v15 = vld [vmem:[%s9119_s14] ss:$0 sm:$0xff] }
0x1357   :  { %v1958_v16 = vmax.f32 %v1950_v27, 0.0  ;;  %v1959_v3 = vmax.f32 %v1951_v29, 0.0  ;;  %v1952_v14 = vsub.f32 %v1858_v19, %v1924_v52  ;;  %v1961_v31 = vmax.f32 %v1953_v7, 0.0  ;;  %9220 = vst [vmem:[#allocation23_spill] sm:$0xff] %v8285_v15 }
0x1358   :  { %6560 = vmatprep.mubr.msk.f32.mxu0 %vm483_vm2, %v1957_v49  ;;  %v1954_v0 = vsub.f32 %v1858_v19, %v1932_v23  ;;  %v1940_v24 = vrot.slane %v1908_v44, %v7853_v51  ;;  %v1955_v55 = vsub.f32 %v1858_v19, %v1936_v28 }
0x1359   :  { %6561 = vmatmul.mubr.msk.f32.vlgmr.msra.gmra.mrb[22].mxu0 %vm483_vm2, %v1958_v16  ;;  %v1960_v13 = vmax.f32 %v1952_v14, 0.0 }
0x135a   :  { %6563 = vmatprep.mubr.msk.f32.mxu0 %vm483_vm2, %v1959_v3  ;;  %7142 = vmatpush3.bf16.msra.mxu0 %v7643_v4  ;;  %v1962_v33 = vmax.f32 %v1954_v0, 0.0  ;;  %v1956_v30 = vsub.f32 %v1858_v19, %v1940_v24  ;;  %v1963_v20 = vmax.f32 %v1955_v55, 0.0 }
0x135b   :  { %7143 = vmatprep.subr.bf16.mxu0 %v9211_v47 }
0x135c   :  { %v1964_v44 = vmax.f32 %v1956_v30, 0.0 }
0x135d   :  { %6564 = vmatmul.mubr.msk.f32.gmra.mrb[24].mxu0 %vm483_vm2, %v1960_v13 }
0x135e   :  { %6566 = vmatprep.mubr.msk.f32.mxu0 %vm483_vm2, %v1961_v31  ;;  %7145 = vmatpush3.bf16.msra.mxu0 %v7656_v9 }
0x135f   :  { %7153 = vmatprep.subr.bf16.mxu0 %v7770_v11 }
0x1361   :  { %6567 = vmatmul.mubr.msk.f32.gmra.mrb[26].mxu0 %vm483_vm2, %v1962_v33 }
0x1362   :  { %6569 = vmatprep.mubr.msk.f32.mxu0 %vm483_vm2, %v1963_v20  ;;  %v9221_v20 = vld [vmem:[#allocation14_spill] sm:$0xff] }
0x1365   :  { %6570 = vmatmul.mubr.msk.f32.gmra.mrb[28].mxu0 %vm483_vm2, %v1964_v44 }
0x1366   :  { %6610 = vmatprep.mubr.msk.f32.mxu0 %vm7512_vm0, %v9210_v34 }
0x142c   :  { %v6562_v18 = vpop.f32.mrb[22].mxu0 }
0x142d   :  { %v2061_v19 = vadd.f32 %v8285_v15, %v6562_v18  ;;  %v2055_v27 = vpop.f32.mrb[23].mxu0 }
0x142e   :  { %v2056_v29 = vadd.f32 %v8285_v15, %v2055_v27 }
0x142f   :  { %v2095_v52 = vmax.f32 %v2061_v19, 0.0 }
0x1430   :  { %v2094_v49 = vmax.f32 %v2056_v29, 0.0  ;;  %v6565_v23 = vpop.f32.mrb[24].mxu0  ;;  %v9222_v29 = vld [vmem:[#allocation13_spill] sm:$0xff] }
0x1431   :  { %v2103_v16 = vmul.f32 %v2095_v52, %v7907_v12  ;;  %v2071_v3 = vadd.f32 %v8285_v15, %v6565_v23  ;;  %v2065_v14 = vpop.f32.mrb[25].mxu0 }
0x1432   :  { %v2102_v7 = vmul.f32 %v2094_v49, %v7905_v5  ;;  %v2066_v28 = vadd.f32 %v8285_v15, %v2065_v14 }
0x1433   :  { %v2117_v13 = vsel %vm103_vm1, %v2103_v16, -inf  ;;  %v2097_v0 = vmax.f32 %v2071_v3, 0.0 }
0x1434   :  { %v2118_v24 = vrot.slane %v2117_v13, 4  ;;  %v2110_v31 = vsel %vm103_vm1, %v2102_v7, -inf  ;;  %v2096_v55 = vmax.f32 %v2066_v28, 0.0  ;;  %v6568_v33 = vpop.f32.mrb[26].mxu0 }
0x1435   :  { %v2111_v30 = vrot.slane %v2110_v31, 4  ;;  %v2105_v44 = vmul.f32 %v2097_v0, %v9221_v20  ;;  %v2081_v18 = vadd.f32 %v8285_v15, %v6568_v33  ;;  %v2075_v19 = vpop.f32.mrb[27].mxu0  ;;  %v9223_v20 = vld [vmem:[#allocation16_spill] sm:$0xff] }
0x1436   :  { %v2119_v27 = vmax.f32 %v2117_v13, %v2118_v24  ;;  %v2104_v52 = vmul.f32 %v2096_v55, %v9222_v29  ;;  %v2076_v49 = vadd.f32 %v8285_v15, %v2075_v19  ;;  %v9224_v19 = vld [vmem:[#allocation15_spill] sm:$0xff] }
0x1437   :  { %v2112_v23 = vmax.f32 %v2110_v31, %v2111_v30  ;;  %v2131_v16 = vsel %vm103_vm1, %v2105_v44, -inf  ;;  %v2099_v3 = vmax.f32 %v2081_v18, 0.0 }
0x1438   :  { %v2120_v14 = vrot.slane %v2119_v27, 2  ;;  %v2132_v43 = vrot.slane %v2131_v16, 4  ;;  %v2124_v7 = vsel %vm103_vm1, %v2104_v52, -inf  ;;  %v2098_v28 = vmax.f32 %v2076_v49, 0.0  ;;  %v6571_v5 = vpop.f32.mrb[28].mxu0 }
0x1439   :  { %v2113_v12 = vrot.slane %v2112_v23, 2  ;;  %v2125_v0 = vrot.slane %v2124_v7, 4  ;;  %v2107_v33 = vmul.f32 %v2099_v3, %v9223_v20  ;;  %v2091_v13 = vadd.f32 %v8285_v15, %v6571_v5  ;;  %v2085_v24 = vpop.f32.mrb[29].mxu0 }
0x143a   :  { %v2121_v55 = vmax.f32 %v2119_v27, %v2120_v14  ;;  %v2133_v29 = vmax.f32 %v2131_v16, %v2132_v43  ;;  %v2106_v31 = vmul.f32 %v2098_v28, %v9224_v19  ;;  %v2086_v30 = vadd.f32 %v8285_v15, %v2085_v24 }
0x143b   :  { %v2114_v44 = vmax.f32 %v2112_v23, %v2113_v12  ;;  %v2126_v18 = vmax.f32 %v2124_v7, %v2125_v0  ;;  %v2145_v9 = vsel %vm103_vm1, %v2107_v33, -inf  ;;  %v2101_v52 = vmax.f32 %v2091_v13, 0.0 }
0x143c   :  { %v2122_v49 = vrot.slane %v2121_v55, 1  ;;  %v2134_v4 = vrot.slane %v2133_v29, 2  ;;  %v2146_v51 = vrot.slane %v2145_v9, 4  ;;  %v2138_v21 = vsel %vm103_vm1, %v2106_v31, -inf }
0x143d   :  { %v2115_v3 = vrot.slane %v2114_v44, 1  ;;  %v2127_v20 = vrot.slane %v2126_v18, 2  ;;  %v2139_v5 = vrot.slane %v2138_v21, 4  ;;  %v2109_v27 = vmul.f32 %v2101_v52, %v7941_v53 }
0x143e   :  { %v2123_v43 = vmax.f32 %v2121_v55, %v2122_v49  ;;  %v2135_v16 = vmax.f32 %v2133_v29, %v2134_v4  ;;  %v2147_v14 = vmax.f32 %v2145_v9, %v2146_v51  ;;  %v2100_v28 = vmax.f32 %v2086_v30, 0.0 }
0x143f   :  { %v2116_v24 = vmax.f32 %v2114_v44, %v2115_v3  ;;  %v2128_v12 = vmax.f32 %v2126_v18, %v2127_v20  ;;  %v2140_v23 = vmax.f32 %v2138_v21, %v2139_v5  ;;  %v2159_v7 = vsel %vm103_vm1, %v2109_v27, -inf }
0x1440   :  { %v2136_v0 = vrot.slane %v2135_v16, 1  ;;  %v2148_v33 = vrot.slane %v2147_v14, 2  ;;  %v2160_v13 = vrot.slane %v2159_v7, 4  ;;  %v2108_v19 = vmul.f32 %v2100_v28, %v7945_v25 }
0x1441   :  { %v2174_v31 = vsel %vm745_vm3, %v2123_v43, %v2116_v24  ;;  %v2129_v15 = vrot.slane %v2128_v12, 1  ;;  %v2141_v45 = vrot.slane %v2140_v23, 2 }
0x1442   :  { %v2149_v58 = vmax.f32 %v2147_v14, %v2148_v33  ;;  %v2161_v52 = vmax.f32 %v2159_v7, %v2160_v13  ;;  %v2152_v4 = vsel %vm103_vm1, %v2108_v19, -inf  ;;  %v2137_v20 = vmax.f32 %v2135_v16, %v2136_v0 }
0x1443   :  { %v2130_v9 = vmax.f32 %v2128_v12, %v2129_v15  ;;  %v2142_v51 = vmax.f32 %v2140_v23, %v2141_v45  ;;  %v2153_v29 = vrot.slane %v2152_v4, 4 }
0x1444   :  { %v2150_v21 = vrot.slane %v2149_v58, 1  ;;  %v2162_v55 = vrot.slane %v2161_v52, 2 }
0x1445   :  { %v2175_v30 = vsel %vm747_vm4, %v2130_v9, %v2174_v31  ;;  %v2143_v44 = vrot.slane %v2142_v51, 1  ;;  %v2154_v18 = vmax.f32 %v2152_v4, %v2153_v29 }
0x1446   :  { %v2163_v49 = vmax.f32 %v2161_v52, %v2162_v55  ;;  %v2176_v3 = vsel %vm749_vm5, %v2137_v20, %v2175_v30  ;;  %v2151_v43 = vmax.f32 %v2149_v58, %v2150_v21 }
0x1447   :  { %v2144_v5 = vmax.f32 %v2142_v51, %v2143_v44  ;;  %v2155_v27 = vrot.slane %v2154_v18, 2 }
0x1448   :  { %v2164_v19 = vrot.slane %v2163_v49, 1 }
0x1449   :  { %v2156_v14 = vmax.f32 %v2154_v18, %v2155_v27  ;;  %v2177_v28 = vsel %vm751_vm6, %v2144_v5, %v2176_v3 }
0x144a   :  { %v2178_v45 = vsel %vm753_vm7, %v2151_v43, %v2177_v28  ;;  %v2165_v24 = vmax.f32 %v2163_v49, %v2164_v19 }
0x144b   :  { %v2157_v15 = vrot.slane %v2156_v14, 1 }
0x144d   :  { %v2158_v16 = vmax.f32 %v2156_v14, %v2157_v15 }
0x144f   :  { %v2179_v12 = vsel %vm755_vm8, %v2158_v16, %v2178_v45 }
0x1450   :  { %v2180_v23 = vsel %vm757_vm9, %v2165_v24, %v2179_v12 }
0x1451   :  { %6581 = vmatmul.mubr.msk.f32.vlgmr.msra.gmra.mrb[14].mxu1 %vm103_vm1, %v2180_v23 }
0x1452   :  { %7130 = vmatpush3.bf16.msra.mxu1 %v7969_v37  ;;  %6599 = vmatprep.mubr.msk.f32.mxu1 %vm7512_vm0, %v9210_v34 }
0x1453   :  { %7131 = vmatprep.subr.bf16.mxu1 %v9211_v47 }
0x1456   :  { %7133 = vmatpush3.bf16.msra.mxu1 %v7976_v10 }
0x1457   :  { %7134 = vmatprep.subr.bf16.mxu1 %v9211_v47 }
0x145a   :  { %7136 = vmatpush3.bf16.msra.mxu1 %v7986_v63 }
0x145b   :  { %7137 = vmatprep.subr.bf16.mxu1 %v9211_v47 }
0x145e   :  { %7139 = vmatpush3.bf16.msra.mxu1 %v7996_v57 }
0x145f   :  { %7146 = vmatprep.subr.bf16.mxu1 %v9211_v47 }
0x1524   :  { %v2249_v58 = vpop.f32.mrb[14].mxu1 }
0x1525   :  { %2254 = vrot.lane.b32.xlu1 %v2249_v58, %s7516_s2  ;;  %v6582_v7 = vpop.f32.mrb[15].mxu1 }
0x1529   :  { %2338 = vperm.xlu1 %7397, %v8216_v38  }
0x152d   :  { %7400 = vset.pattern.permute.xlu1 %v9215_v35 }
0x1597   :  { %v2255_v0 = vpop.permute.xlu1 %2254 }
0x1598   :  { %v2257_v33 = vadd.f32 %v2255_v0, %v8233_v36 }
0x159a   :  { %v2258_v13 = vadd.f32 %v2257_v33, %v8002_v8 }
0x159c   :  { %v2259_v31 = vmax.f32 %v2258_v13, 0.0 }
0x159e   :  { %2261 = vrot.lane.b32.xlu0 %v2259_v31, %s7516_s2 }
0x15a2   :  { %2344 = vperm.xlu0 %7398, %v8219_v40  }
0x15a6   :  { %7399 = vset.pattern.permute.xlu0 %v9212_v59 }
0x15a8   :  { %v2339_v29 = vpop.permute.xlu1 %2338 }
0x15a9   :  { %v2341_v21 = vmul.f32 %v8180_v42, %v2339_v29 }
0x1610   :  { %v2262_v52 = vpop.permute.xlu0 %2261 }
0x1611   :  { %6600 = vmatmul.mubr.msk.f32.vlgmr.msra.gmra.mrb[16].mxu1 %vm483_vm2, %v2262_v52 }
0x1612   :  { %7148 = vmatpush3.bf16.msra.mxu1 %v7705_v39  ;;  %6621 = vmatprep.mubr.msk.f32.mxu1 %vm7512_vm0, %v9210_v34 }
0x1613   :  { %7149 = vmatprep.subr.bf16.mxu1 %v9211_v47 }
0x1616   :  { %7151 = vmatpush3.bf16.msra.mxu1 %v7711_v41 }
0x1617   :  { %7168 = vmatprep.subr.bf16.mxu1 %v9211_v47 }
0x16e4   :  { %v2331_v36 = vpop.f32.mrb[16].mxu1 }
0x16e5   :  { %v2332_v4 = vadd.f32 %v8018_v62, %v2331_v36  ;;  %v6601_v9 = vpop.f32.mrb[17].mxu1  ;;  %v2345_v62 = vpop.permute.xlu0 %2344 }
0x16e6   :  { %v2347_v20 = vmul.f32 %v8174_v6, %v2345_v62 }
0x16e7   :  { %v2335_v51 = vmax.f32 %v2332_v4, 0.0 }
0x16e8   :  { %v2348_v55 = vadd.f32 %v2347_v20, %v2341_v21 }
0x16e9   :  { %6611 = vmatmul.mubr.msk.f32.vlgmr.msra.gmra.mrb[30].mxu0 %vm103_vm1, %v2335_v51 }
0x16ea   :  { %7155 = vmatpush3.bf16.msra.mxu0 %v7770_v11  ;;  %v2349_v30 = vadd.f32 %v8186_v48, %v2348_v55 }
0x16eb   :  { %7157 = vmatprep.subr.bf16.mxu0 %v7784_v17 }
0x16ee   :  { %7159 = vmatpush3.bf16.msra.mxu0 %v7784_v17 }
0x16ef   :  { %7161 = vmatprep.subr.bf16.mxu0 %v7798_v22 }
0x16f2   :  { %7163 = vmatpush3.bf16.msra.mxu0 %v7798_v22 }
0x16f3   :  { %7165 = vmatprep.subr.bf16.mxu0 %v7811_v26 }
0x16f6   :  { %7167 = vmatpush3.bf16.msra.mxu0 %v7811_v26 }
0x16f7   :  { %7186 = vmatprep.subr.bf16.mxu0 %v9211_v47 }
0x17bc   :  { %v2419_v44 = vpop.f32.mrb[30].mxu0 }
0x17bd   :  { %v2423_v18 = vadd.f32 %v2419_v44, %v2349_v30  ;;  %v6612_v49 = vpop.f32.mrb[31].mxu0  ;;  %v9227_v44 = vld [vmem:[#allocation21_spill] sm:$0xff] }
0x17bf   :  { %7428 = vtanh.f32 %v2423_v18  ;;  %v5978_v5 = vmul.f32 -1.442695, %v2423_v18 }
0x17c1   :  { %7430 = vpow2.f32 %v5978_v5 }
0x17c9   :  { %v7429_v3 = vpop.eup %7428 }
0x17ca   :  { %2433 = vrot.lane.b32.xlu1 %v7429_v3, %s7516_s2  ;;  %v9228_v3 = vld [vmem:[#allocation9_spill] sm:$0xff] }
0x17cb   :  { %v7431_v27 = vpop.eup %7430 }
0x17cc   :  { %v2427_v43 = vadd.f32 1.0, %v7431_v27 }
0x17ce   :  { %7432 = vrcp.f32 %v2427_v43 }
0x17d8   :  { %v7433_v14 = vpop.eup %7432 }
0x17d9   :  { %v2431_v45 = vmul.f32 %v7433_v14, %v8192_v60 }
0x183c   :  { %v2434_v28 = vpop.permute.xlu1 %2433 }
0x183d   :  { %v2436_v19 = vmul.f32 %v7433_v14, %v2434_v28 }
0x183f   :  { %2438 = vrot.lane.b32.xlu1 %v2436_v19, %s7517_s27 }
0x18b1   :  { %v2439_v15 = vpop.permute.xlu1 %2438 }
0x18b2   :  { %v8360_v16 = vadd.f32 %v2439_v15, %v2431_v45  ;;  %v9229_v15 = vld [vmem:[#allocation22_spill] sm:$0xff] }
0x18b4   :  { %7434 = vtanh.f32 %v8360_v16 }
0x18be   :  { %v7435_v24 = vpop.eup %7434 }
0x18bf   :  { %2444 = vrot.lane.b32.xlu0 %v7435_v24, %s7516_s2 }
0x1931   :  { %v2445_v12 = vpop.permute.xlu0 %2444 }
0x1932   :  { %v2447_v23 = vmul.f32 %v7433_v14, %v2445_v12  ;;  %v9230_v12 = vld [vmem:[#allocation10_spill] sm:$0xff] }
0x1934   :  { %2449 = vrot.lane.b32.xlu1 %v2447_v23, %s7517_s27  ;;  %v2523_v58 = vmul.f32 %v2447_v23, %v7721_v46  ;;  %v2532_v7 = vmul.f32 %v2447_v23, %v7731_v50 }
0x1936   :  { %2525 = vrot.lane.b32.xlu0 %v2523_v58, %s7517_s27 }
0x1938   :  { %2534 = vrot.lane.b32.xlu1 %v2532_v7, %s7517_s27 }
0x19a6   :  { %v2450_v60 = vpop.permute.xlu1 %2449 }
0x19a7   :  { %6622 = vmatmul.mubr.msk.f32.vlgmr.msra.gmra.mrb[18].mxu1 %vm103_vm1, %v2450_v60 }
0x19a8   :  { %v2526_v0 = vpop.permute.xlu0 %2525  ;;  %7170 = vmatpush3.bf16.msra.mxu1 %v7891_v61  ;;  %6660 = vmatprep.mubr.msk.f32.mxu1 %vm7512_vm0, %v9210_v34 }
0x19a9   :  { %v2528_v33 = vsel %vm103_vm1, %v2526_v0, 0.0  ;;  %7171 = vmatprep.subr.bf16.mxu1 %v9211_v47 }
0x19aa   :  { %v2535_v13 = vpop.permute.xlu1 %2534  ;;  %2529 = vadd.xlane.f32.xlu0 %v2528_v33 }
0x19ab   :  { %v2537_v31 = vsel %vm103_vm1, %v2535_v13, 0.0 }
0x19ac   :  { %2538 = vadd.xlane.f32.xlu1 %v2537_v31  ;;  %7173 = vmatpush3.bf16.msra.mxu1 %v7901_v2 }
0x19ad   :  { %7174 = vmatprep.subr.bf16.mxu1 %v9211_v47 }
0x1a37   :  { %v2530_v52 = vpop.xlane.xlu0 %2529 }
0x1a38   :  { %v8379_v36 = vadd.f32 %v8213_v1, %v2530_v52 }
0x1a39   :  { %v2539_v4 = vpop.xlane.xlu1 %2538 }
0x1a3a   :  { %9225 = vst [vmem:[#allocation24_spill] sm:$0xff] %v8379_v36  ;;  %v8382_v9 = vadd.f32 %v8213_v1, %v2539_v4  ;;  %v8386_v51 = vadd.f32 %v8379_v36, %v8223_v56 }
0x1a3c   :  { %9226 = vst [vmem:[#allocation25_spill] sm:$0xff] %v8382_v9  ;;  %2545 = vperm.xlu0 %7399, %v8386_v51   ;;  %v8391_v62 = vadd.f32 %v8382_v9, %v8228_v32 }
0x1a3e   :  { %2551 = vperm.xlu1 %7400, %v8391_v62  }
0x1a42   :  { %7401 = vset.pattern.permute.xlu1 %v9212_v59 }
0x1a7a   :  { %v8395_v29 = vpop.f32.mrb[18].mxu1 }
0x1a7b   :  { %v6623_v20 = vpop.f32.mrb[19].mxu1 }
0x1abb   :  { %v2546_v21 = vpop.permute.xlu0 %2545 }
0x1abc   :  { %v2548_v30 = vmul.f32 %v8238_v54, %v2546_v21 }
0x1abd   :  { %v2552_v55 = vpop.permute.xlu1 %2551 }
0x1abe   :  { %v2554_v56 = vmul.f32 %v9227_v44, %v2552_v55 }
0x1ac0   :  { %v2555_v18 = vadd.f32 %v2554_v56, %v2548_v30 }
0x1ac2   :  { %v2559_v49 = vcombine.high %v2555_v18, %v2555_v18  ;;  %v2566_v5 = vrot.slane %v2555_v18, %v9228_v3  ;;  %v2556_v32 = vadd.f32 %v2555_v18, %v8395_v29 }
0x1ac4   :  { %v2573_v27 = vrot.slane %v2559_v49, %v9228_v3  ;;  %v2574_v43 = vcombine.high %v2566_v5, %v2566_v5  ;;  %v2582_v59 = vrot.slane %v2566_v5, %v9228_v3  ;;  %v2557_v24 = vadd.f32 %v9229_v15, %v2556_v32 }
0x1ac6   :  { %v2575_v14 = vcombine.high %v2573_v27, %v2573_v27  ;;  %v2589_v28 = vrot.slane %v2573_v27, %v9228_v3  ;;  %v2596_v19 = vrot.slane %v2574_v43, %v9228_v3  ;;  %v2604_v45 = vcombine.high %v2582_v59, %v2582_v59  ;;  %v9231_v27 = vld [vmem:[#allocation5_spill] sm:$0xff] }
0x1ac7   :  { %v2611_v23 = vrot.slane %v2582_v59, %v9230_v12 }
0x1ac8   :  { %v2615_v58 = vrot.slane %v2596_v19, %v9230_v12  ;;  %v2619_v7 = vrot.slane %v2604_v45, %v9230_v12  ;;  %v2606_v60 = vcombine.high %v2596_v19, %v2596_v19  ;;  %v2627_v33 = vrot.slane %v2589_v28, %v9230_v12  ;;  %v9232_v45 = vld [vmem:[#allocation6_spill] sm:$0xff] }
0x1ac9   :  { %v2648_v0 = vsub.f32 %v2557_v24, %v2611_v23  ;;  %v2603_v13 = vrot.slane %v2575_v14, %v9228_v3  ;;  %v2605_v31 = vcombine.high %v2589_v28, %v2589_v28 }
0x1aca   :  { %v2649_v52 = vsub.f32 %v2557_v24, %v2615_v58  ;;  %v2650_v4 = vsub.f32 %v2557_v24, %v2619_v7  ;;  %v2623_v20 = vrot.slane %v2606_v60, %v9230_v12  ;;  %v2652_v5 = vsub.f32 %v2557_v24, %v2627_v33  ;;  %v9233_v33 = vld [vmem:[#allocation23_spill] sm:$0xff] }
0x1acb   :  { %v2656_v21 = vmax.f32 %v2648_v0, 0.0  ;;  %v2631_v55 = vrot.slane %v2603_v13, %v9230_v12  ;;  %v2607_v49 = vcombine.high %v2603_v13, %v2603_v13  ;;  %v2635_v32 = vrot.slane %v2605_v31, %v9230_v12 }
0x1acc   :  { %v2657_v30 = vmax.f32 %v2649_v52, 0.0  ;;  %v2658_v56 = vmax.f32 %v2650_v4, 0.0  ;;  %v2651_v18 = vsub.f32 %v2557_v24, %v2623_v20  ;;  %v2660_v28 = vmax.f32 %v2652_v5, 0.0 }
0x1acd   :  { %6640 = vmatprep.mubr.msk.f32.mxu0 %vm483_vm2, %v2656_v21  ;;  %v2653_v59 = vsub.f32 %v2557_v24, %v2631_v55  ;;  %v2639_v14 = vrot.slane %v2607_v49, %v9230_v12  ;;  %v2654_v19 = vsub.f32 %v2557_v24, %v2635_v32  ;;  %v9234_v21 = vld [vmem:[#allocation12_spill] sm:$0xff] }
0x1ace   :  { %6641 = vmatmul.mubr.msk.f32.vlgmr.msra.gmra.mrb[32].mxu0 %vm483_vm2, %v2657_v30  ;;  %v2659_v43 = vmax.f32 %v2651_v18, 0.0  ;;  %v9235_v18 = vld [vmem:[#allocation11_spill] sm:$0xff] }
0x1acf   :  { %6643 = vmatprep.mubr.msk.f32.mxu0 %vm483_vm2, %v2658_v56  ;;  %7188 = vmatpush3.bf16.msra.mxu0 %v9231_v27  ;;  %v2661_v23 = vmax.f32 %v2653_v59, 0.0  ;;  %v2655_v58 = vsub.f32 %v2557_v24, %v2639_v14  ;;  %v2662_v7 = vmax.f32 %v2654_v19, 0.0 }
0x1ad0   :  { %7189 = vmatprep.subr.bf16.mxu0 %v9211_v47 }
0x1ad1   :  { %v2663_v60 = vmax.f32 %v2655_v58, 0.0  ;;  %v9236_v58 = vld [vmem:[#allocation14_spill] sm:$0xff] }
0x1ad2   :  { %6644 = vmatmul.mubr.msk.f32.gmra.mrb[34].mxu0 %vm483_vm2, %v2659_v43 }
0x1ad3   :  { %6646 = vmatprep.mubr.msk.f32.mxu0 %vm483_vm2, %v2660_v28  ;;  %7191 = vmatpush3.bf16.msra.mxu0 %v9232_v45 }
0x1ad4   :  { %7199 = vmatprep.subr.bf16.mxu0 %v7770_v11 }
0x1ad6   :  { %6647 = vmatmul.mubr.msk.f32.gmra.mrb[36].mxu0 %vm483_vm2, %v2661_v23 }
0x1ad7   :  { %6649 = vmatprep.mubr.msk.f32.mxu0 %vm483_vm2, %v2662_v7 }
0x1ada   :  { %6650 = vmatmul.mubr.msk.f32.gmra.mrb[38].mxu0 %vm483_vm2, %v2663_v60 }
0x1adb   :  { %6690 = vmatprep.mubr.msk.f32.mxu0 %vm7512_vm0, %v9210_v34 }
0x1ba1   :  { %v6642_v0 = vpop.f32.mrb[32].mxu0 }
0x1ba2   :  { %v2760_v13 = vadd.f32 %v9233_v33, %v6642_v0  ;;  %v2754_v31 = vpop.f32.mrb[33].mxu0 }
0x1ba3   :  { %v2755_v52 = vadd.f32 %v9233_v33, %v2754_v31  ;;  %v9237_v31 = vld [vmem:[#allocation13_spill] sm:$0xff] }
0x1ba4   :  { %v2794_v24 = vmax.f32 %v2760_v13, 0.0 }
0x1ba5   :  { %v2793_v4 = vmax.f32 %v2755_v52, 0.0  ;;  %v6645_v20 = vpop.f32.mrb[34].mxu0 }
0x1ba6   :  { %v2802_v55 = vmul.f32 %v2794_v24, %v9234_v21  ;;  %v2770_v30 = vadd.f32 %v9233_v33, %v6645_v20  ;;  %v2764_v56 = vpop.f32.mrb[35].mxu0 }
0x1ba7   :  { %v2801_v49 = vmul.f32 %v2793_v4, %v9235_v18  ;;  %v2765_v5 = vadd.f32 %v9233_v33, %v2764_v56 }
0x1ba8   :  { %v2816_v32 = vsel %vm103_vm1, %v2802_v55, -inf  ;;  %v2796_v43 = vmax.f32 %v2770_v30, 0.0 }
0x1ba9   :  { %v2817_v59 = vrot.slane %v2816_v32, 4  ;;  %v2809_v14 = vsel %vm103_vm1, %v2801_v49, -inf  ;;  %v2795_v28 = vmax.f32 %v2765_v5, 0.0  ;;  %v6648_v19 = vpop.f32.mrb[36].mxu0 }
0x1baa   :  { %v2810_v23 = vrot.slane %v2809_v14, 4  ;;  %v2804_v7 = vmul.f32 %v2796_v43, %v9236_v58  ;;  %v2780_v60 = vadd.f32 %v9233_v33, %v6648_v19  ;;  %v2774_v0 = vpop.f32.mrb[37].mxu0  ;;  %v9238_v58 = vld [vmem:[#allocation16_spill] sm:$0xff] }
0x1bab   :  { %v2818_v13 = vmax.f32 %v2816_v32, %v2817_v59  ;;  %v2803_v52 = vmul.f32 %v2795_v28, %v9237_v31  ;;  %v2775_v24 = vadd.f32 %v9233_v33, %v2774_v0  ;;  %v9239_v0 = vld [vmem:[#allocation15_spill] sm:$0xff] }
0x1bac   :  { %v2811_v4 = vmax.f32 %v2809_v14, %v2810_v23  ;;  %v2830_v20 = vsel %vm103_vm1, %v2804_v7, -inf  ;;  %v2798_v55 = vmax.f32 %v2780_v60, 0.0 }
0x1bad   :  { %v2819_v30 = vrot.slane %v2818_v13, 2  ;;  %v2831_v56 = vrot.slane %v2830_v20, 4  ;;  %v2823_v49 = vsel %vm103_vm1, %v2803_v52, -inf  ;;  %v2797_v5 = vmax.f32 %v2775_v24, 0.0  ;;  %v6651_v40 = vpop.f32.mrb[38].mxu0 }
0x1bae   :  { %v2812_v38 = vrot.slane %v2811_v4, 2  ;;  %v2824_v43 = vrot.slane %v2823_v49, 4  ;;  %v2806_v19 = vmul.f32 %v2798_v55, %v9238_v58  ;;  %v2790_v32 = vadd.f32 %v9233_v33, %v6651_v40  ;;  %v2784_v59 = vpop.f32.mrb[39].mxu0 }
0x1baf   :  { %v2820_v28 = vmax.f32 %v2818_v13, %v2819_v30  ;;  %v2832_v31 = vmax.f32 %v2830_v20, %v2831_v56  ;;  %v2805_v14 = vmul.f32 %v2797_v5, %v9239_v0  ;;  %v2785_v23 = vadd.f32 %v9233_v33, %v2784_v59 }
0x1bb0   :  { %v2813_v7 = vmax.f32 %v2811_v4, %v2812_v38  ;;  %v2825_v60 = vmax.f32 %v2823_v49, %v2824_v43  ;;  %v2844_v18 = vsel %vm103_vm1, %v2806_v19, -inf  ;;  %v2800_v52 = vmax.f32 %v2790_v32, 0.0 }
0x1bb1   :  { %v2821_v24 = vrot.slane %v2820_v28, 1  ;;  %v2833_v21 = vrot.slane %v2832_v31, 2  ;;  %v2845_v45 = vrot.slane %v2844_v18, 4  ;;  %v2837_v27 = vsel %vm103_vm1, %v2805_v14, -inf }
0x1bb2   :  { %v2814_v55 = vrot.slane %v2813_v7, 1  ;;  %v2826_v58 = vrot.slane %v2825_v60, 2  ;;  %v2838_v40 = vrot.slane %v2837_v27, 4  ;;  %v2808_v13 = vmul.f32 %v2800_v52, %v7941_v53 }
0x1bb3   :  { %v2822_v20 = vmax.f32 %v2820_v28, %v2821_v24  ;;  %v2834_v30 = vmax.f32 %v2832_v31, %v2833_v21  ;;  %v2846_v56 = vmax.f32 %v2844_v18, %v2845_v45  ;;  %v2799_v5 = vmax.f32 %v2785_v23, 0.0 }
0x1bb4   :  { %v2815_v59 = vmax.f32 %v2813_v7, %v2814_v55  ;;  %v2827_v38 = vmax.f32 %v2825_v60, %v2826_v58  ;;  %v2839_v4 = vmax.f32 %v2837_v27, %v2838_v40  ;;  %v2858_v49 = vsel %vm103_vm1, %v2808_v13, -inf }
0x1bb5   :  { %v2835_v43 = vrot.slane %v2834_v30, 1  ;;  %v2847_v19 = vrot.slane %v2846_v56, 2  ;;  %v2859_v32 = vrot.slane %v2858_v49, 4  ;;  %v2807_v0 = vmul.f32 %v2799_v5, %v7945_v25 }
0x1bb6   :  { %v2873_v14 = vsel %vm745_vm3, %v2822_v20, %v2815_v59  ;;  %v2828_v33 = vrot.slane %v2827_v38, 1  ;;  %v2840_v12 = vrot.slane %v2839_v4, 2 }
0x1bb7   :  { %v2848_v15 = vmax.f32 %v2846_v56, %v2847_v19  ;;  %v2860_v52 = vmax.f32 %v2858_v49, %v2859_v32  ;;  %v2851_v21 = vsel %vm103_vm1, %v2807_v0, -inf  ;;  %v2836_v58 = vmax.f32 %v2834_v30, %v2835_v43 }
0x1bb8   :  { %v2829_v45 = vmax.f32 %v2827_v38, %v2828_v33  ;;  %v2841_v18 = vmax.f32 %v2839_v4, %v2840_v12  ;;  %v2852_v31 = vrot.slane %v2851_v21, 4 }
0x1bb9   :  { %v2849_v27 = vrot.slane %v2848_v15, 1  ;;  %v2861_v28 = vrot.slane %v2860_v52, 2 }
0x1bba   :  { %v2874_v23 = vsel %vm747_vm4, %v2829_v45, %v2873_v14  ;;  %v2842_v7 = vrot.slane %v2841_v18, 1  ;;  %v2853_v60 = vmax.f32 %v2851_v21, %v2852_v31  ;;  %v8488_v21 = vld [vmem:[%s9123_s18] ss:$0 sm:$0xff] }
0x1bbb   :  { %v2862_v24 = vmax.f32 %v2860_v52, %v2861_v28  ;;  %v2875_v55 = vsel %vm749_vm5, %v2836_v58, %v2874_v23  ;;  %v2850_v20 = vmax.f32 %v2848_v15, %v2849_v27 }
0x1bbc   :  { %v2843_v40 = vmax.f32 %v2841_v18, %v2842_v7  ;;  %v2854_v13 = vrot.slane %v2853_v60, 2 }
0x1bbd   :  { %v2863_v0 = vrot.slane %v2862_v24, 1 }
0x1bbe   :  { %v2855_v56 = vmax.f32 %v2853_v60, %v2854_v13  ;;  %v2876_v5 = vsel %vm751_vm6, %v2843_v40, %v2875_v55 }
0x1bbf   :  { %v2877_v12 = vsel %vm753_vm7, %v2850_v20, %v2876_v5  ;;  %v2864_v59 = vmax.f32 %v2862_v24, %v2863_v0 }
0x1bc0   :  { %v2856_v33 = vrot.slane %v2855_v56, 1 }
0x1bc2   :  { %v2857_v30 = vmax.f32 %v2855_v56, %v2856_v33 }
0x1bc4   :  { %v2878_v38 = vsel %vm755_vm8, %v2857_v30, %v2877_v12 }
0x1bc5   :  { %v2879_v4 = vsel %vm757_vm9, %v2864_v59, %v2878_v38 }
0x1bc6   :  { %6661 = vmatmul.mubr.msk.f32.vlgmr.msra.gmra.mrb[20].mxu1 %vm103_vm1, %v2879_v4 }
0x1bc7   :  { %7176 = vmatpush3.bf16.msra.mxu1 %v7969_v37  ;;  %6679 = vmatprep.mubr.msk.f32.mxu1 %vm7512_vm0, %v9210_v34 }
0x1bc8   :  { %7177 = vmatprep.subr.bf16.mxu1 %v9211_v47 }
0x1bcb   :  { %7179 = vmatpush3.bf16.msra.mxu1 %v7976_v10 }
0x1bcc   :  { %7180 = vmatprep.subr.bf16.mxu1 %v9211_v47 }
0x1bcf   :  { %7182 = vmatpush3.bf16.msra.mxu1 %v7986_v63 }
0x1bd0   :  { %7183 = vmatprep.subr.bf16.mxu1 %v9211_v47 }
0x1bd3   :  { %7185 = vmatpush3.bf16.msra.mxu1 %v7996_v57 }
0x1bd4   :  { %7192 = vmatprep.subr.bf16.mxu1 %v9211_v47 }
0x1c99   :  { %v2948_v15 = vpop.f32.mrb[20].mxu1 }
0x1c9a   :  { %2953 = vrot.lane.b32.xlu1 %v2948_v15, %s7516_s2  ;;  %v6662_v49 = vpop.f32.mrb[21].mxu1 }
0x1d0c   :  { %v2954_v43 = vpop.permute.xlu1 %2953 }
0x1d0d   :  { %v2956_v19 = vadd.f32 %v2954_v43, %v8395_v29 }
0x1d0f   :  { %v2957_v32 = vadd.f32 %v2956_v19, %v8002_v8 }
0x1d11   :  { %v2958_v14 = vmax.f32 %v2957_v32, 0.0 }
0x1d13   :  { %2960 = vrot.lane.b32.xlu1 %v2958_v14, %s7516_s2 }
0x1d17   :  { %3037 = vperm.xlu1 %7401, %v8379_v36  }
0x1d1b   :  { %7402 = vset.pattern.permute.xlu1 %v9215_v35 }
0x1d1c   :  { %3043 = vperm.xlu1 %7402, %v8382_v9  }
0x1d85   :  { %v2961_v52 = vpop.permute.xlu1 %2960 }
0x1d86   :  { %6680 = vmatmul.mubr.msk.f32.vlgmr.msra.gmra.mrb[22].mxu1 %vm483_vm2, %v2961_v52 }
0x1d87   :  { %7194 = vmatpush3.bf16.msra.mxu1 %v7705_v39  ;;  %6701 = vmatprep.mubr.msk.f32.mxu1 %vm7512_vm0, %v9210_v34 }
0x1d88   :  { %7195 = vmatprep.subr.bf16.mxu1 %v9211_v47 }
0x1d8b   :  { %7197 = vmatpush3.bf16.msra.mxu1 %v7711_v41 }
0x1d8c   :  { %7214 = vmatprep.subr.bf16.mxu1 %v9211_v47 }
0x1d96   :  { %v3038_v58 = vpop.permute.xlu1 %3037 }
0x1d97   :  { %v3040_v23 = vmul.f32 %v8180_v42, %v3038_v58 }
0x1d9b   :  { %v3044_v27 = vpop.permute.xlu1 %3043 }
0x1d9c   :  { %v3046_v28 = vmul.f32 %v8174_v6, %v3044_v27 }
0x1d9e   :  { %v3047_v7 = vadd.f32 %v3046_v28, %v3040_v23 }
0x1da0   :  { %v3048_v60 = vadd.f32 %v8186_v48, %v3047_v7 }
0x1e59   :  { %v3030_v29 = vpop.f32.mrb[22].mxu1 }
0x1e5a   :  { %v3031_v45 = vadd.f32 %v8488_v21, %v3030_v29  ;;  %v6681_v18 = vpop.f32.mrb[23].mxu1 }
0x1e5c   :  { %v3034_v31 = vmax.f32 %v3031_v45, 0.0 }
0x1e5e   :  { %6691 = vmatmul.mubr.msk.f32.vlgmr.msra.gmra.mrb[40].mxu0 %vm103_vm1, %v3034_v31 }
0x1e5f   :  { %7201 = vmatpush3.bf16.msra.mxu0 %v7770_v11 }
0x1e60   :  { %7203 = vmatprep.subr.bf16.mxu0 %v7784_v17 }
0x1e63   :  { %7205 = vmatpush3.bf16.msra.mxu0 %v7784_v17 }
0x1e64   :  { %7207 = vmatprep.subr.bf16.mxu0 %v7798_v22 }
0x1e67   :  { %7209 = vmatpush3.bf16.msra.mxu0 %v7798_v22 }
0x1e68   :  { %7211 = vmatprep.subr.bf16.mxu0 %v7811_v26 }
0x1e6b   :  { %7213 = vmatpush3.bf16.msra.mxu0 %v7811_v26 }
0x1e6c   :  { %7232 = vmatprep.subr.bf16.mxu0 %v9211_v47 }
0x1f31   :  { %v3118_v24 = vpop.f32.mrb[40].mxu0 }
0x1f32   :  { %v3122_v55 = vadd.f32 %v3118_v24, %v3048_v60  ;;  %v6692_v40 = vpop.f32.mrb[41].mxu0 }
0x1f34   :  { %7436 = vtanh.f32 %v3122_v55  ;;  %v5991_v20 = vmul.f32 -1.442695, %v3122_v55 }
0x1f36   :  { %7438 = vpow2.f32 %v5991_v20 }
0x1f3e   :  { %v7437_v13 = vpop.eup %7436 }
0x1f3f   :  { %3132 = vrot.lane.b32.xlu1 %v7437_v13, %s7516_s2 }
0x1f40   :  { %v7439_v56 = vpop.eup %7438 }
0x1f41   :  { %v3126_v5 = vadd.f32 1.0, %v7439_v56 }
0x1f43   :  { %7440 = vrcp.f32 %v3126_v5 }
0x1f4d   :  { %v7441_v0 = vpop.eup %7440 }
0x1f4e   :  { %v3130_v42 = vmul.f32 %v7441_v0, %v8360_v16 }
0x1fb1   :  { %v3133_v12 = vpop.permute.xlu1 %3132 }
0x1fb2   :  { %v3135_v6 = vmul.f32 %v7441_v0, %v3133_v12 }
0x1fb4   :  { %3137 = vrot.lane.b32.xlu1 %v3135_v6, %s7517_s27 }
0x2026   :  { %v3138_v48 = vpop.permute.xlu1 %3137 }
0x2027   :  { %v8506_v33 = vadd.f32 %v3138_v48, %v3130_v42 }
0x2029   :  { %7442 = vtanh.f32 %v8506_v33 }
0x2033   :  { %v7443_v30 = vpop.eup %7442 }
0x2034   :  { %3143 = vrot.lane.b32.xlu0 %v7443_v30, %s7516_s2 }
0x20a6   :  { %v3144_v59 = vpop.permute.xlu0 %3143 }
0x20a7   :  { %v3146_v38 = vmul.f32 %v7441_v0, %v3144_v59 }
0x20a9   :  { %3148 = vrot.lane.b32.xlu1 %v3146_v38, %s7517_s27  ;;  %v3222_v4 = vmul.f32 %v3146_v38, %v7721_v46  ;;  %v3231_v15 = vmul.f32 %v3146_v38, %v7731_v50 }
0x20ab   :  { %3224 = vrot.lane.b32.xlu0 %v3222_v4, %s7517_s27 }
0x20ad   :  { %3233 = vrot.lane.b32.xlu1 %v3231_v15, %s7517_s27 }
0x211b   :  { %v3149_v16 = vpop.permute.xlu1 %3148 }
0x211c   :  { %6702 = vmatmul.mubr.msk.f32.vlgmr.msra.gmra.mrb[24].mxu1 %vm103_vm1, %v3149_v16 }
0x211d   :  { %v3225_v49 = vpop.permute.xlu0 %3224  ;;  %7216 = vmatpush3.bf16.msra.mxu1 %v7891_v61  ;;  %6740 = vmatprep.mubr.msk.f32.mxu1 %vm7512_vm0, %v9210_v34 }
0x211e   :  { %v3227_v43 = vsel %vm103_vm1, %v3225_v49, 0.0  ;;  %7217 = vmatprep.subr.bf16.mxu1 %v9211_v47 }
0x211f   :  { %v3234_v19 = vpop.permute.xlu1 %3233  ;;  %3228 = vadd.xlane.f32.xlu0 %v3227_v43 }
0x2120   :  { %v3236_v32 = vsel %vm103_vm1, %v3234_v19, 0.0 }
0x2121   :  { %3237 = vadd.xlane.f32.xlu1 %v3236_v32  ;;  %7219 = vmatpush3.bf16.msra.mxu1 %v7901_v2 }
0x2122   :  { %7220 = vmatprep.subr.bf16.mxu1 %v9211_v47 }
0x21ac   :  { %v3229_v14 = vpop.xlane.xlu0 %3228 }
0x21ad   :  { %v8525_v52 = vadd.f32 %v8213_v1, %v3229_v14 }
0x21ae   :  { %v3238_v29 = vpop.xlane.xlu1 %3237 }
0x21af   :  { %9240 = vst [vmem:[#allocation21_spill] sm:$0xff] %v8525_v52  ;;  %v8528_v45 = vadd.f32 %v8213_v1, %v3238_v29  ;;  %v8532_v18 = vadd.f32 %v8525_v52, %v8386_v51 }
0x21b1   :  { %9241 = vst [vmem:[#allocation9_spill] sm:$0xff] %v8528_v45  ;;  %v8536_v31 = vadd.f32 %v8528_v45, %v8391_v62  ;;  %3244 = vperm.xlu0 %7399, %v8532_v18  }
0x21b3   :  { %3250 = vperm.xlu1 %7402, %v8536_v31  }
0x21ef   :  { %v8540_v58 = vpop.f32.mrb[24].mxu1 }
0x21f0   :  { %v6703_v27 = vpop.f32.mrb[25].mxu1 }
0x2230   :  { %v3245_v28 = vpop.permute.xlu0 %3244 }
0x2231   :  { %v3247_v1 = vmul.f32 %v8238_v54, %v3245_v28  ;;  %v9242_v54 = vld [vmem:[#allocation22_spill] sm:$0xff] }
0x2232   :  { %v3251_v23 = vpop.permute.xlu1 %3250 }
0x2233   :  { %v3253_v7 = vmul.f32 %v9227_v44, %v3251_v23  ;;  %v9243_v44 = vld [vmem:[#allocation10_spill] sm:$0xff] }
0x2235   :  { %v3254_v60 = vadd.f32 %v3253_v7, %v3247_v1  ;;  %v9244_v7 = vld [vmem:[#allocation5_spill] sm:$0xff] }
0x2237   :  { %v3258_v51 = vcombine.high %v3254_v60, %v3254_v60  ;;  %v3265_v24 = vrot.slane %v3254_v60, %v9228_v3  ;;  %v3255_v62 = vadd.f32 %v3254_v60, %v8540_v58 }
0x2239   :  { %v3272_v55 = vrot.slane %v3258_v51, %v9228_v3  ;;  %v3273_v40 = vcombine.high %v3265_v24, %v3265_v24  ;;  %v3281_v13 = vrot.slane %v3265_v24, %v9228_v3  ;;  %v3256_v12 = vadd.f32 %v9242_v54, %v3255_v62  ;;  %v9246_v54 = vld [vmem:[#allocation23_spill] sm:$0xff] }
0x223b   :  { %v3274_v20 = vcombine.high %v3272_v55, %v3272_v55  ;;  %v3288_v56 = vrot.slane %v3272_v55, %v9228_v3  ;;  %v3295_v5 = vrot.slane %v3273_v40, %v9228_v3  ;;  %v3303_v0 = vcombine.high %v3281_v13, %v3281_v13  ;;  %v9245_v40 = vld [vmem:[#allocation6_spill] sm:$0xff] }
0x223c   :  { %v3310_v6 = vrot.slane %v3281_v13, %v9243_v44 }
0x223d   :  { %v3314_v42 = vrot.slane %v3295_v5, %v9243_v44  ;;  %v3318_v48 = vrot.slane %v3303_v0, %v9243_v44  ;;  %v3305_v30 = vcombine.high %v3295_v5, %v3295_v5  ;;  %v3326_v38 = vrot.slane %v3288_v56, %v9243_v44 }
0x223e   :  { %v3347_v59 = vsub.f32 %v3256_v12, %v3310_v6  ;;  %v3302_v4 = vrot.slane %v3274_v20, %v9228_v3  ;;  %v3304_v15 = vcombine.high %v3288_v56, %v3288_v56 }
0x223f   :  { %v3348_v16 = vsub.f32 %v3256_v12, %v3314_v42  ;;  %v3349_v49 = vsub.f32 %v3256_v12, %v3318_v48  ;;  %v3322_v43 = vrot.slane %v3305_v30, %v9243_v44  ;;  %v3351_v23 = vsub.f32 %v3256_v12, %v3326_v38  ;;  %v9247_v38 = vld [vmem:[#allocation12_spill] sm:$0xff] }
0x2240   :  { %v3355_v19 = vmax.f32 %v3347_v59, 0.0  ;;  %v3330_v32 = vrot.slane %v3302_v4, %v9243_v44  ;;  %v3306_v28 = vcombine.high %v3302_v4, %v3302_v4  ;;  %v3334_v1 = vrot.slane %v3304_v15, %v9243_v44 }
0x2241   :  { %v3356_v14 = vmax.f32 %v3348_v16, 0.0  ;;  %v3357_v29 = vmax.f32 %v3349_v49, 0.0  ;;  %v3350_v27 = vsub.f32 %v3256_v12, %v3322_v43  ;;  %v3359_v62 = vmax.f32 %v3351_v23, 0.0  ;;  %v9248_v49 = vld [vmem:[#allocation11_spill] sm:$0xff] }
0x2242   :  { %6720 = vmatprep.mubr.msk.f32.mxu0 %vm483_vm2, %v3355_v19  ;;  %v3352_v51 = vsub.f32 %v3256_v12, %v3330_v32  ;;  %v3338_v24 = vrot.slane %v3306_v28, %v9243_v44  ;;  %v3353_v55 = vsub.f32 %v3256_v12, %v3334_v1  ;;  %v8582_v19 = vld [vmem:[%s9119_s14] ss:$0 sm:$0xff] }
0x2243   :  { %6721 = vmatmul.mubr.msk.f32.vlgmr.msra.gmra.mrb[42].mxu0 %vm483_vm2, %v3356_v14  ;;  %v3358_v60 = vmax.f32 %v3350_v27, 0.0  ;;  %9249 = vst [vmem:[#allocation22_spill] sm:$0xff] %v8582_v19 }
0x2244   :  { %6723 = vmatprep.mubr.msk.f32.mxu0 %vm483_vm2, %v3357_v29  ;;  %7234 = vmatpush3.bf16.msra.mxu0 %v9244_v7  ;;  %v3360_v13 = vmax.f32 %v3352_v51, 0.0  ;;  %v3354_v20 = vsub.f32 %v3256_v12, %v3338_v24  ;;  %v3361_v56 = vmax.f32 %v3353_v55, 0.0  ;;  %v9250_v51 = vld [vmem:[#allocation14_spill] sm:$0xff] }
0x2245   :  { %7235 = vmatprep.subr.bf16.mxu0 %v9211_v47 }
0x2246   :  { %v3362_v5 = vmax.f32 %v3354_v20, 0.0  ;;  %v9251_v20 = vld [vmem:[#allocation13_spill] sm:$0xff] }
0x2247   :  { %6724 = vmatmul.mubr.msk.f32.gmra.mrb[44].mxu0 %vm483_vm2, %v3358_v60 }
0x2248   :  { %6726 = vmatprep.mubr.msk.f32.mxu0 %vm483_vm2, %v3359_v62  ;;  %7237 = vmatpush3.bf16.msra.mxu0 %v9245_v40 }
0x2249   :  { %7245 = vmatprep.subr.bf16.mxu0 %v7770_v11 }
0x224b   :  { %6727 = vmatmul.mubr.msk.f32.gmra.mrb[46].mxu0 %vm483_vm2, %v3360_v13 }
0x224c   :  { %6729 = vmatprep.mubr.msk.f32.mxu0 %vm483_vm2, %v3361_v56 }
0x224f   :  { %6730 = vmatmul.mubr.msk.f32.gmra.mrb[48].mxu0 %vm483_vm2, %v3362_v5 }
0x2250   :  { %6770 = vmatprep.mubr.msk.f32.mxu0 %vm7512_vm0, %v9210_v34 }
0x2316   :  { %v6722_v0 = vpop.f32.mrb[42].mxu0 }
0x2317   :  { %v3459_v6 = vadd.f32 %v9246_v54, %v6722_v0  ;;  %v3453_v42 = vpop.f32.mrb[43].mxu0 }
0x2318   :  { %v3454_v48 = vadd.f32 %v9246_v54, %v3453_v42 }
0x2319   :  { %v3493_v12 = vmax.f32 %v3459_v6, 0.0 }
0x231a   :  { %v3492_v30 = vmax.f32 %v3454_v48, 0.0  ;;  %v6725_v59 = vpop.f32.mrb[44].mxu0 }
0x231b   :  { %v3501_v4 = vmul.f32 %v3493_v12, %v9247_v38  ;;  %v3469_v15 = vadd.f32 %v9246_v54, %v6725_v59  ;;  %v3463_v16 = vpop.f32.mrb[45].mxu0 }
0x231c   :  { %v3500_v43 = vmul.f32 %v3492_v30, %v9248_v49  ;;  %v3464_v32 = vadd.f32 %v8582_v19, %v3463_v16  ;;  %v9252_v16 = vld [vmem:[#allocation16_spill] sm:$0xff] }
0x231d   :  { %v3515_v14 = vsel %vm103_vm1, %v3501_v4, -inf  ;;  %v3495_v29 = vmax.f32 %v3469_v15, 0.0 }
0x231e   :  { %v3516_v27 = vrot.slane %v3515_v14, 4  ;;  %v3508_v28 = vsel %vm103_vm1, %v3500_v43, -inf  ;;  %v3494_v23 = vmax.f32 %v3464_v32, 0.0  ;;  %v6728_v1 = vpop.f32.mrb[46].mxu0 }
0x231f   :  { %v3509_v60 = vrot.slane %v3508_v28, 4  ;;  %v3503_v24 = vmul.f32 %v3495_v29, %v9250_v51  ;;  %v3479_v62 = vadd.f32 %v8582_v19, %v6728_v1  ;;  %v3473_v55 = vpop.f32.mrb[47].mxu0 }
0x2320   :  { %v3517_v13 = vmax.f32 %v3515_v14, %v3516_v27  ;;  %v3502_v56 = vmul.f32 %v3494_v23, %v9251_v20  ;;  %v3474_v5 = vadd.f32 %v8582_v19, %v3473_v55  ;;  %v9253_v23 = vld [vmem:[#allocation15_spill] sm:$0xff] }
0x2321   :  { %v3510_v0 = vmax.f32 %v3508_v28, %v3509_v60  ;;  %v3529_v54 = vsel %vm103_vm1, %v3503_v24, -inf  ;;  %v3497_v6 = vmax.f32 %v3479_v62, 0.0 }
0x2322   :  { %v3518_v42 = vrot.slane %v3517_v13, 2  ;;  %v3530_v48 = vrot.slane %v3529_v54, 4  ;;  %v3522_v12 = vsel %vm103_vm1, %v3502_v56, -inf  ;;  %v3496_v30 = vmax.f32 %v3474_v5, 0.0  ;;  %v6731_v59 = vpop.f32.mrb[48].mxu0 }
0x2323   :  { %v3511_v4 = vrot.slane %v3510_v0, 2  ;;  %v3523_v15 = vrot.slane %v3522_v12, 4  ;;  %v3505_v43 = vmul.f32 %v3497_v6, %v9252_v16  ;;  %v3489_v32 = vadd.f32 %v8582_v19, %v6731_v59  ;;  %v3483_v14 = vpop.f32.mrb[49].mxu0 }
0x2324   :  { %v3519_v29 = vmax.f32 %v3517_v13, %v3518_v42  ;;  %v3531_v27 = vmax.f32 %v3529_v54, %v3530_v48  ;;  %v3504_v28 = vmul.f32 %v3496_v30, %v9253_v23  ;;  %v3484_v1 = vadd.f32 %v8582_v19, %v3483_v14 }
0x2325   :  { %v3512_v60 = vmax.f32 %v3510_v0, %v3511_v4  ;;  %v3524_v24 = vmax.f32 %v3522_v12, %v3523_v15  ;;  %v3543_v62 = vsel %vm103_vm1, %v3505_v43, -inf  ;;  %v3499_v55 = vmax.f32 %v3489_v32, 0.0 }
0x2326   :  { %v3520_v56 = vrot.slane %v3519_v29, 1  ;;  %v3532_v5 = vrot.slane %v3531_v27, 2  ;;  %v3544_v9 = vrot.slane %v3543_v62, 4  ;;  %v3536_v36 = vsel %vm103_vm1, %v3504_v28, -inf }
0x2327   :  { %v3513_v6 = vrot.slane %v3512_v60, 1  ;;  %v3525_v35 = vrot.slane %v3524_v24, 2  ;;  %v3537_v59 = vrot.slane %v3536_v36, 4  ;;  %v3507_v13 = vmul.f32 %v3499_v55, %v7941_v53 }
0x2328   :  { %v3521_v54 = vmax.f32 %v3519_v29, %v3520_v56  ;;  %v3533_v42 = vmax.f32 %v3531_v27, %v3532_v5  ;;  %v3545_v48 = vmax.f32 %v3543_v62, %v3544_v9  ;;  %v3498_v30 = vmax.f32 %v3484_v1, 0.0 }
0x2329   :  { %v3514_v14 = vmax.f32 %v3512_v60, %v3513_v6  ;;  %v3526_v0 = vmax.f32 %v3524_v24, %v3525_v35  ;;  %v3538_v12 = vmax.f32 %v3536_v36, %v3537_v59  ;;  %v3557_v4 = vsel %vm103_vm1, %v3507_v13, -inf }
0x232a   :  { %v3534_v15 = vrot.slane %v3533_v42, 1  ;;  %v3546_v43 = vrot.slane %v3545_v48, 2  ;;  %v3558_v32 = vrot.slane %v3557_v4, 4  ;;  %v3506_v23 = vmul.f32 %v3498_v30, %v7945_v25 }
0x232b   :  { %v3572_v28 = vsel %vm745_vm3, %v3521_v54, %v3514_v14  ;;  %v3527_v16 = vrot.slane %v3526_v0, 1  ;;  %v3539_v20 = vrot.slane %v3538_v12, 2 }
0x232c   :  { %v3547_v51 = vmax.f32 %v3545_v48, %v3546_v43  ;;  %v3559_v55 = vmax.f32 %v3557_v4, %v3558_v32  ;;  %v3550_v29 = vsel %vm103_vm1, %v3506_v23, -inf  ;;  %v3535_v35 = vmax.f32 %v3533_v42, %v3534_v15 }
0x232d   :  { %v3528_v9 = vmax.f32 %v3526_v0, %v3527_v16  ;;  %v3540_v27 = vmax.f32 %v3538_v12, %v3539_v20  ;;  %v3551_v1 = vrot.slane %v3550_v29, 4 }
0x232e   :  { %v3548_v36 = vrot.slane %v3547_v51, 1  ;;  %v3560_v60 = vrot.slane %v3559_v55, 2 }
0x232f   :  { %v3573_v24 = vsel %vm747_vm4, %v3528_v9, %v3572_v28  ;;  %v3541_v62 = vrot.slane %v3540_v27, 1  ;;  %v3552_v56 = vmax.f32 %v3550_v29, %v3551_v1 }
0x2330   :  { %v3561_v5 = vmax.f32 %v3559_v55, %v3560_v60  ;;  %v3574_v6 = vsel %vm749_vm5, %v3535_v35, %v3573_v24  ;;  %v3549_v54 = vmax.f32 %v3547_v51, %v3548_v36  ;;  %v8647_v36 = vld [vmem:[%s9110_s5 + $0x1] ss:$0 sm:$0xff]  ;;  %v8653_v24 = vld [vmem:[%s9110_s5] ss:$0 sm:$0xff] }
0x2331   :  { %v3542_v59 = vmax.f32 %v3540_v27, %v3541_v62  ;;  %v3553_v13 = vrot.slane %v3552_v56, 2 }
0x2332   :  { %v3562_v23 = vrot.slane %v3561_v5, 1 }
0x2333   :  { %v3554_v48 = vmax.f32 %v3552_v56, %v3553_v13  ;;  %v3575_v30 = vsel %vm751_vm6, %v3542_v59, %v3574_v6 }
0x2334   :  { %v3576_v20 = vsel %vm753_vm7, %v3549_v54, %v3575_v30  ;;  %v3563_v14 = vmax.f32 %v3561_v5, %v3562_v23  ;;  %v8659_v5 = vld [vmem:[%s9111_s6] ss:$0 sm:$0xff] }
0x2335   :  { %v3555_v16 = vrot.slane %v3554_v48, 1 }
0x2337   :  { %v3556_v42 = vmax.f32 %v3554_v48, %v3555_v16 }
0x2339   :  { %v3577_v0 = vsel %vm755_vm8, %v3556_v42, %v3576_v20 }
0x233a   :  { %v3578_v12 = vsel %vm757_vm9, %v3563_v14, %v3577_v0 }
0x233b   :  { %6741 = vmatmul.mubr.msk.f32.vlgmr.msra.gmra.mrb[26].mxu1 %vm103_vm1, %v3578_v12 }
0x233c   :  { %7222 = vmatpush3.bf16.msra.mxu1 %v7969_v37  ;;  %6759 = vmatprep.mubr.msk.f32.mxu1 %vm7512_vm0, %v9210_v34 }
0x233d   :  { %7223 = vmatprep.subr.bf16.mxu1 %v9211_v47 }
0x2340   :  { %7225 = vmatpush3.bf16.msra.mxu1 %v7976_v10 }
0x2341   :  { %7226 = vmatprep.subr.bf16.mxu1 %v9211_v47 }
0x2344   :  { %7228 = vmatpush3.bf16.msra.mxu1 %v7986_v63 }
0x2345   :  { %7229 = vmatprep.subr.bf16.mxu1 %v9211_v47 }
0x2348   :  { %7231 = vmatpush3.bf16.msra.mxu1 %v7996_v57 }
0x2349   :  { %7238 = vmatprep.subr.bf16.mxu1 %v9211_v47 }
0x240e   :  { %v3647_v51 = vpop.f32.mrb[26].mxu1 }
0x240f   :  { %3652 = vrot.lane.b32.xlu0 %v3647_v51, %s7516_s2  ;;  %v6742_v4 = vpop.f32.mrb[27].mxu1 }
0x2413   :  { %3736 = vperm.xlu0 %7399, %v8525_v52  }
0x2481   :  { %v3653_v15 = vpop.permute.xlu0 %3652 }
0x2482   :  { %v3655_v43 = vadd.f32 %v3653_v15, %v8540_v58 }
0x2484   :  { %v3656_v32 = vadd.f32 %v3655_v43, %v8002_v8 }
0x2486   :  { %v3657_v28 = vmax.f32 %v3656_v32, 0.0 }
0x2488   :  { %3659 = vrot.lane.b32.xlu1 %v3657_v28, %s7516_s2 }
0x248c   :  { %3742 = vperm.xlu1 %7402, %v8528_v45  }
0x2492   :  { %v3737_v35 = vpop.permute.xlu0 %3736 }
0x2493   :  { %v3739_v62 = vmul.f32 %v8653_v24, %v3737_v35 }
0x24fa   :  { %v3660_v55 = vpop.permute.xlu1 %3659 }
0x24fb   :  { %6760 = vmatmul.mubr.msk.f32.vlgmr.msra.gmra.mrb[28].mxu1 %vm483_vm2, %v3660_v55 }
0x24fc   :  { %7240 = vmatpush3.bf16.msra.mxu1 %v7705_v39  ;;  %6781 = vmatprep.mubr.msk.f32.mxu1 %vm7512_vm0, %v9210_v34 }
0x24fd   :  { %7241 = vmatprep.subr.bf16.mxu1 %v9211_v47 }
0x2500   :  { %7243 = vmatpush3.bf16.msra.mxu1 %v7711_v41 }
0x2501   :  { %7260 = vmatprep.subr.bf16.mxu1 %v9211_v47 }
0x250b   :  { %v3743_v1 = vpop.permute.xlu1 %3742 }
0x250c   :  { %v3745_v60 = vmul.f32 %v8647_v36, %v3743_v1  ;;  %v8686_v1 = vld [vmem:[%s9114_s9] ss:$0 sm:$0xff] }
0x250e   :  { %v3746_v56 = vadd.f32 %v3745_v60, %v3739_v62 }
0x2510   :  { %v3747_v6 = vadd.f32 %v8659_v5, %v3746_v56 }
0x25ce   :  { %v3729_v58 = vpop.f32.mrb[28].mxu1 }
0x25cf   :  { %v3730_v29 = vadd.f32 %v8488_v21, %v3729_v58  ;;  %v6761_v9 = vpop.f32.mrb[29].mxu1 }
0x25d1   :  { %v3733_v27 = vmax.f32 %v3730_v29, 0.0 }
0x25d3   :  { %6771 = vmatmul.mubr.msk.f32.vlgmr.msra.gmra.mrb[50].mxu0 %vm103_vm1, %v3733_v27 }
0x25d4   :  { %7247 = vmatpush3.bf16.msra.mxu0 %v7770_v11 }
0x25d5   :  { %7249 = vmatprep.subr.bf16.mxu0 %v7784_v17 }
0x25d8   :  { %7251 = vmatpush3.bf16.msra.mxu0 %v7784_v17 }
0x25d9   :  { %7253 = vmatprep.subr.bf16.mxu0 %v7798_v22 }
0x25dc   :  { %7255 = vmatpush3.bf16.msra.mxu0 %v7798_v22 }
0x25dd   :  { %7257 = vmatprep.subr.bf16.mxu0 %v7811_v26 }
0x25e0   :  { %7259 = vmatpush3.bf16.msra.mxu0 %v7811_v26 }
0x25e1   :  { %7278 = vmatprep.subr.bf16.mxu0 %v9211_v47 }
0x26a6   :  { %v3817_v59 = vpop.f32.mrb[50].mxu0 }
0x26a7   :  { %v3821_v13 = vadd.f32 %v3817_v59, %v3747_v6  ;;  %v6772_v54 = vpop.f32.mrb[51].mxu0 }
0x26a9   :  { %7444 = vtanh.f32 %v3821_v13  ;;  %v6004_v30 = vmul.f32 -1.442695, %v3821_v13 }
0x26ab   :  { %7446 = vpow2.f32 %v6004_v30  ;;  %v8709_v30 = vld [vmem:[%s9115_s10] ss:$0 sm:$0xff] }
0x26b3   :  { %v7445_v48 = vpop.eup %7444 }
0x26b4   :  { %3831 = vrot.lane.b32.xlu0 %v7445_v48, %s7516_s2 }
0x26b5   :  { %v7447_v23 = vpop.eup %7446 }
0x26b6   :  { %v3825_v20 = vadd.f32 1.0, %v7447_v23 }
0x26b8   :  { %7448 = vrcp.f32 %v3825_v20 }
0x26c2   :  { %v7449_v16 = vpop.eup %7448 }
0x26c3   :  { %v3829_v0 = vmul.f32 %v7449_v16, %v8506_v33 }
0x2726   :  { %v3832_v42 = vpop.permute.xlu0 %3831 }
0x2727   :  { %v3834_v14 = vmul.f32 %v7449_v16, %v3832_v42 }
0x2729   :  { %3836 = vrot.lane.b32.xlu1 %v3834_v14, %s7517_s27 }
0x279b   :  { %v3837_v12 = vpop.permute.xlu1 %3836 }
0x279c   :  { %v8665_v51 = vadd.f32 %v3837_v12, %v3829_v0 }
0x279e   :  { %7450 = vtanh.f32 %v8665_v51 }
0x27a8   :  { %v7451_v4 = vpop.eup %7450 }
0x27a9   :  { %3842 = vrot.lane.b32.xlu0 %v7451_v4, %s7516_s2 }
0x281b   :  { %v3843_v15 = vpop.permute.xlu0 %3842 }
0x281c   :  { %v3845_v43 = vmul.f32 %v7449_v16, %v3843_v15 }
0x281e   :  { %3847 = vrot.lane.b32.xlu1 %v3845_v43, %s7517_s27  ;;  %v3921_v32 = vmul.f32 %v3845_v43, %v7721_v46  ;;  %v3930_v28 = vmul.f32 %v3845_v43, %v7731_v50 }
0x2820   :  { %3923 = vrot.lane.b32.xlu0 %v3921_v32, %s7517_s27 }
0x2822   :  { %3932 = vrot.lane.b32.xlu1 %v3930_v28, %s7517_s27 }
0x2890   :  { %v3848_v33 = vpop.permute.xlu1 %3847 }
0x2891   :  { %6782 = vmatmul.mubr.msk.f32.vlgmr.msra.gmra.mrb[30].mxu1 %vm103_vm1, %v3848_v33  ;;  %v8727_v33 = vld [vmem:[%s9116_s11] ss:$0 sm:$0xff] }
0x2892   :  { %v3924_v55 = vpop.permute.xlu0 %3923  ;;  %7262 = vmatpush3.bf16.msra.mxu1 %v7891_v61  ;;  %6820 = vmatprep.mubr.msk.f32.mxu1 %vm7512_vm0, %v9210_v34  ;;  %9256 = vst [vmem:[#allocation27_spill] sm:$0xff] %v8727_v33 }
0x2893   :  { %v3926_v58 = vsel %vm103_vm1, %v3924_v55, 0.0  ;;  %7263 = vmatprep.subr.bf16.mxu1 %v9211_v47 }
0x2894   :  { %v3933_v29 = vpop.permute.xlu1 %3932  ;;  %3927 = vadd.xlane.f32.xlu0 %v3926_v58 }
0x2895   :  { %v3935_v9 = vsel %vm103_vm1, %v3933_v29, 0.0 }
0x2896   :  { %3936 = vadd.xlane.f32.xlu1 %v3935_v9  ;;  %7265 = vmatpush3.bf16.msra.mxu1 %v7901_v2 }
0x2897   :  { %7266 = vmatprep.subr.bf16.mxu1 %v9211_v47 }
0x2921   :  { %v3928_v27 = vpop.xlane.xlu0 %3927 }
0x2922   :  { %v8689_v35 = vadd.f32 %v8686_v1, %v3928_v27 }
0x2923   :  { %v3937_v60 = vpop.xlane.xlu1 %3936 }
0x2924   :  { %9254 = vst [vmem:[#allocation23_spill] sm:$0xff] %v8689_v35  ;;  %v8692_v62 = vadd.f32 %v8686_v1, %v3937_v60  ;;  %v8696_v56 = vadd.f32 %v8689_v35, %v8532_v18 }
0x2926   :  { %9255 = vst [vmem:[#allocation26_spill] sm:$0xff] %v8692_v62  ;;  %v8700_v6 = vadd.f32 %v8692_v62, %v8536_v31  ;;  %3943 = vperm.xlu0 %7399, %v8696_v56   ;;  %v8715_v31 = vld [vmem:[%s9115_s10 + $0x1] ss:$0 sm:$0xff] }
0x2928   :  { %3949 = vperm.xlu1 %7402, %v8700_v6  }
0x2964   :  { %v8704_v59 = vpop.f32.mrb[30].mxu1 }
0x2965   :  { %v6783_v13 = vpop.f32.mrb[31].mxu1 }
0x29a5   :  { %v3944_v54 = vpop.permute.xlu0 %3943 }
0x29a6   :  { %v3946_v18 = vmul.f32 %v8709_v30, %v3944_v54 }
0x29a7   :  { %v3950_v48 = vpop.permute.xlu1 %3949 }
0x29a8   :  { %v3952_v23 = vmul.f32 %v8715_v31, %v3950_v48 }
0x29aa   :  { %v3953_v20 = vadd.f32 %v3952_v23, %v3946_v18 }
0x29ac   :  { %v3957_v16 = vcombine.high %v3953_v20, %v3953_v20  ;;  %v3964_v42 = vrot.slane %v3953_v20, %v9228_v3  ;;  %v3954_v14 = vadd.f32 %v3953_v20, %v8704_v59 }
0x29ae   :  { %v3971_v0 = vrot.slane %v3957_v16, %v9228_v3  ;;  %v3972_v12 = vcombine.high %v3964_v42, %v3964_v42  ;;  %v3980_v4 = vrot.slane %v3964_v42, %v9228_v3  ;;  %v3955_v55 = vadd.f32 %v8727_v33, %v3954_v14 }
0x29b0   :  { %v3973_v15 = vcombine.high %v3971_v0, %v3971_v0  ;;  %v3987_v43 = vrot.slane %v3971_v0, %v9228_v3  ;;  %v3994_v32 = vrot.slane %v3972_v12, %v9228_v3  ;;  %v4002_v28 = vcombine.high %v3980_v4, %v3980_v4 }
0x29b1   :  { %v4009_v58 = vrot.slane %v3980_v4, %v9243_v44 }
0x29b2   :  { %v4013_v29 = vrot.slane %v3994_v32, %v9243_v44  ;;  %v4017_v9 = vrot.slane %v4002_v28, %v9243_v44  ;;  %v4004_v27 = vcombine.high %v3994_v32, %v3994_v32  ;;  %v4025_v13 = vrot.slane %v3987_v43, %v9243_v44 }
0x29b3   :  { %v4046_v60 = vsub.f32 %v3955_v55, %v4009_v58  ;;  %v4001_v54 = vrot.slane %v3973_v15, %v9228_v3  ;;  %v4003_v48 = vcombine.high %v3987_v43, %v3987_v43 }
0x29b4   :  { %v4047_v18 = vsub.f32 %v3955_v55, %v4013_v29  ;;  %v4048_v23 = vsub.f32 %v3955_v55, %v4017_v9  ;;  %v4021_v20 = vrot.slane %v4004_v27, %v9243_v44  ;;  %v4050_v32 = vsub.f32 %v3955_v55, %v4025_v13 }
0x29b5   :  { %v4054_v16 = vmax.f32 %v4046_v60, 0.0  ;;  %v4029_v42 = vrot.slane %v4001_v54, %v9243_v44  ;;  %v4005_v4 = vcombine.high %v4001_v54, %v4001_v54  ;;  %v4033_v28 = vrot.slane %v4003_v48, %v9243_v44 }
0x29b6   :  { %v4055_v14 = vmax.f32 %v4047_v18, 0.0  ;;  %v4056_v0 = vmax.f32 %v4048_v23, 0.0  ;;  %v4049_v12 = vsub.f32 %v3955_v55, %v4021_v20  ;;  %v4058_v29 = vmax.f32 %v4050_v32, 0.0 }
0x29b7   :  { %6800 = vmatprep.mubr.msk.f32.mxu0 %vm483_vm2, %v4054_v16  ;;  %v4051_v43 = vsub.f32 %v3955_v55, %v4029_v42  ;;  %v4037_v58 = vrot.slane %v4005_v4, %v9243_v44  ;;  %v4052_v9 = vsub.f32 %v3955_v55, %v4033_v28 }
0x29b8   :  { %6801 = vmatmul.mubr.msk.f32.vlgmr.msra.gmra.mrb[52].mxu0 %vm483_vm2, %v4055_v14  ;;  %v4057_v15 = vmax.f32 %v4049_v12, 0.0 }
0x29b9   :  { %6803 = vmatprep.mubr.msk.f32.mxu0 %vm483_vm2, %v4056_v0  ;;  %7280 = vmatpush3.bf16.msra.mxu0 %v9244_v7  ;;  %v4059_v27 = vmax.f32 %v4051_v43, 0.0  ;;  %v4053_v60 = vsub.f32 %v3955_v55, %v4037_v58  ;;  %v4060_v13 = vmax.f32 %v4052_v9, 0.0 }
0x29ba   :  { %7281 = vmatprep.subr.bf16.mxu0 %v9211_v47 }
0x29bb   :  { %v4061_v54 = vmax.f32 %v4053_v60, 0.0  ;;  %v9257_v60 = vld [vmem:[#allocation14_spill] sm:$0xff] }
0x29bc   :  { %6804 = vmatmul.mubr.msk.f32.gmra.mrb[54].mxu0 %vm483_vm2, %v4057_v15 }
0x29bd   :  { %6806 = vmatprep.mubr.msk.f32.mxu0 %vm483_vm2, %v4058_v29  ;;  %7283 = vmatpush3.bf16.msra.mxu0 %v9245_v40 }
0x29be   :  { %7291 = vmatprep.subr.bf16.mxu0 %v7770_v11 }
0x29c0   :  { %6807 = vmatmul.mubr.msk.f32.gmra.mrb[56].mxu0 %vm483_vm2, %v4059_v27 }
0x29c1   :  { %6809 = vmatprep.mubr.msk.f32.mxu0 %vm483_vm2, %v4060_v13 }
0x29c4   :  { %6810 = vmatmul.mubr.msk.f32.gmra.mrb[58].mxu0 %vm483_vm2, %v4061_v54 }
0x29c5   :  { %6850 = vmatprep.mubr.msk.f32.mxu0 %vm7512_vm0, %v9210_v34 }
0x2a8b   :  { %v6802_v48 = vpop.f32.mrb[52].mxu0 }
0x2a8c   :  { %v4158_v18 = vadd.f32 %v8582_v19, %v6802_v48  ;;  %v4152_v23 = vpop.f32.mrb[53].mxu0 }
0x2a8d   :  { %v4153_v20 = vadd.f32 %v8582_v19, %v4152_v23  ;;  %v9258_v23 = vld [vmem:[#allocation13_spill] sm:$0xff] }
0x2a8e   :  { %v4192_v55 = vmax.f32 %v4158_v18, 0.0 }
0x2a8f   :  { %v4191_v16 = vmax.f32 %v4153_v20, 0.0  ;;  %v6805_v42 = vpop.f32.mrb[54].mxu0 }
0x2a90   :  { %v4200_v14 = vmul.f32 %v4192_v55, %v9247_v38  ;;  %v4168_v0 = vadd.f32 %v8582_v19, %v6805_v42  ;;  %v4162_v12 = vpop.f32.mrb[55].mxu0 }
0x2a91   :  { %v4199_v4 = vmul.f32 %v4191_v16, %v9248_v49  ;;  %v4163_v32 = vadd.f32 %v8582_v19, %v4162_v12 }
0x2a92   :  { %v4214_v28 = vsel %vm103_vm1, %v4200_v14, -inf  ;;  %v4194_v15 = vmax.f32 %v4168_v0, 0.0 }
0x2a93   :  { %v4215_v43 = vrot.slane %v4214_v28, 4  ;;  %v4207_v58 = vsel %vm103_vm1, %v4199_v4, -inf  ;;  %v4193_v29 = vmax.f32 %v4163_v32, 0.0  ;;  %v6808_v9 = vpop.f32.mrb[56].mxu0 }
0x2a94   :  { %v4208_v27 = vrot.slane %v4207_v58, 4  ;;  %v4202_v13 = vmul.f32 %v4194_v15, %v9257_v60  ;;  %v4178_v54 = vadd.f32 %v8582_v19, %v6808_v9  ;;  %v4172_v48 = vpop.f32.mrb[57].mxu0  ;;  %v9259_v60 = vld [vmem:[#allocation16_spill] sm:$0xff] }
0x2a95   :  { %v4216_v18 = vmax.f32 %v4214_v28, %v4215_v43  ;;  %v4201_v20 = vmul.f32 %v4193_v29, %v9258_v23  ;;  %v4173_v55 = vadd.f32 %v8582_v19, %v4172_v48  ;;  %v9260_v48 = vld [vmem:[#allocation15_spill] sm:$0xff] }
0x2a96   :  { %v4209_v16 = vmax.f32 %v4207_v58, %v4208_v27  ;;  %v4228_v42 = vsel %vm103_vm1, %v4202_v13, -inf  ;;  %v4196_v14 = vmax.f32 %v4178_v54, 0.0 }
0x2a97   :  { %v4217_v0 = vrot.slane %v4216_v18, 2  ;;  %v4229_v12 = vrot.slane %v4228_v42, 4  ;;  %v4221_v4 = vsel %vm103_vm1, %v4201_v20, -inf  ;;  %v4195_v32 = vmax.f32 %v4173_v55, 0.0  ;;  %v6811_v45 = vpop.f32.mrb[58].mxu0 }
0x2a98   :  { %v4210_v52 = vrot.slane %v4209_v16, 2  ;;  %v4222_v15 = vrot.slane %v4221_v4, 4  ;;  %v4204_v9 = vmul.f32 %v4196_v14, %v9259_v60  ;;  %v4188_v28 = vadd.f32 %v8582_v19, %v6811_v45  ;;  %v4182_v43 = vpop.f32.mrb[59].mxu0 }
0x2a99   :  { %v4218_v29 = vmax.f32 %v4216_v18, %v4217_v0  ;;  %v4230_v23 = vmax.f32 %v4228_v42, %v4229_v12  ;;  %v4203_v58 = vmul.f32 %v4195_v32, %v9260_v48  ;;  %v4183_v27 = vadd.f32 %v8582_v19, %v4182_v43 }
0x2a9a   :  { %v4211_v13 = vmax.f32 %v4209_v16, %v4210_v52  ;;  %v4223_v54 = vmax.f32 %v4221_v4, %v4222_v15  ;;  %v4242_v49 = vsel %vm103_vm1, %v4204_v9, -inf  ;;  %v4198_v20 = vmax.f32 %v4188_v28, 0.0 }
0x2a9b   :  { %v4219_v55 = vrot.slane %v4218_v29, 1  ;;  %v4231_v38 = vrot.slane %v4230_v23, 2  ;;  %v4243_v40 = vrot.slane %v4242_v49, 4  ;;  %v4235_v7 = vsel %vm103_vm1, %v4203_v58, -inf }
0x2a9c   :  { %v4212_v14 = vrot.slane %v4211_v13, 1  ;;  %v4224_v60 = vrot.slane %v4223_v54, 2  ;;  %v4236_v45 = vrot.slane %v4235_v7, 4  ;;  %v4206_v18 = vmul.f32 %v4198_v20, %v7941_v53 }
0x2a9d   :  { %v4220_v42 = vmax.f32 %v4218_v29, %v4219_v55  ;;  %v4232_v0 = vmax.f32 %v4230_v23, %v4231_v38  ;;  %v4244_v12 = vmax.f32 %v4242_v49, %v4243_v40  ;;  %v4197_v32 = vmax.f32 %v4183_v27, 0.0 }
0x2a9e   :  { %v4213_v43 = vmax.f32 %v4211_v13, %v4212_v14  ;;  %v4225_v52 = vmax.f32 %v4223_v54, %v4224_v60  ;;  %v4237_v16 = vmax.f32 %v4235_v7, %v4236_v45  ;;  %v4256_v4 = vsel %vm103_vm1, %v4206_v18, -inf }
0x2a9f   :  { %v4233_v15 = vrot.slane %v4232_v0, 1  ;;  %v4245_v9 = vrot.slane %v4244_v12, 2  ;;  %v4257_v28 = vrot.slane %v4256_v4, 4  ;;  %v4205_v48 = vmul.f32 %v4197_v32, %v7945_v25 }
0x2aa0   :  { %v4271_v58 = vsel %vm745_vm3, %v4220_v42, %v4213_v43  ;;  %v4226_v19 = vrot.slane %v4225_v52, 1  ;;  %v4238_v44 = vrot.slane %v4237_v16, 2 }
0x2aa1   :  { %v4246_v33 = vmax.f32 %v4244_v12, %v4245_v9  ;;  %v4258_v20 = vmax.f32 %v4256_v4, %v4257_v28  ;;  %v4249_v38 = vsel %vm103_vm1, %v4205_v48, -inf  ;;  %v4234_v60 = vmax.f32 %v4232_v0, %v4233_v15 }
0x2aa2   :  { %v4227_v40 = vmax.f32 %v4225_v52, %v4226_v19  ;;  %v4239_v49 = vmax.f32 %v4237_v16, %v4238_v44  ;;  %v4250_v23 = vrot.slane %v4249_v38, 4 }
0x2aa3   :  { %v4247_v7 = vrot.slane %v4246_v33, 1  ;;  %v4259_v29 = vrot.slane %v4258_v20, 2 }
0x2aa4   :  { %v4272_v27 = vsel %vm747_vm4, %v4227_v40, %v4271_v58  ;;  %v4240_v13 = vrot.slane %v4239_v49, 1  ;;  %v4251_v54 = vmax.f32 %v4249_v38, %v4250_v23 }
0x2aa5   :  { %v4260_v55 = vmax.f32 %v4258_v20, %v4259_v29  ;;  %v4273_v14 = vsel %vm749_vm5, %v4234_v60, %v4272_v27  ;;  %v4248_v42 = vmax.f32 %v4246_v33, %v4247_v7 }
0x2aa6   :  { %v4241_v45 = vmax.f32 %v4239_v49, %v4240_v13  ;;  %v4252_v18 = vrot.slane %v4251_v54, 2 }
0x2aa7   :  { %v4261_v48 = vrot.slane %v4260_v55, 1 }
0x2aa8   :  { %v4253_v12 = vmax.f32 %v4251_v54, %v4252_v18  ;;  %v4274_v32 = vsel %vm751_vm6, %v4241_v45, %v4273_v14 }
0x2aa9   :  { %v4275_v44 = vsel %vm753_vm7, %v4248_v42, %v4274_v32  ;;  %v4262_v43 = vmax.f32 %v4260_v55, %v4261_v48 }
0x2aaa   :  { %v4254_v19 = vrot.slane %v4253_v12, 1 }
0x2aac   :  { %v4255_v0 = vmax.f32 %v4253_v12, %v4254_v19 }
0x2aae   :  { %v4276_v52 = vsel %vm755_vm8, %v4255_v0, %v4275_v44 }
0x2aaf   :  { %v4277_v16 = vsel %vm757_vm9, %v4262_v43, %v4276_v52 }
0x2ab0   :  { %6821 = vmatmul.mubr.msk.f32.vlgmr.msra.gmra.mrb[32].mxu1 %vm103_vm1, %v4277_v16 }
0x2ab1   :  { %7268 = vmatpush3.bf16.msra.mxu1 %v7969_v37  ;;  %6839 = vmatprep.mubr.msk.f32.mxu1 %vm7512_vm0, %v9210_v34 }
0x2ab2   :  { %7269 = vmatprep.subr.bf16.mxu1 %v9211_v47 }
0x2ab5   :  { %7271 = vmatpush3.bf16.msra.mxu1 %v7976_v10 }
0x2ab6   :  { %7272 = vmatprep.subr.bf16.mxu1 %v9211_v47 }
0x2ab9   :  { %7274 = vmatpush3.bf16.msra.mxu1 %v7986_v63 }
0x2aba   :  { %7275 = vmatprep.subr.bf16.mxu1 %v9211_v47 }
0x2abd   :  { %7277 = vmatpush3.bf16.msra.mxu1 %v7996_v57 }
0x2abe   :  { %7284 = vmatprep.subr.bf16.mxu1 %v9211_v47 }
0x2b83   :  { %v4346_v33 = vpop.f32.mrb[32].mxu1 }
0x2b84   :  { %4351 = vrot.lane.b32.xlu0 %v4346_v33, %s7516_s2  ;;  %v6822_v4 = vpop.f32.mrb[33].mxu1 }
0x2b88   :  { %4435 = vperm.xlu0 %7399, %v8689_v35  }
0x2bf6   :  { %v4352_v15 = vpop.permute.xlu0 %4351 }
0x2bf7   :  { %v4354_v9 = vadd.f32 %v4352_v15, %v8704_v59 }
0x2bf9   :  { %v4355_v28 = vadd.f32 %v4354_v9, %v8002_v8 }
0x2bfb   :  { %v4356_v58 = vmax.f32 %v4355_v28, 0.0 }
0x2bfd   :  { %4358 = vrot.lane.b32.xlu1 %v4356_v58, %s7516_s2 }
0x2c01   :  { %4441 = vperm.xlu1 %7402, %v8692_v62  }
0x2c07   :  { %v4436_v23 = vpop.permute.xlu0 %4435 }
0x2c08   :  { %v4438_v7 = vmul.f32 %v8653_v24, %v4436_v23 }
0x2c6f   :  { %v4359_v20 = vpop.permute.xlu1 %4358 }
0x2c70   :  { %6840 = vmatmul.mubr.msk.f32.vlgmr.msra.gmra.mrb[34].mxu1 %vm483_vm2, %v4359_v20 }
0x2c71   :  { %7286 = vmatpush3.bf16.msra.mxu1 %v7705_v39  ;;  %6861 = vmatprep.mubr.msk.f32.mxu1 %vm7512_vm0, %v9210_v34 }
0x2c72   :  { %7287 = vmatprep.subr.bf16.mxu1 %v9211_v47 }
0x2c75   :  { %7289 = vmatpush3.bf16.msra.mxu1 %v7711_v41 }
0x2c76   :  { %7306 = vmatprep.subr.bf16.mxu1 %v9211_v47 }
0x2d43   :  { %v4428_v59 = vpop.f32.mrb[34].mxu1 }
0x2d44   :  { %v4429_v38 = vadd.f32 %v8488_v21, %v4428_v59  ;;  %v6841_v40 = vpop.f32.mrb[35].mxu1  ;;  %v4442_v21 = vpop.permute.xlu1 %4441 }
0x2d45   :  { %v4444_v60 = vmul.f32 %v8647_v36, %v4442_v21 }
0x2d46   :  { %v4432_v49 = vmax.f32 %v4429_v38, 0.0 }
0x2d47   :  { %v4445_v29 = vadd.f32 %v4444_v60, %v4438_v7 }
0x2d48   :  { %6851 = vmatmul.mubr.msk.f32.vlgmr.msra.gmra.mrb[60].mxu0 %vm103_vm1, %v4432_v49 }
0x2d49   :  { %7293 = vmatpush3.bf16.msra.mxu0 %v7770_v11  ;;  %v4446_v27 = vadd.f32 %v8659_v5, %v4445_v29 }
0x2d4a   :  { %7295 = vmatprep.subr.bf16.mxu0 %v7784_v17 }
0x2d4d   :  { %7297 = vmatpush3.bf16.msra.mxu0 %v7784_v17 }
0x2d4e   :  { %7299 = vmatprep.subr.bf16.mxu0 %v7798_v22 }
0x2d51   :  { %7301 = vmatpush3.bf16.msra.mxu0 %v7798_v22 }
0x2d52   :  { %7303 = vmatprep.subr.bf16.mxu0 %v7811_v26 }
0x2d55   :  { %7305 = vmatpush3.bf16.msra.mxu0 %v7811_v26 }
0x2d56   :  { %7324 = vmatprep.subr.bf16.mxu0 %v9211_v47 }
0x2e1b   :  { %v4516_v13 = vpop.f32.mrb[60].mxu0 }
0x2e1c   :  { %v4520_v54 = vadd.f32 %v4516_v13, %v4446_v27  ;;  %v6852_v55 = vpop.f32.mrb[61].mxu0 }
0x2e1e   :  { %7452 = vtanh.f32 %v4520_v54  ;;  %v6017_v45 = vmul.f32 -1.442695, %v4520_v54 }
0x2e20   :  { %7454 = vpow2.f32 %v6017_v45 }
0x2e28   :  { %v7453_v14 = vpop.eup %7452 }
0x2e29   :  { %4530 = vrot.lane.b32.xlu0 %v7453_v14, %s7516_s2 }
0x2e2a   :  { %v7455_v18 = vpop.eup %7454 }
0x2e2b   :  { %v4524_v42 = vadd.f32 1.0, %v7455_v18 }
0x2e2d   :  { %7456 = vrcp.f32 %v4524_v42 }
0x2e37   :  { %v7457_v12 = vpop.eup %7456 }
0x2e38   :  { %v4528_v44 = vmul.f32 %v7457_v12, %v8665_v51 }
0x2e9b   :  { %v4531_v32 = vpop.permute.xlu0 %4530 }
0x2e9c   :  { %v4533_v48 = vmul.f32 %v7457_v12, %v4531_v32 }
0x2e9e   :  { %4535 = vrot.lane.b32.xlu1 %v4533_v48, %s7517_s27 }
0x2f10   :  { %v4536_v19 = vpop.permute.xlu1 %4535 }
0x2f11   :  { %v8824_v0 = vadd.f32 %v4536_v19, %v4528_v44  ;;  %v9261_v44 = vld [vmem:[#allocation27_spill] sm:$0xff] }
0x2f13   :  { %7458 = vtanh.f32 %v8824_v0 }
0x2f1d   :  { %v7459_v43 = vpop.eup %7458 }
0x2f1e   :  { %4541 = vrot.lane.b32.xlu0 %v7459_v43, %s7516_s2  ;;  %v9262_v43 = vld [vmem:[#allocation10_spill] sm:$0xff] }
0x2f90   :  { %v4542_v52 = vpop.permute.xlu0 %4541 }
0x2f91   :  { %v4544_v16 = vmul.f32 %v7457_v12, %v4542_v52 }
0x2f93   :  { %4546 = vrot.lane.b32.xlu1 %v4544_v16, %s7517_s27  ;;  %v4620_v33 = vmul.f32 %v4544_v16, %v7721_v46  ;;  %v4629_v4 = vmul.f32 %v4544_v16, %v7731_v50 }
0x2f95   :  { %4622 = vrot.lane.b32.xlu0 %v4620_v33, %s7517_s27 }
0x2f97   :  { %4631 = vrot.lane.b32.xlu1 %v4629_v4, %s7517_s27 }
0x3005   :  { %v4547_v51 = vpop.permute.xlu1 %4546 }
0x3006   :  { %6862 = vmatmul.mubr.msk.f32.vlgmr.msra.gmra.mrb[36].mxu1 %vm103_vm1, %v4547_v51 }
0x3007   :  { %v4623_v15 = vpop.permute.xlu0 %4622  ;;  %7308 = vmatpush3.bf16.msra.mxu1 %v7891_v61  ;;  %6900 = vmatprep.mubr.msk.f32.mxu1 %vm7512_vm0, %v9210_v34 }
0x3008   :  { %v4625_v9 = vsel %vm103_vm1, %v4623_v15, 0.0  ;;  %7309 = vmatprep.subr.bf16.mxu1 %v9211_v47 }
0x3009   :  { %v4632_v28 = vpop.permute.xlu1 %4631  ;;  %4626 = vadd.xlane.f32.xlu0 %v4625_v9 }
0x300a   :  { %v4634_v58 = vsel %vm103_vm1, %v4632_v28, 0.0 }
0x300b   :  { %4635 = vadd.xlane.f32.xlu1 %v4634_v58  ;;  %7311 = vmatpush3.bf16.msra.mxu1 %v7901_v2 }
0x300c   :  { %7312 = vmatprep.subr.bf16.mxu1 %v9211_v47 }
0x3096   :  { %v4627_v20 = vpop.xlane.xlu0 %4626 }
0x3097   :  { %v8843_v59 = vadd.f32 %v8686_v1, %v4627_v20 }
0x3098   :  { %v4636_v38 = vpop.xlane.xlu1 %4635 }
0x3099   :  { %v8846_v40 = vadd.f32 %v8686_v1, %v4636_v38  ;;  %v8850_v49 = vadd.f32 %v8843_v59, %v8696_v56 }
0x309b   :  { %v8854_v21 = vadd.f32 %v8846_v40, %v8700_v6  ;;  %4642 = vperm.xlu0 %7399, %v8850_v49  }
0x309d   :  { %4648 = vperm.xlu1 %7402, %v8854_v21  }
0x30d9   :  { %v8858_v23 = vpop.f32.mrb[36].mxu1 }
0x30da   :  { %v6863_v60 = vpop.f32.mrb[37].mxu1 }
0x311a   :  { %v4643_v7 = vpop.permute.xlu0 %4642 }
0x311b   :  { %v4645_v27 = vmul.f32 %v8709_v30, %v4643_v7 }
0x311c   :  { %v4649_v29 = vpop.permute.xlu1 %4648 }
0x311d   :  { %v4651_v13 = vmul.f32 %v8715_v31, %v4649_v29 }
0x311f   :  { %v4652_v54 = vadd.f32 %v4651_v13, %v4645_v27 }
0x3121   :  { %v4656_v56 = vcombine.high %v4652_v54, %v4652_v54  ;;  %v4663_v55 = vrot.slane %v4652_v54, %v9228_v3  ;;  %v4653_v6 = vadd.f32 %v4652_v54, %v8858_v23 }
0x3123   :  { %v4670_v14 = vrot.slane %v4656_v56, %v9228_v3  ;;  %v4671_v45 = vcombine.high %v4663_v55, %v4663_v55  ;;  %v4679_v18 = vrot.slane %v4663_v55, %v9228_v3  ;;  %v4654_v19 = vadd.f32 %v9261_v44, %v4653_v6  ;;  %v9263_v6 = vld [vmem:[#allocation5_spill] sm:$0xff] }
0x3125   :  { %v4672_v42 = vcombine.high %v4670_v14, %v4670_v14  ;;  %v4686_v12 = vrot.slane %v4670_v14, %v9228_v3  ;;  %v4693_v32 = vrot.slane %v4671_v45, %v9228_v3  ;;  %v4701_v48 = vcombine.high %v4679_v18, %v4679_v18 }
0x3126   :  { %v4708_v52 = vrot.slane %v4679_v18, %v9262_v43 }
0x3127   :  { %v4712_v16 = vrot.slane %v4693_v32, %v9262_v43  ;;  %v4716_v33 = vrot.slane %v4701_v48, %v9262_v43  ;;  %v4703_v4 = vcombine.high %v4693_v32, %v4693_v32  ;;  %v4724_v15 = vrot.slane %v4686_v12, %v9262_v43  ;;  %v9264_v32 = vld [vmem:[#allocation6_spill] sm:$0xff] }
0x3128   :  { %v4745_v51 = vsub.f32 %v4654_v19, %v4708_v52  ;;  %v4700_v9 = vrot.slane %v4672_v42, %v9228_v3  ;;  %v4702_v28 = vcombine.high %v4686_v12, %v4686_v12 }
0x3129   :  { %v4746_v58 = vsub.f32 %v4654_v19, %v4712_v16  ;;  %v4747_v20 = vsub.f32 %v4654_v19, %v4716_v33  ;;  %v4720_v38 = vrot.slane %v4703_v4, %v9262_v43  ;;  %v4749_v56 = vsub.f32 %v4654_v19, %v4724_v15 }
0x312a   :  { %v4753_v60 = vmax.f32 %v4745_v51, 0.0  ;;  %v4728_v7 = vrot.slane %v4700_v9, %v9262_v43  ;;  %v4704_v54 = vcombine.high %v4700_v9, %v4700_v9  ;;  %v4732_v55 = vrot.slane %v4702_v28, %v9262_v43  ;;  %v9265_v51 = vld [vmem:[#allocation22_spill] sm:$0xff] }
0x312b   :  { %v4754_v29 = vmax.f32 %v4746_v58, 0.0  ;;  %v4755_v27 = vmax.f32 %v4747_v20, 0.0  ;;  %v4748_v13 = vsub.f32 %v4654_v19, %v4720_v38  ;;  %v4757_v42 = vmax.f32 %v4749_v56, 0.0  ;;  %v9266_v38 = vld [vmem:[#allocation12_spill] sm:$0xff] }
0x312c   :  { %6880 = vmatprep.mubr.msk.f32.mxu0 %vm483_vm2, %v4753_v60  ;;  %v4750_v45 = vsub.f32 %v4654_v19, %v4728_v7  ;;  %v4736_v18 = vrot.slane %v4704_v54, %v9262_v43  ;;  %v4751_v12 = vsub.f32 %v4654_v19, %v4732_v55 }
0x312d   :  { %6881 = vmatmul.mubr.msk.f32.vlgmr.msra.gmra.mrb[62].mxu0 %vm483_vm2, %v4754_v29  ;;  %v4756_v14 = vmax.f32 %v4748_v13, 0.0 }
0x312e   :  { %6883 = vmatprep.mubr.msk.f32.mxu0 %vm483_vm2, %v4755_v27  ;;  %7326 = vmatpush3.bf16.msra.mxu0 %v9263_v6  ;;  %v4758_v48 = vmax.f32 %v4750_v45, 0.0  ;;  %v4752_v52 = vsub.f32 %v4654_v19, %v4736_v18  ;;  %v4759_v16 = vmax.f32 %v4751_v12, 0.0  ;;  %v9267_v27 = vld [vmem:[#allocation11_spill] sm:$0xff]  ;;  %v9268_v12 = vld [vmem:[#allocation14_spill] sm:$0xff] }
0x312f   :  { %7327 = vmatprep.subr.bf16.mxu0 %v9211_v47 }
0x3130   :  { %v4760_v33 = vmax.f32 %v4752_v52, 0.0 }
0x3131   :  { %6884 = vmatmul.mubr.msk.f32.gmra.mrb[64].mxu0 %vm483_vm2, %v4756_v14 }
0x3132   :  { %6886 = vmatprep.mubr.msk.f32.mxu0 %vm483_vm2, %v4757_v42  ;;  %7329 = vmatpush3.bf16.msra.mxu0 %v9264_v32 }
0x3133   :  { %7337 = vmatprep.subr.bf16.mxu0 %v7770_v11 }
0x3135   :  { %6887 = vmatmul.mubr.msk.f32.gmra.mrb[66].mxu0 %vm483_vm2, %v4758_v48 }
0x3136   :  { %6889 = vmatprep.mubr.msk.f32.mxu0 %vm483_vm2, %v4759_v16 }
0x3139   :  { %6890 = vmatmul.mubr.msk.f32.gmra.mrb[68].mxu0 %vm483_vm2, %v4760_v33  ;;  %v9269_v33 = vld [vmem:[#allocation13_spill] sm:$0xff] }
0x313a   :  { %6930 = vmatprep.mubr.msk.f32.mxu0 %vm7512_vm0, %v9210_v34 }
0x3200   :  { %v6882_v4 = vpop.f32.mrb[62].mxu0 }
0x3201   :  { %v4857_v15 = vadd.f32 %v9265_v51, %v6882_v4  ;;  %v4851_v9 = vpop.f32.mrb[63].mxu0 }
0x3202   :  { %v4852_v28 = vadd.f32 %v9265_v51, %v4851_v9 }
0x3203   :  { %v4891_v19 = vmax.f32 %v4857_v15, 0.0 }
0x3204   :  { %v4890_v58 = vmax.f32 %v4852_v28, 0.0  ;;  %v6885_v20 = vpop.f32.mrb[64].mxu0 }
0x3205   :  { %v4899_v60 = vmul.f32 %v4891_v19, %v9266_v38  ;;  %v4867_v7 = vadd.f32 %v9265_v51, %v6885_v20  ;;  %v4861_v29 = vpop.f32.mrb[65].mxu0 }
0x3206   :  { %v4898_v13 = vmul.f32 %v4890_v58, %v9267_v27  ;;  %v4862_v54 = vadd.f32 %v9265_v51, %v4861_v29 }
0x3207   :  { %v4913_v56 = vsel %vm103_vm1, %v4899_v60, -inf  ;;  %v4893_v55 = vmax.f32 %v4867_v7, 0.0 }
0x3208   :  { %v4914_v6 = vrot.slane %v4913_v56, 4  ;;  %v4906_v14 = vsel %vm103_vm1, %v4898_v13, -inf  ;;  %v4892_v45 = vmax.f32 %v4862_v54, 0.0  ;;  %v6888_v18 = vpop.f32.mrb[66].mxu0 }
0x3209   :  { %v4907_v42 = vrot.slane %v4906_v14, 4  ;;  %v4901_v32 = vmul.f32 %v4893_v55, %v9268_v12  ;;  %v4877_v48 = vadd.f32 %v9265_v51, %v6888_v18  ;;  %v4871_v52 = vpop.f32.mrb[67].mxu0  ;;  %v9270_v55 = vld [vmem:[#allocation16_spill] sm:$0xff] }
0x320a   :  { %v4915_v16 = vmax.f32 %v4913_v56, %v4914_v6  ;;  %v4900_v4 = vmul.f32 %v4892_v45, %v9269_v33  ;;  %v4872_v15 = vadd.f32 %v9265_v51, %v4871_v52  ;;  %v8910_v56 = vld [vmem:[%s9119_s14] ss:$0 sm:$0xff] }
0x320b   :  { %v4908_v9 = vmax.f32 %v4906_v14, %v4907_v42  ;;  %v4927_v28 = vsel %vm103_vm1, %v4901_v32, -inf  ;;  %v4895_v19 = vmax.f32 %v4877_v48, 0.0  ;;  %9271 = vst [vmem:[#allocation27_spill] sm:$0xff] %v8910_v56  ;;  %v9272_v42 = vld [vmem:[#allocation15_spill] sm:$0xff] }
0x320c   :  { %v4916_v58 = vrot.slane %v4915_v16, 2  ;;  %v4928_v20 = vrot.slane %v4927_v28, 4  ;;  %v4920_v60 = vsel %vm103_vm1, %v4900_v4, -inf  ;;  %v4894_v7 = vmax.f32 %v4872_v15, 0.0  ;;  %v6891_v29 = vpop.f32.mrb[68].mxu0 }
0x320d   :  { %v4909_v13 = vrot.slane %v4908_v9, 2  ;;  %v4921_v54 = vrot.slane %v4920_v60, 4  ;;  %v4903_v18 = vmul.f32 %v4895_v19, %v9270_v55  ;;  %v4887_v51 = vadd.f32 %v8910_v56, %v6891_v29  ;;  %v4881_v6 = vpop.f32.mrb[69].mxu0 }
0x320e   :  { %v4917_v14 = vmax.f32 %v4915_v16, %v4916_v58  ;;  %v4929_v45 = vmax.f32 %v4927_v28, %v4928_v20  ;;  %v4902_v32 = vmul.f32 %v4894_v7, %v9272_v42  ;;  %v4882_v48 = vadd.f32 %v8910_v56, %v4881_v6 }
0x320f   :  { %v4910_v52 = vmax.f32 %v4908_v9, %v4909_v13  ;;  %v4922_v4 = vmax.f32 %v4920_v60, %v4921_v54  ;;  %v4941_v15 = vsel %vm103_vm1, %v4903_v18, -inf  ;;  %v4897_v62 = vmax.f32 %v4887_v51, 0.0 }
0x3210   :  { %v4918_v19 = vrot.slane %v4917_v14, 1  ;;  %v4930_v35 = vrot.slane %v4929_v45, 2  ;;  %v4942_v55 = vrot.slane %v4941_v15, 4  ;;  %v4934_v33 = vsel %vm103_vm1, %v4902_v32, -inf }
0x3211   :  { %v4911_v12 = vrot.slane %v4910_v52, 1  ;;  %v4923_v27 = vrot.slane %v4922_v4, 2  ;;  %v4935_v29 = vrot.slane %v4934_v33, 4  ;;  %v4905_v16 = vmul.f32 %v4897_v62, %v7941_v53 }
0x3212   :  { %v4919_v28 = vmax.f32 %v4917_v14, %v4918_v19  ;;  %v4931_v58 = vmax.f32 %v4929_v45, %v4930_v35  ;;  %v4943_v20 = vmax.f32 %v4941_v15, %v4942_v55  ;;  %v4896_v7 = vmax.f32 %v4882_v48, 0.0 }
0x3213   :  { %v4912_v6 = vmax.f32 %v4910_v52, %v4911_v12  ;;  %v4924_v9 = vmax.f32 %v4922_v4, %v4923_v27  ;;  %v4936_v60 = vmax.f32 %v4934_v33, %v4935_v29  ;;  %v4955_v13 = vsel %vm103_vm1, %v4905_v16, -inf }
0x3214   :  { %v4932_v54 = vrot.slane %v4931_v58, 1  ;;  %v4944_v18 = vrot.slane %v4943_v20, 2  ;;  %v4956_v51 = vrot.slane %v4955_v13, 4  ;;  %v4904_v42 = vmul.f32 %v4896_v7, %v7945_v25 }
0x3215   :  { %v4970_v32 = vsel %vm745_vm3, %v4919_v28, %v4912_v6  ;;  %v4925_v38 = vrot.slane %v4924_v9, 1  ;;  %v4937_v56 = vrot.slane %v4936_v60, 2 }
0x3216   :  { %v4945_v43 = vmax.f32 %v4943_v20, %v4944_v18  ;;  %v4957_v62 = vmax.f32 %v4955_v13, %v4956_v51  ;;  %v4948_v35 = vsel %vm103_vm1, %v4904_v42, -inf  ;;  %v4933_v27 = vmax.f32 %v4931_v58, %v4932_v54 }
0x3217   :  { %v4926_v55 = vmax.f32 %v4924_v9, %v4925_v38  ;;  %v4938_v14 = vmax.f32 %v4936_v60, %v4937_v56  ;;  %v4949_v12 = vrot.slane %v4948_v35, 4 }
0x3218   :  { %v4946_v33 = vrot.slane %v4945_v43, 1  ;;  %v4958_v45 = vrot.slane %v4957_v62, 2 }
0x3219   :  { %v4971_v48 = vsel %vm747_vm4, %v4926_v55, %v4970_v32  ;;  %v4939_v52 = vrot.slane %v4938_v14, 1  ;;  %v4950_v4 = vmax.f32 %v4948_v35, %v4949_v12  ;;  %v8955_v35 = vld [vmem:[%s9123_s18] ss:$0 sm:$0xff]  ;;  %s7520_s18 = smov 2  }
0x321a   :  { %v4959_v15 = vmax.f32 %v4957_v62, %v4958_v45  ;;  %v4972_v19 = vsel %vm749_vm5, %v4933_v27, %v4971_v48  ;;  %v4947_v28 = vmax.f32 %v4945_v43, %v4946_v33 }
0x321b   :  { %v4940_v29 = vmax.f32 %v4938_v14, %v4939_v52  ;;  %v4951_v16 = vrot.slane %v4950_v4, 2 }
0x321c   :  { %v4960_v42 = vrot.slane %v4959_v15, 1 }
0x321d   :  { %v4952_v20 = vmax.f32 %v4950_v4, %v4951_v16  ;;  %v4973_v7 = vsel %vm751_vm6, %v4940_v29, %v4972_v19 }
0x321e   :  { %v4974_v38 = vsel %vm753_vm7, %v4947_v28, %v4973_v7  ;;  %v4961_v6 = vmax.f32 %v4959_v15, %v4960_v42 }
0x321f   :  { %v4953_v56 = vrot.slane %v4952_v20, 1 }
0x3221   :  { %v4954_v58 = vmax.f32 %v4952_v20, %v4953_v56 }
0x3223   :  { %v4975_v9 = vsel %vm755_vm8, %v4954_v58, %v4974_v38 }
0x3224   :  { %v4976_v60 = vsel %vm757_vm9, %v4961_v6, %v4975_v9 }
0x3225   :  { %6901 = vmatmul.mubr.msk.f32.vlgmr.msra.gmra.mrb[38].mxu1 %vm103_vm1, %v4976_v60 }
0x3226   :  { %7314 = vmatpush3.bf16.msra.mxu1 %v7969_v37  ;;  %6919 = vmatprep.mubr.msk.f32.mxu1 %vm7512_vm0, %v9210_v34 }
0x3227   :  { %7315 = vmatprep.subr.bf16.mxu1 %v9211_v47 }
0x322a   :  { %7317 = vmatpush3.bf16.msra.mxu1 %v7976_v10 }
0x322b   :  { %7318 = vmatprep.subr.bf16.mxu1 %v9211_v47 }
0x322e   :  { %7320 = vmatpush3.bf16.msra.mxu1 %v7986_v63 }
0x322f   :  { %7321 = vmatprep.subr.bf16.mxu1 %v9211_v47 }
0x3232   :  { %7323 = vmatpush3.bf16.msra.mxu1 %v7996_v57 }
0x3233   :  { %7330 = vmatprep.subr.bf16.mxu1 %v9211_v47 }
0x32f8   :  { %v5045_v43 = vpop.f32.mrb[38].mxu1 }
0x32f9   :  { %5050 = vrot.lane.b32.xlu0 %v5045_v43, %s7516_s2  ;;  %v6902_v13 = vpop.f32.mrb[39].mxu1 }
0x32fd   :  { %5134 = vperm.xlu0 %7399, %v8843_v59  }
0x336b   :  { %v5051_v54 = vpop.permute.xlu0 %5050 }
0x336c   :  { %v5053_v18 = vadd.f32 %v5051_v54, %v8858_v23  ;;  %v9273_v54 = vmov 1  }
0x336e   :  { %v5054_v51 = vadd.f32 %v5053_v18, %v8002_v8 }
0x3370   :  { %v5055_v32 = vmax.f32 %v5054_v51, 0.0 }
0x3372   :  { %5057 = vrot.lane.b32.xlu1 %v5055_v32, %s7516_s2 }
0x3376   :  { %5140 = vperm.xlu1 %7402, %v8846_v40  }
0x33e4   :  { %v5058_v62 = vpop.permute.xlu1 %5057 }
0x33e5   :  { %6920 = vmatmul.mubr.msk.f32.vlgmr.msra.gmra.mrb[40].mxu1 %vm483_vm2, %v5058_v62 }
0x33e6   :  { %7332 = vmatpush3.bf16.msra.mxu1 %v7705_v39  ;;  %6941 = vmatprep.mubr.msk.f32.mxu1 %vm7512_vm0, %v9210_v34 }
0x33e7   :  { %7333 = vmatprep.subr.bf16.mxu1 %v9211_v47 }
0x33ea   :  { %7335 = vmatpush3.bf16.msra.mxu1 %v7711_v41  ;;  %v5135_v41 = vpop.permute.xlu0 %5134 }
0x33eb   :  { %7352 = vmatprep.subr.bf16.mxu1 %v9211_v47  ;;  %v5137_v33 = vmul.f32 %v8653_v24, %v5135_v41 }
0x33f5   :  { %v5141_v39 = vpop.permute.xlu1 %5140 }
0x33f6   :  { %v5143_v27 = vmul.f32 %v8647_v36, %v5141_v39 }
0x33f8   :  { %v5144_v45 = vadd.f32 %v5143_v27, %v5137_v33 }
0x34b8   :  { %v5127_v23 = vpop.f32.mrb[40].mxu1 }
0x34b9   :  { %v5128_v55 = vadd.f32 %v8955_v35, %v5127_v23  ;;  %v6921_v14 = vpop.f32.mrb[41].mxu1 }
0x34bb   :  { %v5131_v12 = vmax.f32 %v5128_v55, 0.0 }
0x34bd   :  { %6931 = vmatmul.mubr.msk.f32.vlgmr.msra.gmra.mrb[70].mxu0 %vm103_vm1, %v5131_v12 }
0x34be   :  { %7339 = vmatpush3.bf16.msra.mxu0 %v7770_v11  ;;  %v5145_v11 = vadd.f32 %v8659_v5, %v5144_v45 }
0x34bf   :  { %7341 = vmatprep.subr.bf16.mxu0 %v7784_v17 }
0x34c2   :  { %7343 = vmatpush3.bf16.msra.mxu0 %v7784_v17 }
0x34c3   :  { %7345 = vmatprep.subr.bf16.mxu0 %v7798_v22 }
0x34c6   :  { %7347 = vmatpush3.bf16.msra.mxu0 %v7798_v22 }
0x34c7   :  { %7349 = vmatprep.subr.bf16.mxu0 %v7811_v26 }
0x34ca   :  { %7351 = vmatpush3.bf16.msra.mxu0 %v7811_v26 }
0x3590   :  { %v5215_v48 = vpop.f32.mrb[70].mxu0 }
0x3591   :  { %v5219_v52 = vadd.f32 %v5215_v48, %v5145_v11  ;;  %v6932_v17 = vpop.f32.mrb[71].mxu0 }
0x3593   :  { %7460 = vtanh.f32 %v5219_v52  ;;  %v6030_v22 = vmul.f32 -1.442695, %v5219_v52 }
0x3595   :  { %7462 = vpow2.f32 %v6030_v22 }
0x359d   :  { %v7461_v4 = vpop.eup %7460 }
0x359e   :  { %5229 = vrot.lane.b32.xlu0 %v7461_v4, %s7516_s2 }
0x359f   :  { %v7463_v15 = vpop.eup %7462 }
0x35a0   :  { %v5223_v26 = vadd.f32 1.0, %v7463_v15 }
0x35a2   :  { %7464 = vrcp.f32 %v5223_v26 }
0x35ac   :  { %v7465_v19 = vpop.eup %7464 }
0x35ad   :  { %v5227_v24 = vmul.f32 %v7465_v19, %v8824_v0 }
0x3610   :  { %v5230_v29 = vpop.permute.xlu0 %5229 }
0x3611   :  { %v5232_v36 = vmul.f32 %v7465_v19, %v5230_v29 }
0x3613   :  { %5234 = vrot.lane.b32.xlu1 %v5232_v36, %s7517_s27 }
0x3685   :  { %v5235_v5 = vpop.permute.xlu1 %5234 }
0x3686   :  { %v5237_v16 = vadd.f32 %v5235_v5, %v5227_v24 }
0x3688   :  { %7466 = vtanh.f32 %v5237_v16 }
0x3692   :  { %v7467_v28 = vpop.eup %7466 }
0x3693   :  { %5240 = vrot.lane.b32.xlu0 %v7467_v28, %s7516_s2 }
0x3705   :  { %v5241_v20 = vpop.permute.xlu0 %5240 }
0x3706   :  { %v5243_v7 = vmul.f32 %v7465_v19, %v5241_v20 }
0x3708   :  { %5245 = vrot.lane.b32.xlu1 %v5243_v7, %s7517_s27  ;;  %v5319_v42 = vmul.f32 %v5243_v7, %v7721_v46  ;;  %v5328_v38 = vmul.f32 %v5243_v7, %v7731_v50 }
0x370a   :  { %5321 = vrot.lane.b32.xlu0 %v5319_v42, %s7517_s27 }
0x370c   :  { %5330 = vrot.lane.b32.xlu1 %v5328_v38, %s7517_s27  ;;  %s7521_s27 = smov 4  }
0x377a   :  { %v5246_v56 = vpop.permute.xlu1 %5245 }
0x377b   :  { %6942 = vmatmul.mubr.msk.f32.vlgmr.msra.gmra.mrb[42].mxu1 %vm103_vm1, %v5246_v56 }
0x377c   :  { %v5322_v0 = vpop.permute.xlu0 %5321  ;;  %7354 = vmatpush3.bf16.msra.mxu1 %v7891_v61  ;;  %6980 = vmatprep.mubr.msk.f32.mxu1 %vm7512_vm0, %v9210_v34 }
0x377d   :  { %v5324_v58 = vsel %vm103_vm1, %v5322_v0, 0.0  ;;  %7355 = vmatprep.subr.bf16.mxu1 %v9211_v47 }
0x377e   :  { %v5331_v46 = vpop.permute.xlu1 %5330  ;;  %5325 = vadd.xlane.f32.xlu0 %v5324_v58 }
0x377f   :  { %v5333_v50 = vsel %vm103_vm1, %v5331_v46, 0.0 }
0x3780   :  { %5334 = vadd.xlane.f32.xlu1 %v5333_v50  ;;  %7357 = vmatpush3.bf16.msra.mxu1 %v7901_v2 }
0x3781   :  { %7358 = vmatprep.subr.bf16.mxu1 %v9211_v47 }
0x380b   :  { %v5326_v6 = vpop.xlane.xlu0 %5325 }
0x380c   :  { %v8988_v9 = vadd.f32 %v8686_v1, %v5326_v6 }
0x380d   :  { %v5335_v61 = vpop.xlane.xlu1 %5334 }
0x380e   :  { %v5337_v60 = vadd.f32 %v8988_v9, %v8850_v49  ;;  %v8993_v43 = vadd.f32 %v8686_v1, %v5335_v61 }
0x3810   :  { %v5338_v13 = vadd.f32 %v8993_v43, %v8854_v21  ;;  %5341 = vperm.xlu0 %7399, %v5337_v60  }
0x3812   :  { %5347 = vperm.xlu1 %7402, %v5338_v13   ;;  %v9275_v13 = vld [vmem:[#allocation27_spill] sm:$0xff] }
0x3814   :  { %7403 = vset.pattern.permute.xlu0 %v9273_v54 }
0x384e   :  { %v8998_v2 = vpop.f32.mrb[42].mxu1 }
0x384f   :  { %v6943_v18 = vpop.f32.mrb[43].mxu1 }
0x388f   :  { %v5342_v51 = vpop.permute.xlu0 %5341 }
0x3890   :  { %v5344_v62 = vmul.f32 %v8709_v30, %v5342_v51 }
0x3891   :  { %v5348_v32 = vpop.permute.xlu1 %5347 }
0x3892   :  { %v5350_v23 = vmul.f32 %v8715_v31, %v5348_v32  ;;  %v9274_v31 = vld [vmem:[#allocation10_spill] sm:$0xff] }
0x3894   :  { %v5351_v49 = vadd.f32 %v5350_v23, %v5344_v62 }
0x3896   :  { %v5355_v55 = vcombine.high %v5351_v49, %v5351_v49  ;;  %v5362_v1 = vrot.slane %v5351_v49, %v9228_v3  ;;  %v5352_v14 = vadd.f32 %v5351_v49, %v8998_v2  ;;  %v9276_v49 = vld [vmem:[#allocation12_spill] sm:$0xff] }
0x3898   :  { %v5369_v21 = vrot.slane %v5355_v55, %v9228_v3  ;;  %v5370_v12 = vcombine.high %v5362_v1, %v5362_v1  ;;  %v5378_v39 = vrot.slane %v5362_v1, %v9228_v3  ;;  %v5353_v30 = vadd.f32 %v9261_v44, %v5352_v14 }
0x389a   :  { %v5371_v41 = vcombine.high %v5369_v21, %v5369_v21  ;;  %v5385_v27 = vrot.slane %v5369_v21, %v9228_v3  ;;  %v5392_v33 = vrot.slane %v5370_v12, %v9228_v3  ;;  %v5400_v45 = vcombine.high %v5378_v39, %v5378_v39  ;;  %v9277_v21 = vld [vmem:[#allocation11_spill] sm:$0xff] }
0x389b   :  { %v5407_v11 = vrot.slane %v5378_v39, %v9274_v31 }
0x389c   :  { %v5411_v48 = vrot.slane %v5392_v33, %v9274_v31  ;;  %v5415_v52 = vrot.slane %v5400_v45, %v9274_v31  ;;  %v5402_v17 = vcombine.high %v5392_v33, %v5392_v33  ;;  %v5423_v22 = vrot.slane %v5385_v27, %v9274_v31 }
0x389d   :  { %v5444_v4 = vsub.f32 %v5353_v30, %v5407_v11  ;;  %v5399_v15 = vrot.slane %v5371_v41, %v9228_v3  ;;  %v5401_v26 = vcombine.high %v5385_v27, %v5385_v27 }
0x389e   :  { %v5445_v19 = vsub.f32 %v5353_v30, %v5411_v48  ;;  %v5446_v29 = vsub.f32 %v5353_v30, %v5415_v52  ;;  %v5419_v36 = vrot.slane %v5402_v17, %v9274_v31  ;;  %v5448_v7 = vsub.f32 %v5353_v30, %v5423_v22  ;;  %v9278_v48 = vld [vmem:[#allocation14_spill] sm:$0xff] }
0x389f   :  { %v5452_v24 = vmax.f32 %v5444_v4, 0.0  ;;  %v5427_v44 = vrot.slane %v5399_v15, %v9274_v31  ;;  %v5403_v20 = vcombine.high %v5399_v15, %v5399_v15  ;;  %v5431_v42 = vrot.slane %v5401_v26, %v9274_v31  ;;  %v9279_v15 = vld [vmem:[#allocation13_spill] sm:$0xff] }
0x38a0   :  { %v5453_v5 = vmax.f32 %v5445_v19, 0.0  ;;  %v5454_v16 = vmax.f32 %v5446_v29, 0.0  ;;  %v5447_v28 = vsub.f32 %v5353_v30, %v5419_v36  ;;  %v5456_v0 = vmax.f32 %v5448_v7, 0.0 }
0x38a1   :  { %6960 = vmatprep.mubr.msk.f32.mxu0 %vm483_vm2, %v5452_v24  ;;  %v5449_v38 = vsub.f32 %v5353_v30, %v5427_v44  ;;  %v5435_v56 = vrot.slane %v5403_v20, %v9274_v31  ;;  %v5450_v58 = vsub.f32 %v5353_v30, %v5431_v42 }
0x38a2   :  { %6961 = vmatmul.mubr.msk.f32.vlgmr.msra.gmra.mrb[72].mxu0 %vm483_vm2, %v5453_v5  ;;  %v5455_v3 = vmax.f32 %v5447_v28, 0.0 }
0x38a3   :  { %6963 = vmatprep.mubr.msk.f32.mxu0 %vm483_vm2, %v5454_v16  ;;  %v5457_v46 = vmax.f32 %v5449_v38, 0.0  ;;  %v5451_v50 = vsub.f32 %v5353_v30, %v5435_v56  ;;  %v5458_v6 = vmax.f32 %v5450_v58, 0.0 }
0x38a5   :  { %v5459_v61 = vmax.f32 %v5451_v50, 0.0  ;;  %v9281_v50 = vld [vmem:[#allocation15_spill] sm:$0xff] }
0x38a6   :  { %6964 = vmatmul.mubr.msk.f32.gmra.mrb[74].mxu0 %vm483_vm2, %v5455_v3  ;;  %v9280_v3 = vld [vmem:[#allocation16_spill] sm:$0xff] }
0x38a7   :  { %6966 = vmatprep.mubr.msk.f32.mxu0 %vm483_vm2, %v5456_v0 }
0x38aa   :  { %6967 = vmatmul.mubr.msk.f32.gmra.mrb[76].mxu0 %vm483_vm2, %v5457_v46 }
0x38ab   :  { %6969 = vmatprep.mubr.msk.f32.mxu0 %vm483_vm2, %v5458_v6 }
0x38ae   :  { %6970 = vmatmul.mubr.msk.f32.gmra.mrb[78].mxu0 %vm483_vm2, %v5459_v61 }
0x3975   :  { %v6962_v60 = vpop.f32.mrb[72].mxu0 }
0x3976   :  { %v5556_v54 = vadd.f32 %v9275_v13, %v6962_v60  ;;  %v5550_v18 = vpop.f32.mrb[73].mxu0 }
0x3977   :  { %v5551_v51 = vadd.f32 %v9275_v13, %v5550_v18 }
0x3978   :  { %v5590_v32 = vmax.f32 %v5556_v54, 0.0 }
0x3979   :  { %v5589_v62 = vmax.f32 %v5551_v51, 0.0  ;;  %v6965_v23 = vpop.f32.mrb[74].mxu0 }
0x397a   :  { %v5598_v55 = vmul.f32 %v5590_v32, %v9276_v49  ;;  %v5566_v1 = vadd.f32 %v9275_v13, %v6965_v23  ;;  %v5560_v14 = vpop.f32.mrb[75].mxu0 }
0x397b   :  { %v5597_v12 = vmul.f32 %v5589_v62, %v9277_v21  ;;  %v5561_v39 = vadd.f32 %v9275_v13, %v5560_v14 }
0x397c   :  { %v5612_v41 = vsel %vm103_vm1, %v5598_v55, -inf  ;;  %v5592_v27 = vmax.f32 %v5566_v1, 0.0 }
0x397d   :  { %v5613_v33 = vrot.slane %v5612_v41, 4  ;;  %v5605_v45 = vsel %vm103_vm1, %v5597_v12, -inf  ;;  %v5591_v30 = vmax.f32 %v5561_v39, 0.0  ;;  %v6968_v31 = vpop.f32.mrb[76].mxu0 }
0x397e   :  { %v5606_v11 = vrot.slane %v5605_v45, 4  ;;  %v5600_v52 = vmul.f32 %v5592_v27, %v9278_v48  ;;  %v5576_v17 = vadd.f32 %v9275_v13, %v6968_v31  ;;  %v5570_v4 = vpop.f32.mrb[77].mxu0 }
0x397f   :  { %v5614_v22 = vmax.f32 %v5612_v41, %v5613_v33  ;;  %v5599_v26 = vmul.f32 %v5591_v30, %v9279_v15  ;;  %v5571_v19 = vadd.f32 %v9275_v13, %v5570_v4 }
0x3980   :  { %v5607_v29 = vmax.f32 %v5605_v45, %v5606_v11  ;;  %v5626_v36 = vsel %vm103_vm1, %v5600_v52, -inf  ;;  %v5594_v24 = vmax.f32 %v5576_v17, 0.0 }
0x3981   :  { %v5615_v44 = vrot.slane %v5614_v22, 2  ;;  %v5627_v5 = vrot.slane %v5626_v36, 4  ;;  %v5619_v16 = vsel %vm103_vm1, %v5599_v26, -inf  ;;  %v5593_v28 = vmax.f32 %v5571_v19, 0.0  ;;  %v6971_v20 = vpop.f32.mrb[78].mxu0 }
0x3982   :  { %v5608_v7 = vrot.slane %v5607_v29, 2  ;;  %v5620_v42 = vrot.slane %v5619_v16, 4  ;;  %v5602_v38 = vmul.f32 %v5594_v24, %v9280_v3  ;;  %v5586_v56 = vadd.f32 %v9275_v13, %v6971_v20  ;;  %v5580_v0 = vpop.f32.mrb[79].mxu0 }
0x3983   :  { %v5616_v58 = vmax.f32 %v5614_v22, %v5615_v44  ;;  %v5628_v46 = vmax.f32 %v5626_v36, %v5627_v5  ;;  %v5601_v6 = vmul.f32 %v5593_v28, %v9281_v50  ;;  %v5581_v61 = vadd.f32 %v9275_v13, %v5580_v0 }
0x3984   :  { %v5609_v60 = vmax.f32 %v5607_v29, %v5608_v7  ;;  %v5621_v54 = vmax.f32 %v5619_v16, %v5620_v42  ;;  %v5640_v18 = vsel %vm103_vm1, %v5602_v38, -inf  ;;  %v5596_v51 = vmax.f32 %v5586_v56, 0.0 }
0x3985   :  { %v5617_v32 = vrot.slane %v5616_v58, 1  ;;  %v5629_v62 = vrot.slane %v5628_v46, 2  ;;  %v5641_v23 = vrot.slane %v5640_v18, 4  ;;  %v5633_v49 = vsel %vm103_vm1, %v5601_v6, -inf }
0x3986   :  { %v5610_v55 = vrot.slane %v5609_v60, 1  ;;  %v5622_v1 = vrot.slane %v5621_v54, 2  ;;  %v5634_v14 = vrot.slane %v5633_v49, 4  ;;  %v5604_v21 = vmul.f32 %v5596_v51, %v7941_v53 }
0x3987   :  { %v5618_v12 = vmax.f32 %v5616_v58, %v5617_v32  ;;  %v5630_v39 = vmax.f32 %v5628_v46, %v5629_v62  ;;  %v5642_v41 = vmax.f32 %v5640_v18, %v5641_v23  ;;  %v5595_v27 = vmax.f32 %v5581_v61, 0.0  ;;  %v9285_v32 = vld [vmem:[#allocation21_spill] sm:$0xff] }
0x3988   :  { %v5611_v13 = vmax.f32 %v5609_v60, %v5610_v55  ;;  %v5623_v33 = vmax.f32 %v5621_v54, %v5622_v1  ;;  %v5635_v45 = vmax.f32 %v5633_v49, %v5634_v14  ;;  %v5654_v30 = vsel %vm103_vm1, %v5604_v21, -inf  ;;  %v9287_v49 = vld [vmem:[#allocation18_spill] sm:$0xff]  ;;  %v9288_v55 = vld [vmem:[#allocation20_spill] sm:$0xff]  ;;  %v9289_v1 = vld [vmem:[#allocation25_spill] sm:$0xff] }
0x3989   :  { %v5631_v31 = vrot.slane %v5630_v39, 1  ;;  %v5643_v11 = vrot.slane %v5642_v41, 2  ;;  %v5655_v48 = vrot.slane %v5654_v30, 4  ;;  %v5603_v52 = vmul.f32 %v5595_v27, %v7945_v25  ;;  %v9290_v14 = vld [vmem:[#allocation9_spill] sm:$0xff]  ;;  %v9292_v21 = vld [vmem:[#allocation8_spill] sm:$0xff] }
0x398a   :  { %v5669_v17 = vsel %vm745_vm3, %v5618_v12, %v5611_v13  ;;  %v5624_v4 = vrot.slane %v5623_v33, 1  ;;  %v5636_v22 = vrot.slane %v5635_v45, 2  ;;  %v9293_v12 = vld [vmem:[#allocation7_spill] sm:$0xff]  ;;  %vm5891_vm3 = vcmask 72704  }
0x398b   :  { %v5644_v15 = vmax.f32 %v5642_v41, %v5643_v11  ;;  %v5656_v53 = vmax.f32 %v5654_v30, %v5655_v48  ;;  %v5647_v26 = vsel %vm103_vm1, %v5603_v52, -inf  ;;  %v5632_v24 = vmax.f32 %v5630_v39, %v5631_v31 }
0x398c   :  { %v5625_v19 = vmax.f32 %v5623_v33, %v5624_v4  ;;  %v5637_v29 = vmax.f32 %v5635_v45, %v5636_v22  ;;  %v5648_v36 = vrot.slane %v5647_v26, 4  ;;  %v5876_v39 = vsel %vm5875_vm10, %v9293_v12, %v9292_v21 }
0x398d   :  { %v5645_v44 = vrot.slane %v5644_v15, 1  ;;  %v5657_v5 = vrot.slane %v5656_v53, 2  ;;  %vm5905_vm10 = vcmask 130048  }
0x398e   :  { %v5670_v16 = vsel %vm747_vm4, %v5625_v19, %v5669_v17  ;;  %v5638_v28 = vrot.slane %v5637_v29, 1  ;;  %v5649_v20 = vmax.f32 %v5647_v26, %v5648_v36  ;;  %vm5893_vm4 = vcmask 80896  }
0x398f   :  { %v5658_v7 = vmax.f32 %v5656_v53, %v5657_v5  ;;  %v5671_v25 = vsel %vm749_vm5, %v5632_v24, %v5670_v16  ;;  %v5646_v38 = vmax.f32 %v5644_v15, %v5645_v44  ;;  %vm5895_vm5 = vcmask 89088  }
0x3990   :  { %v5639_v42 = vmax.f32 %v5637_v29, %v5638_v28  ;;  %v5650_v3 = vrot.slane %v5649_v20, 2 }
0x3991   :  { %v5659_v58 = vrot.slane %v5658_v7, 1 }
0x3992   :  { %v5651_v56 = vmax.f32 %v5649_v20, %v5650_v3  ;;  %v5672_v0 = vsel %vm751_vm6, %v5639_v42, %v5671_v25  ;;  %vm5897_vm6 = vcmask 97280  }
0x3993   :  { %v5673_v46 = vsel %vm753_vm7, %v5646_v38, %v5672_v0  ;;  %v5660_v61 = vmax.f32 %v5658_v7, %v5659_v58  ;;  %vm5899_vm7 = vcmask 105472  }
0x3994   :  { %v5652_v50 = vrot.slane %v5651_v56, 1 }
0x3996   :  { %v5653_v6 = vmax.f32 %v5651_v56, %v5652_v50 }
0x3998   :  { %v5674_v60 = vsel %vm755_vm8, %v5653_v6, %v5673_v46  ;;  %vm5901_vm8 = vcmask 113664  }
0x3999   :  { %v5675_v54 = vsel %vm757_vm9, %v5660_v61, %v5674_v60  ;;  %vm5903_vm9 = vcmask 121856  }
0x399a   :  { %6981 = vmatmul.mubr.msk.f32.vlgmr.msra.gmra.mrb[44].mxu1 %vm103_vm1, %v5675_v54 }
0x399b   :  { %7360 = vmatpush3.bf16.msra.mxu1 %v7969_v37  ;;  %6999 = vmatprep.mubr.msk.f32.mxu1 %vm7512_vm0, %v9210_v34  ;;  %v9282_v37 = vld [vmem:[#allocation17_spill] sm:$0xff]  ;;  %v9283_v34 = vld [vmem:[#allocation19_spill] sm:$0xff]  ;;  %vm5887_vm0 = vcmask 56320  }
0x399c   :  { %7361 = vmatprep.subr.bf16.mxu1 %v9211_v47 }
0x399f   :  { %7363 = vmatpush3.bf16.msra.mxu1 %v7976_v10  ;;  %v9284_v10 = vld [vmem:[#allocation24_spill] sm:$0xff] }
0x39a0   :  { %7364 = vmatprep.subr.bf16.mxu1 %v9211_v47 }
0x39a3   :  { %7366 = vmatpush3.bf16.msra.mxu1 %v7986_v63 }
0x39a4   :  { %7367 = vmatprep.subr.bf16.mxu1 %v9211_v47  ;;  %v9286_v47 = vld [vmem:[#allocation23_spill] sm:$0xff] }
0x39a7   :  { %7369 = vmatpush3.bf16.msra.mxu1 %v7996_v57 }
0x3a6d   :  { %v5744_v18 = vpop.f32.mrb[44].mxu1 }
0x3a6e   :  { %5749 = vrot.lane.b32.xlu0 %v5744_v18, %s7516_s2  ;;  %v6982_v51 = vpop.f32.mrb[45].mxu1 }
0x3a72   :  { %5831 = vrot.lane.b32.xlu0 %v9282_v37, %s7520_s18 }
0x3a76   :  { %5837 = vrot.lane.b32.xlu0 %v9283_v34, %s7521_s27 }
0x3a7a   :  { %5843 = vrot.lane.b32.xlu0 %v9284_v10, %s7522_s12 }
0x3a7e   :  { %5849 = vrot.lane.b32.xlu0 %v9285_v32, %s7523_s25 }
0x3a82   :  { %5855 = vrot.lane.b32.xlu0 %v9286_v47, %s7524_s8 }
0x3a86   :  { %5861 = vrot.lane.b32.xlu0 %v8843_v59, %s7525_s3  ;;  %v9291_v59 = vld [vmem:[#allocation26_spill] sm:$0xff] }
0x3a8a   :  { %5868 = vrot.lane.b32.xlu0 %v8988_v9, %s7526_s13 }
0x3ae0   :  { %v5750_v63 = vpop.permute.xlu0 %5749 }
0x3ae1   :  { %v5752_v57 = vadd.f32 %v5750_v63, %v8998_v2 }
0x3ae3   :  { %v5753_v62 = vadd.f32 %v5752_v57, %v8002_v8 }
0x3ae4   :  { %v5832_v9 = vpop.permute.xlu0 %5831 }
0x3ae5   :  { %v5754_v23 = vmax.f32 %v5753_v62, 0.0  ;;  %v5878_v27 = vsel %vm5877_vm11, %v5876_v39, %v5832_v9 }
0x3ae7   :  { %5756 = vrot.lane.b32.xlu1 %v5754_v23, %s7516_s2 }
0x3ae8   :  { %v5838_v2 = vpop.permute.xlu0 %5837 }
0x3aeb   :  { %5834 = vrot.lane.b32.xlu1 %v9287_v49, %s7520_s18 }
0x3aec   :  { %v5844_v41 = vpop.permute.xlu0 %5843 }
0x3aef   :  { %5840 = vrot.lane.b32.xlu1 %v9288_v55, %s7521_s27 }
0x3af3   :  { %5846 = vrot.lane.b32.xlu1 %v9289_v1, %s7522_s12 }
0x3af7   :  { %5852 = vrot.lane.b32.xlu1 %v9290_v14, %s7523_s25 }
0x3afb   :  { %5858 = vrot.lane.b32.xlu1 %v9291_v59, %s7524_s8 }
0x3aff   :  { %5864 = vrot.lane.b32.xlu1 %v8846_v40, %s7525_s3 }
0x3b03   :  { %5872 = vrot.lane.b32.xlu1 %v8993_v43, %s7526_s13  ;;  %v5850_v43 = vpop.permute.xlu0 %5849 }
0x3b07   :  { %v5856_v52 = vpop.permute.xlu0 %5855 }
0x3b0b   :  { %v5862_v26 = vpop.permute.xlu0 %5861 }
0x3b0f   :  { %v5869_v44 = vpop.permute.xlu0 %5868 }
0x3b59   :  { %v5757_v8 = vpop.permute.xlu1 %5756 }
0x3b5a   :  { %7000 = vmatmul.mubr.msk.f32.vlgmr.msra.gmra.mrb[46].mxu1 %vm483_vm2, %v5757_v8  ;;  %vm5889_vm2 = vcmask 64512  }
0x3b5d   :  { %v5835_v13 = vpop.permute.xlu1 %5834 }
0x3b5e   :  { %v5880_v33 = vsel %vm5879_vm12, %v5878_v27, %v5835_v13 }
0x3b5f   :  { %v5882_v45 = vsel %vm5881_vm13, %v5880_v33, %v5838_v2 }
0x3b61   :  { %v5841_v40 = vpop.permute.xlu1 %5840 }
0x3b62   :  { %v5884_v30 = vsel %vm5883_vm14, %v5882_v45, %v5841_v40 }
0x3b63   :  { %v5886_v11 = vsel %vm5885_vm15, %v5884_v30, %v5844_v41 }
0x3b65   :  { %v5847_v31 = vpop.permute.xlu1 %5846 }
0x3b66   :  { %v5888_v48 = vsel %vm5887_vm0, %v5886_v11, %v5847_v31 }
0x3b67   :  { %v5890_v4 = vsel %vm5889_vm2, %v5888_v48, %v5850_v43 }
0x3b69   :  { %v5853_v17 = vpop.permute.xlu1 %5852 }
0x3b6a   :  { %v5892_v22 = vsel %vm5891_vm3, %v5890_v4, %v5853_v17 }
0x3b6b   :  { %v5894_v53 = vsel %vm5893_vm4, %v5892_v22, %v5856_v52 }
0x3b6d   :  { %v5859_v15 = vpop.permute.xlu1 %5858 }
0x3b6e   :  { %v5896_v19 = vsel %vm5895_vm5, %v5894_v53, %v5859_v15 }
0x3b6f   :  { %v5898_v36 = vsel %vm5897_vm6, %v5896_v19, %v5862_v26 }
0x3b71   :  { %v5865_v29 = vpop.permute.xlu1 %5864 }
0x3b72   :  { %v5900_v24 = vsel %vm5899_vm7, %v5898_v36, %v5865_v29 }
0x3b73   :  { %v5902_v16 = vsel %vm5901_vm8, %v5900_v24, %v5869_v44 }
0x3b75   :  { %v5873_v5 = vpop.permute.xlu1 %5872 }
0x3b76   :  { %v5904_v28 = vsel %vm5903_vm9, %v5902_v16, %v5873_v5 }
0x3b77   :  { %5906 = vst.msk [vmem:[%s9124_s19] sm:$0xff] %vm5905_vm10, %v5904_v28 }
0x3c2d   :  { %v5826_v20 = vpop.f32.mrb[46].mxu1 }
0x3c2e   :  { %v5827_v7 = vadd.f32 %v8955_v35, %v5826_v20  ;;  %v7001_v25 = vpop.f32.mrb[47].mxu1 }
0x3c30   :  { %v5830_v42 = vmax.f32 %v5827_v7, 0.0 }
0x3c32   :  { %5907 = vst.msk [vmem:[#allocation2] sm:$0xff] %vm103_vm1, %v5830_v42 }
0x3c33   :  { %7498 = shalt.err (!%p7495_p4)
}
0x3c34   :  { %s7499_s19 = scalar_lea.hbm %s9125_s20, 128 }
0x3c35   :  { %p7500_p5 = scmp.ne.s32.totalorder %s9125_s20, %s7499_s19  ;;  %p7503_p6 = scmp.lt.u32.totalorder %s7499_s19, %s9125_s20 }
0x3c37   :  { %p7505_p7 = pnand %p7503_p6, %p7500_p5 }
0x3c39   :  { %7508 = shalt.err (!%p7505_p7)
}
0x3c3a   :  { %5919 = dma.vmem_to_hbm [thread:$0]  %s5917_s28, 128, %s9125_s20, [#allocation3]  }
0x3c3b   :  { %7509 = dma.done.wait [#allocation3], 128  }
0x3c3c   :  { %7510 = vsyncadd [#allocation3], 4294967168 }
0x3c3d   :  { %5925 = vsyncpa [#allocation3], 1 }

</bundles_post_ra>
